<compile_context>
chip_gen: v6e
topology: v6e:2x2x1
jax: 0.10.0
libtpu: 0.0.40
codegen_flags: <defaults>
</compile_context>

<pallas_src>
import math
import jax
import jax.numpy as jnp
from jax.experimental import pallas as pl
from jax.experimental.pallas import tpu as pltpu  # noqa: F401  (TPU backend assumed)

# ---- constants (mirrors `constants` module of the reference code) ----
PAD_ID = 0
BOS_ID = 1

# ---- model configuration (small shapes) ----
VOCAB = 50
EMB = 32
NUM_HEADS = 4
HEAD_DIM = EMB // NUM_HEADS
HID = 64
NUM_LAYERS = 2
OUT = 5
SEQ = 8
BATCH = 2
TOKEN_EMB_SCALE = True
WITH_CLS = True
# TODO(synk): non-with_cls branch (masked mean-pool over time) not exercised here.


# ---------------------------------------------------------------------------
# Fused Pallas kernel: NUM_LAYERS post-norm encoder layers + CLS projection
# ---------------------------------------------------------------------------
def fused_transformer_kernel(x_ref, mask_ref,
                             wq_ref, bq_ref, wk_ref, bk_ref, wv_ref, bv_ref,
                             wo_ref, bo_ref, ln1g_ref, ln1b_ref,
                             w1_ref, b1_ref, w2_ref, b2_ref,
                             ln2g_ref, ln2b_ref,
                             pw_ref, pb_ref, out_ref):
    """x_ref:    (B*S, E)  activations (batch-major, flattened, padded S)
       mask_ref: (B, S)    additive key-padding mask (0 valid, -1e9 pad)
       stacked layer weights: leading dim NUM_LAYERS
       out_ref:  (B, OUT)  logits
    """
    B, S = mask_ref.shape
    E = x_ref.shape[-1]

    x = x_ref[...]                       # (B*S, E) f32
    addmask = mask_ref[...]              # (B, S)   f32
    scale = 1.0 / math.sqrt(HEAD_DIM)

    def bf(a):
        # bf16 only for MXU operands; all VPU/EUP math stays f32 (v5e-safe)
        return a.astype(jnp.bfloat16)

    def layer_norm(h, g, b):
        mu = jnp.mean(h, axis=-1, keepdims=True)
        var = jnp.mean(jnp.square(h - mu), axis=-1, keepdims=True)
        return (h - mu) * jax.lax.rsqrt(var + 1e-5) * g + b

    for l in range(NUM_LAYERS):          # static unroll over the 2 layers
        last = (l == NUM_LAYERS - 1)
        nq = 1 if last else S            # last layer: only the CLS query row

        wq = bf(wq_ref[l]); wk = bf(wk_ref[l]); wv = bf(wv_ref[l]); wo = bf(wo_ref[l])
        bq = bq_ref[l]; bk = bk_ref[l]; bv = bv_ref[l]; bo = bo_ref[l]

        if last:
            # Only x[:, 0, :] (CLS position of each batch element) is consumed
            # downstream; restrict queries / residual stream to those rows.
            xq = jnp.concatenate([x[b * S:b * S + 1] for b in range(B)], axis=0)  # (B, E)
        else:
            xq = x                                                                # (B*S, E)

        xb = bf(x)
        q = jnp.dot(bf(xq), wq, preferred_element_type=jnp.float32) + bq   # (B*nq, E)
        k = jnp.dot(xb, wk, preferred_element_type=jnp.float32) + bk       # (B*S, E)
        v = jnp.dot(xb, wv, preferred_element_type=jnp.float32) + bv       # (B*S, E)

        # ---- multi-head self attention (static loops over batch & heads) ----
        per_batch = []
        for b in range(B):
            qb = q[b * nq:(b + 1) * nq]          # (nq, E)
            kb = k[b * S:(b + 1) * S]            # (S, E)
            vb = v[b * S:(b + 1) * S]            # (S, E)
            mb = addmask[b:b + 1]                # (1, S) broadcast over queries
            acc = jnp.zeros((nq, E), jnp.float32)
            for h in range(NUM_HEADS):
                sl = slice(h * HEAD_DIM, (h + 1) * HEAD_DIM)
                s = jax.lax.dot_general(
                    bf(qb[:, sl]), bf(kb[:, sl]),
                    (((1,), (1,)), ((), ())),
                    preferred_element_type=jnp.float32) * scale + mb       # (nq, S)
                p = jax.nn.softmax(s, axis=-1)                             # f32
                ctx = jnp.dot(bf(p), bf(vb[:, sl]),
                              preferred_element_type=jnp.float32)          # (nq, HD)
                # accumulate per-head partial into the output projection
                # (avoids a lane-axis head concat)
                acc = acc + jnp.dot(bf(ctx), wo[sl, :],
                                    preferred_element_type=jnp.float32)
            per_batch.append(acc)
        attn = jnp.concatenate(per_batch, axis=0) + bo                     # (B*nq, E)

        # ---- post-norm residual + FFN ----
        h1 = layer_norm(xq + attn, ln1g_ref[l], ln1b_ref[l])
        ff = jnp.dot(bf(h1), bf(w1_ref[l]),
                     preferred_element_type=jnp.float32) + b1_ref[l]
        ff = jnp.maximum(ff, 0.0)
        ff = jnp.dot(bf(ff), bf(w2_ref[l]),
                     preferred_element_type=jnp.float32) + b2_ref[l]
        x = layer_norm(h1 + ff, ln2g_ref[l], ln2b_ref[l])                  # (B*nq, E)

    # x is now the (B, E) CLS state; final projection kept in f32 (tiny).
    out_ref[...] = jnp.dot(x, pw_ref[...],
                           preferred_element_type=jnp.float32) + pb_ref[...]


def run_fused_transformer(x_flat, addmask, p):
    """x_flat: (B*S_pad, E) f32; addmask: (B, S_pad) f32. Returns (B, OUT)."""
    B = addmask.shape[0]
    return pl.pallas_call(
        fused_transformer_kernel,
        out_shape=jax.ShapeDtypeStruct((B, OUT), jnp.float32),
        # No grid: the entire (tiny) problem is one step; all weights and
        # activations are fully VMEM-resident (<200 KB total).
    )(x_flat, addmask,
      p['wq'], p['bq'], p['wk'], p['bk'], p['wv'], p['bv'],
      p['wo'], p['bo'], p['ln1g'], p['ln1b'],
      p['w1'], p['b1'], p['w2'], p['b2'], p['ln2g'], p['ln2b'],
      p['proj_w'], p['proj_b'])


# ---------------------------------------------------------------------------
# Glue: embedding, positional encoding, parameter init, full forward
# ---------------------------------------------------------------------------
def sinusoidal_pos_emb(S, E):
    pos = jnp.arange(S, dtype=jnp.float32)[:, None]
    i = jnp.arange(0, E, 2, dtype=jnp.float32)
    div = jnp.exp(i * (-math.log(10000.0) / E))
    ang = pos * div[None, :]
    pe = jnp.zeros((S, E), jnp.float32)
    pe = pe.at[:, 0::2].set(jnp.sin(ang))
    pe = pe.at[:, 1::2].set(jnp.cos(ang))
    return pe


def init_params(key):
    keys = iter(jax.random.split(key, 4 + NUM_LAYERS * 12))

    def lin(fan_in, fan_out):
        w = jax.random.normal(next(keys), (fan_in, fan_out), jnp.float32) \
            * (1.0 / math.sqrt(fan_in))
        b = jax.random.normal(next(keys), (1, fan_out), jnp.float32) * 0.01
        return w, b

    emb = jax.random.normal(next(keys), (VOCAB, EMB), jnp.float32) * 0.02
    emb = emb.at[PAD_ID].set(0.0)        # padding_idx row is zero
    # NOTE: emb_max_norm renormalization omitted (treated as None).

    layers = []
    for _ in range(NUM_LAYERS):
        wq, bq = lin(EMB, EMB)
        wk, bk = lin(EMB, EMB)
        wv, bv = lin(EMB, EMB)
        wo, bo = lin(EMB, EMB)
        w1, b1 = lin(EMB, HID)
        w2, b2 = lin(HID, EMB)
        layers.append(dict(
            wq=wq, bq=bq, wk=wk, bk=bk, wv=wv, bv=bv, wo=wo, bo=bo,
            w1=w1, b1=b1, w2=w2, b2=b2,
            ln1g=jnp.ones((1, EMB), jnp.float32),
            ln1b=jnp.zeros((1, EMB), jnp.float32),
            ln2g=jnp.ones((1, EMB), jnp.float32),
            ln2b=jnp.zeros((1, EMB), jnp.float32)))

    proj_w, proj_b = lin(EMB, OUT)

    # stack per-layer weights: leading dim = NUM_LAYERS (single kernel input each)
    stacked = {name: jnp.stack([lp[name] for lp in layers], axis=0)
               for name in layers[0]}
    return dict(emb=emb, proj_w=proj_w, proj_b=proj_b, **stacked)


def transformer_classifier_forward(x_ids, padding_mask_b, lens, params):
    """x_ids: (S, B) int32 (seq-first, like the PyTorch module);
    padding_mask_b: (B, S) bool, True = padding; lens: (B,)."""
    S, B = x_ids.shape

    if WITH_CLS:
        cls_tok = jnp.full((1, B), BOS_ID, dtype=x_ids.dtype)
        x_ids = jnp.concatenate([cls_tok, x_ids], axis=0)            # (S+1, B)
        cls_mask = jnp.zeros((B, 1), dtype=bool)
        padding_mask_b = jnp.concatenate([cls_mask, padding_mask_b], axis=1)

    S_tot = x_ids.shape[0]

    # embedding lookup (glue)
    x = params['emb'][x_ids]                                         # (S_tot, B, E)
    if TOKEN_EMB_SCALE:
        x = x * math.sqrt(EMB)
    x = x + sinusoidal_pos_emb(S_tot, EMB)[:, None, :]
    # dropout: eval mode -> identity

    # batch-first for the kernel
    x = jnp.transpose(x, (1, 0, 2)).astype(jnp.float32)              # (B, S_tot, E)
    addmask = jnp.where(padding_mask_b, -1e9, 0.0).astype(jnp.float32)  # (B, S_tot)

    # pad sequence dim to a multiple of 8 sublanes; padded keys are masked out
    S_pad = ((S_tot + 7) // 8) * 8
    if S_pad != S_tot:
        x = jnp.pad(x, ((0, 0), (0, S_pad - S_tot), (0, 0)))
        addmask = jnp.pad(addmask, ((0, 0), (0, S_pad - S_tot)),
                          constant_values=-1e9)

    x_flat = x.reshape(B * S_pad, EMB)                               # (B*S_pad, E)
    logits = run_fused_transformer(x_flat, addmask, params)          # (B, OUT)
    return logits


# ---------------------------------------------------------------------------
if __name__ == "__main__":
    key = jax.random.PRNGKey(0)
    k_tok, k_param = jax.random.split(key)

    # token ids, seq-first (S, B); real tokens in [2, VOCAB)
    x_ids = jax.random.randint(k_tok, (SEQ, BATCH), 2, VOCAB, dtype=jnp.int32)
    lens = jnp.array([SEQ, SEQ - 3], dtype=jnp.int32)
    pos = jnp.arange(SEQ)[None, :]
    padding_mask_b = pos >= lens[:, None]                            # (B, S), True = pad
    x_ids = jnp.where(padding_mask_b.T, PAD_ID, x_ids)               # pad positions -> PAD_ID

    params = init_params(k_param)

    logits = transformer_classifier_forward(x_ids, padding_mask_b, lens, params)
    logits = jax.block_until_ready(logits)
    assert logits.shape == (BATCH, OUT)
    assert bool(jnp.all(jnp.isfinite(logits)))
    print("KERNEL_OK")
</pallas_src>

<mosaic_0001>
module attributes {stable_mosaic.version = 11 : i64} {
  func.func @fused_transformer_kernel(%arg0: memref<32x32xf32, #tpu.memory_space<vmem>>, %arg1: memref<2x16xf32, #tpu.memory_space<vmem>>, %arg2: memref<2x32x32xf32, #tpu.memory_space<vmem>>, %arg3: memref<2x1x32xf32, #tpu.memory_space<vmem>>, %arg4: memref<2x32x32xf32, #tpu.memory_space<vmem>>, %arg5: memref<2x1x32xf32, #tpu.memory_space<vmem>>, %arg6: memref<2x32x32xf32, #tpu.memory_space<vmem>>, %arg7: memref<2x1x32xf32, #tpu.memory_space<vmem>>, %arg8: memref<2x32x32xf32, #tpu.memory_space<vmem>>, %arg9: memref<2x1x32xf32, #tpu.memory_space<vmem>>, %arg10: memref<2x1x32xf32, #tpu.memory_space<vmem>>, %arg11: memref<2x1x32xf32, #tpu.memory_space<vmem>>, %arg12: memref<2x32x64xf32, #tpu.memory_space<vmem>>, %arg13: memref<2x1x64xf32, #tpu.memory_space<vmem>>, %arg14: memref<2x64x32xf32, #tpu.memory_space<vmem>>, %arg15: memref<2x1x32xf32, #tpu.memory_space<vmem>>, %arg16: memref<2x1x32xf32, #tpu.memory_space<vmem>>, %arg17: memref<2x1x32xf32, #tpu.memory_space<vmem>>, %arg18: memref<32x5xf32, #tpu.memory_space<vmem>>, %arg19: memref<1x5xf32, #tpu.memory_space<vmem>>, %arg20: memref<2x5xf32, #tpu.memory_space<vmem>>) attributes {dimension_semantics = [], scalar_prefetch = 0 : i64, scratch_operands = 0 : i64, tpu.core_type = #tpu.core_type<tc>} {
    %c0 = arith.constant 0 : index
    %c0_0 = arith.constant 0 : index
    %0 = vector.load %arg0[%c0, %c0_0] : memref<32x32xf32, #tpu.memory_space<vmem>>, vector<32x32xf32>
    %c0_1 = arith.constant 0 : index
    %c0_2 = arith.constant 0 : index
    %1 = vector.load %arg1[%c0_1, %c0_2] : memref<2x16xf32, #tpu.memory_space<vmem>>, vector<2x16xf32>
    %c0_3 = arith.constant 0 : index
    %c0_4 = arith.constant 0 : index
    %c0_5 = arith.constant 0 : index
    %2 = vector.load %arg2[%c0_3, %c0_4, %c0_5] : memref<2x32x32xf32, #tpu.memory_space<vmem>>, vector<1x32x32xf32>
    %3 = vector.shape_cast %2 : vector<1x32x32xf32> to vector<32x32xf32>
    %4 = arith.truncf %3 : vector<32x32xf32> to vector<32x32xbf16>
    %c0_6 = arith.constant 0 : index
    %c0_7 = arith.constant 0 : index
    %c0_8 = arith.constant 0 : index
    %5 = vector.load %arg4[%c0_6, %c0_7, %c0_8] : memref<2x32x32xf32, #tpu.memory_space<vmem>>, vector<1x32x32xf32>
    %6 = vector.shape_cast %5 : vector<1x32x32xf32> to vector<32x32xf32>
    %7 = arith.truncf %6 : vector<32x32xf32> to vector<32x32xbf16>
    %c0_9 = arith.constant 0 : index
    %c0_10 = arith.constant 0 : index
    %c0_11 = arith.constant 0 : index
    %8 = vector.load %arg6[%c0_9, %c0_10, %c0_11] : memref<2x32x32xf32, #tpu.memory_space<vmem>>, vector<1x32x32xf32>
    %9 = vector.shape_cast %8 : vector<1x32x32xf32> to vector<32x32xf32>
    %10 = arith.truncf %9 : vector<32x32xf32> to vector<32x32xbf16>
    %c0_12 = arith.constant 0 : index
    %c0_13 = arith.constant 0 : index
    %c0_14 = arith.constant 0 : index
    %11 = vector.load %arg8[%c0_12, %c0_13, %c0_14] : memref<2x32x32xf32, #tpu.memory_space<vmem>>, vector<1x32x32xf32>
    %12 = vector.shape_cast %11 : vector<1x32x32xf32> to vector<32x32xf32>
    %13 = arith.truncf %12 : vector<32x32xf32> to vector<32x32xbf16>
    %c0_15 = arith.constant 0 : index
    %c0_16 = arith.constant 0 : index
    %c0_17 = arith.constant 0 : index
    %14 = vector.load %arg3[%c0_15, %c0_16, %c0_17] : memref<2x1x32xf32, #tpu.memory_space<vmem>>, vector<1x1x32xf32>
    %15 = vector.shape_cast %14 : vector<1x1x32xf32> to vector<1x32xf32>
    %c0_18 = arith.constant 0 : index
    %c0_19 = arith.constant 0 : index
    %c0_20 = arith.constant 0 : index
    %16 = vector.load %arg5[%c0_18, %c0_19, %c0_20] : memref<2x1x32xf32, #tpu.memory_space<vmem>>, vector<1x1x32xf32>
    %17 = vector.shape_cast %16 : vector<1x1x32xf32> to vector<1x32xf32>
    %c0_21 = arith.constant 0 : index
    %c0_22 = arith.constant 0 : index
    %c0_23 = arith.constant 0 : index
    %18 = vector.load %arg7[%c0_21, %c0_22, %c0_23] : memref<2x1x32xf32, #tpu.memory_space<vmem>>, vector<1x1x32xf32>
    %19 = vector.shape_cast %18 : vector<1x1x32xf32> to vector<1x32xf32>
    %c0_24 = arith.constant 0 : index
    %c0_25 = arith.constant 0 : index
    %c0_26 = arith.constant 0 : index
    %20 = vector.load %arg9[%c0_24, %c0_25, %c0_26] : memref<2x1x32xf32, #tpu.memory_space<vmem>>, vector<1x1x32xf32>
    %21 = vector.shape_cast %20 : vector<1x1x32xf32> to vector<1x32xf32>
    %22 = arith.truncf %0 : vector<32x32xf32> to vector<32x32xbf16>
    %23 = arith.truncf %0 : vector<32x32xf32> to vector<32x32xbf16>
    %cst = arith.constant dense<0.000000e+00> : vector<32x32xf32>
    %24 = tpu.matmul %23, %4, %cst {dimension_numbers = #tpu.dot_dimension_numbers<[1], [0], [0], [1], [0, 0, 1, 1], [], []>} : vector<32x32xbf16>, vector<32x32xbf16>, vector<32x32xf32> -> vector<32x32xf32>
    %25 = vector.broadcast %15 : vector<1x32xf32> to vector<32x32xf32>
    %26 = arith.addf %24, %25 : vector<32x32xf32>
    %cst_27 = arith.constant dense<0.000000e+00> : vector<32x32xf32>
    %27 = tpu.matmul %22, %7, %cst_27 {dimension_numbers = #tpu.dot_dimension_numbers<[1], [0], [0], [1], [0, 0, 1, 1], [], []>} : vector<32x32xbf16>, vector<32x32xbf16>, vector<32x32xf32> -> vector<32x32xf32>
    %28 = vector.broadcast %17 : vector<1x32xf32> to vector<32x32xf32>
    %29 = arith.addf %27, %28 : vector<32x32xf32>
    %cst_28 = arith.constant dense<0.000000e+00> : vector<32x32xf32>
    %30 = tpu.matmul %22, %10, %cst_28 {dimension_numbers = #tpu.dot_dimension_numbers<[1], [0], [0], [1], [0, 0, 1, 1], [], []>} : vector<32x32xbf16>, vector<32x32xbf16>, vector<32x32xf32> -> vector<32x32xf32>
    %31 = vector.broadcast %19 : vector<1x32xf32> to vector<32x32xf32>
    %32 = arith.addf %30, %31 : vector<32x32xf32>
    %33 = vector.extract_strided_slice %26 {offsets = [0, 0], sizes = [16, 32], strides = [1, 1]} : vector<32x32xf32> to vector<16x32xf32>
    %34 = vector.extract_strided_slice %29 {offsets = [0, 0], sizes = [16, 32], strides = [1, 1]} : vector<32x32xf32> to vector<16x32xf32>
    %35 = vector.extract_strided_slice %32 {offsets = [0, 0], sizes = [16, 32], strides = [1, 1]} : vector<32x32xf32> to vector<16x32xf32>
    %36 = vector.extract_strided_slice %1 {offsets = [0, 0], sizes = [1, 16], strides = [1, 1]} : vector<2x16xf32> to vector<1x16xf32>
    %cst_29 = arith.constant 0.000000e+00 : f32
    %37 = vector.broadcast %cst_29 : f32 to vector<16x32xf32>
    %38 = vector.extract_strided_slice %33 {offsets = [0, 0], sizes = [16, 8], strides = [1, 1]} : vector<16x32xf32> to vector<16x8xf32>
    %39 = arith.truncf %38 : vector<16x8xf32> to vector<16x8xbf16>
    %40 = vector.extract_strided_slice %34 {offsets = [0, 0], sizes = [16, 8], strides = [1, 1]} : vector<16x32xf32> to vector<16x8xf32>
    %41 = arith.truncf %40 : vector<16x8xf32> to vector<16x8xbf16>
    %cst_30 = arith.constant dense<0.000000e+00> : vector<16x16xf32>
    %42 = tpu.matmul %39, %41, %cst_30 {dimension_numbers = #tpu.dot_dimension_numbers<[1], [1], [0], [0], [0, 0, 1, 0], [], []>} : vector<16x8xbf16>, vector<16x8xbf16>, vector<16x16xf32> -> vector<16x16xf32>
    %cst_31 = arith.constant 0.353553385 : f32
    %43 = vector.broadcast %cst_31 : f32 to vector<16x16xf32>
    %44 = arith.mulf %42, %43 : vector<16x16xf32>
    %45 = vector.broadcast %36 : vector<1x16xf32> to vector<16x16xf32>
    %46 = arith.addf %44, %45 : vector<16x16xf32>
    %cst_32 = arith.constant dense<0xFF800000> : vector<16xf32>
    %47 = vector.multi_reduction <maximumf>, %46, %cst_32 [1] : vector<16x16xf32> to vector<16xf32>
    %cst_33 = arith.constant 0xFF800000 : f32
    %48 = vector.broadcast %cst_33 : f32 to vector<16xf32>
    %49 = arith.maximumf %48, %47 : vector<16xf32>
    %50 = vector.shape_cast %49 : vector<16xf32> to vector<16x1xf32>
    %51 = vector.broadcast %50 : vector<16x1xf32> to vector<16x16xf32>
    %52 = arith.subf %46, %51 : vector<16x16xf32>
    %53 = math.exp %52 : vector<16x16xf32>
    %cst_34 = arith.constant dense<0.000000e+00> : vector<16xf32>
    %54 = vector.multi_reduction <add>, %53, %cst_34 [1] : vector<16x16xf32> to vector<16xf32>
    %55 = vector.shape_cast %54 : vector<16xf32> to vector<16x1xf32>
    %56 = vector.broadcast %55 : vector<16x1xf32> to vector<16x16xf32>
    %57 = arith.divf %53, %56 : vector<16x16xf32>
    %58 = arith.truncf %57 : vector<16x16xf32> to vector<16x16xbf16>
    %59 = vector.extract_strided_slice %35 {offsets = [0, 0], sizes = [16, 8], strides = [1, 1]} : vector<16x32xf32> to vector<16x8xf32>
    %60 = arith.truncf %59 : vector<16x8xf32> to vector<16x8xbf16>
    %cst_35 = arith.constant dense<0.000000e+00> : vector<16x8xf32>
    %61 = tpu.matmul %58, %60, %cst_35 {dimension_numbers = #tpu.dot_dimension_numbers<[1], [0], [0], [1], [0, 0, 1, 1], [], []>} : vector<16x16xbf16>, vector<16x8xbf16>, vector<16x8xf32> -> vector<16x8xf32>
    %62 = arith.truncf %61 : vector<16x8xf32> to vector<16x8xbf16>
    %63 = vector.extract_strided_slice %13 {offsets = [0, 0], sizes = [8, 32], strides = [1, 1]} : vector<32x32xbf16> to vector<8x32xbf16>
    %cst_36 = arith.constant dense<0.000000e+00> : vector<16x32xf32>
    %64 = tpu.matmul %62, %63, %cst_36 {dimension_numbers = #tpu.dot_dimension_numbers<[1], [0], [0], [1], [0, 0, 1, 1], [], []>} : vector<16x8xbf16>, vector<8x32xbf16>, vector<16x32xf32> -> vector<16x32xf32>
    %65 = arith.addf %37, %64 : vector<16x32xf32>
    %66 = vector.extract_strided_slice %33 {offsets = [0, 8], sizes = [16, 8], strides = [1, 1]} : vector<16x32xf32> to vector<16x8xf32>
    %67 = arith.truncf %66 : vector<16x8xf32> to vector<16x8xbf16>
    %68 = vector.extract_strided_slice %34 {offsets = [0, 8], sizes = [16, 8], strides = [1, 1]} : vector<16x32xf32> to vector<16x8xf32>
    %69 = arith.truncf %68 : vector<16x8xf32> to vector<16x8xbf16>
    %cst_37 = arith.constant dense<0.000000e+00> : vector<16x16xf32>
    %70 = tpu.matmul %67, %69, %cst_37 {dimension_numbers = #tpu.dot_dimension_numbers<[1], [1], [0], [0], [0, 0, 1, 0], [], []>} : vector<16x8xbf16>, vector<16x8xbf16>, vector<16x16xf32> -> vector<16x16xf32>
    %cst_38 = arith.constant 0.353553385 : f32
    %71 = vector.broadcast %cst_38 : f32 to vector<16x16xf32>
    %72 = arith.mulf %70, %71 : vector<16x16xf32>
    %73 = vector.broadcast %36 : vector<1x16xf32> to vector<16x16xf32>
    %74 = arith.addf %72, %73 : vector<16x16xf32>
    %cst_39 = arith.constant dense<0xFF800000> : vector<16xf32>
    %75 = vector.multi_reduction <maximumf>, %74, %cst_39 [1] : vector<16x16xf32> to vector<16xf32>
    %cst_40 = arith.constant 0xFF800000 : f32
    %76 = vector.broadcast %cst_40 : f32 to vector<16xf32>
    %77 = arith.maximumf %76, %75 : vector<16xf32>
    %78 = vector.shape_cast %77 : vector<16xf32> to vector<16x1xf32>
    %79 = vector.broadcast %78 : vector<16x1xf32> to vector<16x16xf32>
    %80 = arith.subf %74, %79 : vector<16x16xf32>
    %81 = math.exp %80 : vector<16x16xf32>
    %cst_41 = arith.constant dense<0.000000e+00> : vector<16xf32>
    %82 = vector.multi_reduction <add>, %81, %cst_41 [1] : vector<16x16xf32> to vector<16xf32>
    %83 = vector.shape_cast %82 : vector<16xf32> to vector<16x1xf32>
    %84 = vector.broadcast %83 : vector<16x1xf32> to vector<16x16xf32>
    %85 = arith.divf %81, %84 : vector<16x16xf32>
    %86 = arith.truncf %85 : vector<16x16xf32> to vector<16x16xbf16>
    %87 = vector.extract_strided_slice %35 {offsets = [0, 8], sizes = [16, 8], strides = [1, 1]} : vector<16x32xf32> to vector<16x8xf32>
    %88 = arith.truncf %87 : vector<16x8xf32> to vector<16x8xbf16>
    %cst_42 = arith.constant dense<0.000000e+00> : vector<16x8xf32>
    %89 = tpu.matmul %86, %88, %cst_42 {dimension_numbers = #tpu.dot_dimension_numbers<[1], [0], [0], [1], [0, 0, 1, 1], [], []>} : vector<16x16xbf16>, vector<16x8xbf16>, vector<16x8xf32> -> vector<16x8xf32>
    %90 = arith.truncf %89 : vector<16x8xf32> to vector<16x8xbf16>
    %91 = vector.extract_strided_slice %13 {offsets = [8, 0], sizes = [8, 32], strides = [1, 1]} : vector<32x32xbf16> to vector<8x32xbf16>
    %cst_43 = arith.constant dense<0.000000e+00> : vector<16x32xf32>
    %92 = tpu.matmul %90, %91, %cst_43 {dimension_numbers = #tpu.dot_dimension_numbers<[1], [0], [0], [1], [0, 0, 1, 1], [], []>} : vector<16x8xbf16>, vector<8x32xbf16>, vector<16x32xf32> -> vector<16x32xf32>
    %93 = arith.addf %65, %92 : vector<16x32xf32>
    %94 = vector.extract_strided_slice %33 {offsets = [0, 16], sizes = [16, 8], strides = [1, 1]} : vector<16x32xf32> to vector<16x8xf32>
    %95 = arith.truncf %94 : vector<16x8xf32> to vector<16x8xbf16>
    %96 = vector.extract_strided_slice %34 {offsets = [0, 16], sizes = [16, 8], strides = [1, 1]} : vector<16x32xf32> to vector<16x8xf32>
    %97 = arith.truncf %96 : vector<16x8xf32> to vector<16x8xbf16>
    %cst_44 = arith.constant dense<0.000000e+00> : vector<16x16xf32>
    %98 = tpu.matmul %95, %97, %cst_44 {dimension_numbers = #tpu.dot_dimension_numbers<[1], [1], [0], [0], [0, 0, 1, 0], [], []>} : vector<16x8xbf16>, vector<16x8xbf16>, vector<16x16xf32> -> vector<16x16xf32>
    %cst_45 = arith.constant 0.353553385 : f32
    %99 = vector.broadcast %cst_45 : f32 to vector<16x16xf32>
    %100 = arith.mulf %98, %99 : vector<16x16xf32>
    %101 = vector.broadcast %36 : vector<1x16xf32> to vector<16x16xf32>
    %102 = arith.addf %100, %101 : vector<16x16xf32>
    %cst_46 = arith.constant dense<0xFF800000> : vector<16xf32>
    %103 = vector.multi_reduction <maximumf>, %102, %cst_46 [1] : vector<16x16xf32> to vector<16xf32>
    %cst_47 = arith.constant 0xFF800000 : f32
    %104 = vector.broadcast %cst_47 : f32 to vector<16xf32>
    %105 = arith.maximumf %104, %103 : vector<16xf32>
    %106 = vector.shape_cast %105 : vector<16xf32> to vector<16x1xf32>
    %107 = vector.broadcast %106 : vector<16x1xf32> to vector<16x16xf32>
    %108 = arith.subf %102, %107 : vector<16x16xf32>
    %109 = math.exp %108 : vector<16x16xf32>
    %cst_48 = arith.constant dense<0.000000e+00> : vector<16xf32>
    %110 = vector.multi_reduction <add>, %109, %cst_48 [1] : vector<16x16xf32> to vector<16xf32>
    %111 = vector.shape_cast %110 : vector<16xf32> to vector<16x1xf32>
    %112 = vector.broadcast %111 : vector<16x1xf32> to vector<16x16xf32>
    %113 = arith.divf %109, %112 : vector<16x16xf32>
    %114 = arith.truncf %113 : vector<16x16xf32> to vector<16x16xbf16>
    %115 = vector.extract_strided_slice %35 {offsets = [0, 16], sizes = [16, 8], strides = [1, 1]} : vector<16x32xf32> to vector<16x8xf32>
    %116 = arith.truncf %115 : vector<16x8xf32> to vector<16x8xbf16>
    %cst_49 = arith.constant dense<0.000000e+00> : vector<16x8xf32>
    %117 = tpu.matmul %114, %116, %cst_49 {dimension_numbers = #tpu.dot_dimension_numbers<[1], [0], [0], [1], [0, 0, 1, 1], [], []>} : vector<16x16xbf16>, vector<16x8xbf16>, vector<16x8xf32> -> vector<16x8xf32>
    %118 = arith.truncf %117 : vector<16x8xf32> to vector<16x8xbf16>
    %119 = vector.extract_strided_slice %13 {offsets = [16, 0], sizes = [8, 32], strides = [1, 1]} : vector<32x32xbf16> to vector<8x32xbf16>
    %cst_50 = arith.constant dense<0.000000e+00> : vector<16x32xf32>
    %120 = tpu.matmul %118, %119, %cst_50 {dimension_numbers = #tpu.dot_dimension_numbers<[1], [0], [0], [1], [0, 0, 1, 1], [], []>} : vector<16x8xbf16>, vector<8x32xbf16>, vector<16x32xf32> -> vector<16x32xf32>
    %121 = arith.addf %93, %120 : vector<16x32xf32>
    %122 = vector.extract_strided_slice %33 {offsets = [0, 24], sizes = [16, 8], strides = [1, 1]} : vector<16x32xf32> to vector<16x8xf32>
    %123 = arith.truncf %122 : vector<16x8xf32> to vector<16x8xbf16>
    %124 = vector.extract_strided_slice %34 {offsets = [0, 24], sizes = [16, 8], strides = [1, 1]} : vector<16x32xf32> to vector<16x8xf32>
    %125 = arith.truncf %124 : vector<16x8xf32> to vector<16x8xbf16>
    %cst_51 = arith.constant dense<0.000000e+00> : vector<16x16xf32>
    %126 = tpu.matmul %123, %125, %cst_51 {dimension_numbers = #tpu.dot_dimension_numbers<[1], [1], [0], [0], [0, 0, 1, 0], [], []>} : vector<16x8xbf16>, vector<16x8xbf16>, vector<16x16xf32> -> vector<16x16xf32>
    %cst_52 = arith.constant 0.353553385 : f32
    %127 = vector.broadcast %cst_52 : f32 to vector<16x16xf32>
    %128 = arith.mulf %126, %127 : vector<16x16xf32>
    %129 = vector.broadcast %36 : vector<1x16xf32> to vector<16x16xf32>
    %130 = arith.addf %128, %129 : vector<16x16xf32>
    %cst_53 = arith.constant dense<0xFF800000> : vector<16xf32>
    %131 = vector.multi_reduction <maximumf>, %130, %cst_53 [1] : vector<16x16xf32> to vector<16xf32>
    %cst_54 = arith.constant 0xFF800000 : f32
    %132 = vector.broadcast %cst_54 : f32 to vector<16xf32>
    %133 = arith.maximumf %132, %131 : vector<16xf32>
    %134 = vector.shape_cast %133 : vector<16xf32> to vector<16x1xf32>
    %135 = vector.broadcast %134 : vector<16x1xf32> to vector<16x16xf32>
    %136 = arith.subf %130, %135 : vector<16x16xf32>
    %137 = math.exp %136 : vector<16x16xf32>
    %cst_55 = arith.constant dense<0.000000e+00> : vector<16xf32>
    %138 = vector.multi_reduction <add>, %137, %cst_55 [1] : vector<16x16xf32> to vector<16xf32>
    %139 = vector.shape_cast %138 : vector<16xf32> to vector<16x1xf32>
    %140 = vector.broadcast %139 : vector<16x1xf32> to vector<16x16xf32>
    %141 = arith.divf %137, %140 : vector<16x16xf32>
    %142 = arith.truncf %141 : vector<16x16xf32> to vector<16x16xbf16>
    %143 = vector.extract_strided_slice %35 {offsets = [0, 24], sizes = [16, 8], strides = [1, 1]} : vector<16x32xf32> to vector<16x8xf32>
    %144 = arith.truncf %143 : vector<16x8xf32> to vector<16x8xbf16>
    %cst_56 = arith.constant dense<0.000000e+00> : vector<16x8xf32>
    %145 = tpu.matmul %142, %144, %cst_56 {dimension_numbers = #tpu.dot_dimension_numbers<[1], [0], [0], [1], [0, 0, 1, 1], [], []>} : vector<16x16xbf16>, vector<16x8xbf16>, vector<16x8xf32> -> vector<16x8xf32>
    %146 = arith.truncf %145 : vector<16x8xf32> to vector<16x8xbf16>
    %147 = vector.extract_strided_slice %13 {offsets = [24, 0], sizes = [8, 32], strides = [1, 1]} : vector<32x32xbf16> to vector<8x32xbf16>
    %cst_57 = arith.constant dense<0.000000e+00> : vector<16x32xf32>
    %148 = tpu.matmul %146, %147, %cst_57 {dimension_numbers = #tpu.dot_dimension_numbers<[1], [0], [0], [1], [0, 0, 1, 1], [], []>} : vector<16x8xbf16>, vector<8x32xbf16>, vector<16x32xf32> -> vector<16x32xf32>
    %149 = arith.addf %121, %148 : vector<16x32xf32>
    %150 = vector.extract_strided_slice %26 {offsets = [16, 0], sizes = [16, 32], strides = [1, 1]} : vector<32x32xf32> to vector<16x32xf32>
    %151 = vector.extract_strided_slice %29 {offsets = [16, 0], sizes = [16, 32], strides = [1, 1]} : vector<32x32xf32> to vector<16x32xf32>
    %152 = vector.extract_strided_slice %32 {offsets = [16, 0], sizes = [16, 32], strides = [1, 1]} : vector<32x32xf32> to vector<16x32xf32>
    %153 = vector.extract_strided_slice %1 {offsets = [1, 0], sizes = [1, 16], strides = [1, 1]} : vector<2x16xf32> to vector<1x16xf32>
    %cst_58 = arith.constant 0.000000e+00 : f32
    %154 = vector.broadcast %cst_58 : f32 to vector<16x32xf32>
    %155 = vector.extract_strided_slice %150 {offsets = [0, 0], sizes = [16, 8], strides = [1, 1]} : vector<16x32xf32> to vector<16x8xf32>
    %156 = arith.truncf %155 : vector<16x8xf32> to vector<16x8xbf16>
    %157 = vector.extract_strided_slice %151 {offsets = [0, 0], sizes = [16, 8], strides = [1, 1]} : vector<16x32xf32> to vector<16x8xf32>
    %158 = arith.truncf %157 : vector<16x8xf32> to vector<16x8xbf16>
    %cst_59 = arith.constant dense<0.000000e+00> : vector<16x16xf32>
    %159 = tpu.matmul %156, %158, %cst_59 {dimension_numbers = #tpu.dot_dimension_numbers<[1], [1], [0], [0], [0, 0, 1, 0], [], []>} : vector<16x8xbf16>, vector<16x8xbf16>, vector<16x16xf32> -> vector<16x16xf32>
    %cst_60 = arith.constant 0.353553385 : f32
    %160 = vector.broadcast %cst_60 : f32 to vector<16x16xf32>
    %161 = arith.mulf %159, %160 : vector<16x16xf32>
    %162 = vector.broadcast %153 : vector<1x16xf32> to vector<16x16xf32>
    %163 = arith.addf %161, %162 : vector<16x16xf32>
    %cst_61 = arith.constant dense<0xFF800000> : vector<16xf32>
    %164 = vector.multi_reduction <maximumf>, %163, %cst_61 [1] : vector<16x16xf32> to vector<16xf32>
    %cst_62 = arith.constant 0xFF800000 : f32
    %165 = vector.broadcast %cst_62 : f32 to vector<16xf32>
    %166 = arith.maximumf %165, %164 : vector<16xf32>
    %167 = vector.shape_cast %166 : vector<16xf32> to vector<16x1xf32>
    %168 = vector.broadcast %167 : vector<16x1xf32> to vector<16x16xf32>
    %169 = arith.subf %163, %168 : vector<16x16xf32>
    %170 = math.exp %169 : vector<16x16xf32>
    %cst_63 = arith.constant dense<0.000000e+00> : vector<16xf32>
    %171 = vector.multi_reduction <add>, %170, %cst_63 [1] : vector<16x16xf32> to vector<16xf32>
    %172 = vector.shape_cast %171 : vector<16xf32> to vector<16x1xf32>
    %173 = vector.broadcast %172 : vector<16x1xf32> to vector<16x16xf32>
    %174 = arith.divf %170, %173 : vector<16x16xf32>
    %175 = arith.truncf %174 : vector<16x16xf32> to vector<16x16xbf16>
    %176 = vector.extract_strided_slice %152 {offsets = [0, 0], sizes = [16, 8], strides = [1, 1]} : vector<16x32xf32> to vector<16x8xf32>
    %177 = arith.truncf %176 : vector<16x8xf32> to vector<16x8xbf16>
    %cst_64 = arith.constant dense<0.000000e+00> : vector<16x8xf32>
    %178 = tpu.matmul %175, %177, %cst_64 {dimension_numbers = #tpu.dot_dimension_numbers<[1], [0], [0], [1], [0, 0, 1, 1], [], []>} : vector<16x16xbf16>, vector<16x8xbf16>, vector<16x8xf32> -> vector<16x8xf32>
    %179 = arith.truncf %178 : vector<16x8xf32> to vector<16x8xbf16>
    %180 = vector.extract_strided_slice %13 {offsets = [0, 0], sizes = [8, 32], strides = [1, 1]} : vector<32x32xbf16> to vector<8x32xbf16>
    %cst_65 = arith.constant dense<0.000000e+00> : vector<16x32xf32>
    %181 = tpu.matmul %179, %180, %cst_65 {dimension_numbers = #tpu.dot_dimension_numbers<[1], [0], [0], [1], [0, 0, 1, 1], [], []>} : vector<16x8xbf16>, vector<8x32xbf16>, vector<16x32xf32> -> vector<16x32xf32>
    %182 = arith.addf %154, %181 : vector<16x32xf32>
    %183 = vector.extract_strided_slice %150 {offsets = [0, 8], sizes = [16, 8], strides = [1, 1]} : vector<16x32xf32> to vector<16x8xf32>
    %184 = arith.truncf %183 : vector<16x8xf32> to vector<16x8xbf16>
    %185 = vector.extract_strided_slice %151 {offsets = [0, 8], sizes = [16, 8], strides = [1, 1]} : vector<16x32xf32> to vector<16x8xf32>
    %186 = arith.truncf %185 : vector<16x8xf32> to vector<16x8xbf16>
    %cst_66 = arith.constant dense<0.000000e+00> : vector<16x16xf32>
    %187 = tpu.matmul %184, %186, %cst_66 {dimension_numbers = #tpu.dot_dimension_numbers<[1], [1], [0], [0], [0, 0, 1, 0], [], []>} : vector<16x8xbf16>, vector<16x8xbf16>, vector<16x16xf32> -> vector<16x16xf32>
    %cst_67 = arith.constant 0.353553385 : f32
    %188 = vector.broadcast %cst_67 : f32 to vector<16x16xf32>
    %189 = arith.mulf %187, %188 : vector<16x16xf32>
    %190 = vector.broadcast %153 : vector<1x16xf32> to vector<16x16xf32>
    %191 = arith.addf %189, %190 : vector<16x16xf32>
    %cst_68 = arith.constant dense<0xFF800000> : vector<16xf32>
    %192 = vector.multi_reduction <maximumf>, %191, %cst_68 [1] : vector<16x16xf32> to vector<16xf32>
    %cst_69 = arith.constant 0xFF800000 : f32
    %193 = vector.broadcast %cst_69 : f32 to vector<16xf32>
    %194 = arith.maximumf %193, %192 : vector<16xf32>
    %195 = vector.shape_cast %194 : vector<16xf32> to vector<16x1xf32>
    %196 = vector.broadcast %195 : vector<16x1xf32> to vector<16x16xf32>
    %197 = arith.subf %191, %196 : vector<16x16xf32>
    %198 = math.exp %197 : vector<16x16xf32>
    %cst_70 = arith.constant dense<0.000000e+00> : vector<16xf32>
    %199 = vector.multi_reduction <add>, %198, %cst_70 [1] : vector<16x16xf32> to vector<16xf32>
    %200 = vector.shape_cast %199 : vector<16xf32> to vector<16x1xf32>
    %201 = vector.broadcast %200 : vector<16x1xf32> to vector<16x16xf32>
    %202 = arith.divf %198, %201 : vector<16x16xf32>
    %203 = arith.truncf %202 : vector<16x16xf32> to vector<16x16xbf16>
    %204 = vector.extract_strided_slice %152 {offsets = [0, 8], sizes = [16, 8], strides = [1, 1]} : vector<16x32xf32> to vector<16x8xf32>
    %205 = arith.truncf %204 : vector<16x8xf32> to vector<16x8xbf16>
    %cst_71 = arith.constant dense<0.000000e+00> : vector<16x8xf32>
    %206 = tpu.matmul %203, %205, %cst_71 {dimension_numbers = #tpu.dot_dimension_numbers<[1], [0], [0], [1], [0, 0, 1, 1], [], []>} : vector<16x16xbf16>, vector<16x8xbf16>, vector<16x8xf32> -> vector<16x8xf32>
    %207 = arith.truncf %206 : vector<16x8xf32> to vector<16x8xbf16>
    %208 = vector.extract_strided_slice %13 {offsets = [8, 0], sizes = [8, 32], strides = [1, 1]} : vector<32x32xbf16> to vector<8x32xbf16>
    %cst_72 = arith.constant dense<0.000000e+00> : vector<16x32xf32>
    %209 = tpu.matmul %207, %208, %cst_72 {dimension_numbers = #tpu.dot_dimension_numbers<[1], [0], [0], [1], [0, 0, 1, 1], [], []>} : vector<16x8xbf16>, vector<8x32xbf16>, vector<16x32xf32> -> vector<16x32xf32>
    %210 = arith.addf %182, %209 : vector<16x32xf32>
    %211 = vector.extract_strided_slice %150 {offsets = [0, 16], sizes = [16, 8], strides = [1, 1]} : vector<16x32xf32> to vector<16x8xf32>
    %212 = arith.truncf %211 : vector<16x8xf32> to vector<16x8xbf16>
    %213 = vector.extract_strided_slice %151 {offsets = [0, 16], sizes = [16, 8], strides = [1, 1]} : vector<16x32xf32> to vector<16x8xf32>
    %214 = arith.truncf %213 : vector<16x8xf32> to vector<16x8xbf16>
    %cst_73 = arith.constant dense<0.000000e+00> : vector<16x16xf32>
    %215 = tpu.matmul %212, %214, %cst_73 {dimension_numbers = #tpu.dot_dimension_numbers<[1], [1], [0], [0], [0, 0, 1, 0], [], []>} : vector<16x8xbf16>, vector<16x8xbf16>, vector<16x16xf32> -> vector<16x16xf32>
    %cst_74 = arith.constant 0.353553385 : f32
    %216 = vector.broadcast %cst_74 : f32 to vector<16x16xf32>
    %217 = arith.mulf %215, %216 : vector<16x16xf32>
    %218 = vector.broadcast %153 : vector<1x16xf32> to vector<16x16xf32>
    %219 = arith.addf %217, %218 : vector<16x16xf32>
    %cst_75 = arith.constant dense<0xFF800000> : vector<16xf32>
    %220 = vector.multi_reduction <maximumf>, %219, %cst_75 [1] : vector<16x16xf32> to vector<16xf32>
    %cst_76 = arith.constant 0xFF800000 : f32
    %221 = vector.broadcast %cst_76 : f32 to vector<16xf32>
    %222 = arith.maximumf %221, %220 : vector<16xf32>
    %223 = vector.shape_cast %222 : vector<16xf32> to vector<16x1xf32>
    %224 = vector.broadcast %223 : vector<16x1xf32> to vector<16x16xf32>
    %225 = arith.subf %219, %224 : vector<16x16xf32>
    %226 = math.exp %225 : vector<16x16xf32>
    %cst_77 = arith.constant dense<0.000000e+00> : vector<16xf32>
    %227 = vector.multi_reduction <add>, %226, %cst_77 [1] : vector<16x16xf32> to vector<16xf32>
    %228 = vector.shape_cast %227 : vector<16xf32> to vector<16x1xf32>
    %229 = vector.broadcast %228 : vector<16x1xf32> to vector<16x16xf32>
    %230 = arith.divf %226, %229 : vector<16x16xf32>
    %231 = arith.truncf %230 : vector<16x16xf32> to vector<16x16xbf16>
    %232 = vector.extract_strided_slice %152 {offsets = [0, 16], sizes = [16, 8], strides = [1, 1]} : vector<16x32xf32> to vector<16x8xf32>
    %233 = arith.truncf %232 : vector<16x8xf32> to vector<16x8xbf16>
    %cst_78 = arith.constant dense<0.000000e+00> : vector<16x8xf32>
    %234 = tpu.matmul %231, %233, %cst_78 {dimension_numbers = #tpu.dot_dimension_numbers<[1], [0], [0], [1], [0, 0, 1, 1], [], []>} : vector<16x16xbf16>, vector<16x8xbf16>, vector<16x8xf32> -> vector<16x8xf32>
    %235 = arith.truncf %234 : vector<16x8xf32> to vector<16x8xbf16>
    %236 = vector.extract_strided_slice %13 {offsets = [16, 0], sizes = [8, 32], strides = [1, 1]} : vector<32x32xbf16> to vector<8x32xbf16>
    %cst_79 = arith.constant dense<0.000000e+00> : vector<16x32xf32>
    %237 = tpu.matmul %235, %236, %cst_79 {dimension_numbers = #tpu.dot_dimension_numbers<[1], [0], [0], [1], [0, 0, 1, 1], [], []>} : vector<16x8xbf16>, vector<8x32xbf16>, vector<16x32xf32> -> vector<16x32xf32>
    %238 = arith.addf %210, %237 : vector<16x32xf32>
    %239 = vector.extract_strided_slice %150 {offsets = [0, 24], sizes = [16, 8], strides = [1, 1]} : vector<16x32xf32> to vector<16x8xf32>
    %240 = arith.truncf %239 : vector<16x8xf32> to vector<16x8xbf16>
    %241 = vector.extract_strided_slice %151 {offsets = [0, 24], sizes = [16, 8], strides = [1, 1]} : vector<16x32xf32> to vector<16x8xf32>
    %242 = arith.truncf %241 : vector<16x8xf32> to vector<16x8xbf16>
    %cst_80 = arith.constant dense<0.000000e+00> : vector<16x16xf32>
    %243 = tpu.matmul %240, %242, %cst_80 {dimension_numbers = #tpu.dot_dimension_numbers<[1], [1], [0], [0], [0, 0, 1, 0], [], []>} : vector<16x8xbf16>, vector<16x8xbf16>, vector<16x16xf32> -> vector<16x16xf32>
    %cst_81 = arith.constant 0.353553385 : f32
    %244 = vector.broadcast %cst_81 : f32 to vector<16x16xf32>
    %245 = arith.mulf %243, %244 : vector<16x16xf32>
    %246 = vector.broadcast %153 : vector<1x16xf32> to vector<16x16xf32>
    %247 = arith.addf %245, %246 : vector<16x16xf32>
    %cst_82 = arith.constant dense<0xFF800000> : vector<16xf32>
    %248 = vector.multi_reduction <maximumf>, %247, %cst_82 [1] : vector<16x16xf32> to vector<16xf32>
    %cst_83 = arith.constant 0xFF800000 : f32
    %249 = vector.broadcast %cst_83 : f32 to vector<16xf32>
    %250 = arith.maximumf %249, %248 : vector<16xf32>
    %251 = vector.shape_cast %250 : vector<16xf32> to vector<16x1xf32>
    %252 = vector.broadcast %251 : vector<16x1xf32> to vector<16x16xf32>
    %253 = arith.subf %247, %252 : vector<16x16xf32>
    %254 = math.exp %253 : vector<16x16xf32>
    %cst_84 = arith.constant dense<0.000000e+00> : vector<16xf32>
    %255 = vector.multi_reduction <add>, %254, %cst_84 [1] : vector<16x16xf32> to vector<16xf32>
    %256 = vector.shape_cast %255 : vector<16xf32> to vector<16x1xf32>
    %257 = vector.broadcast %256 : vector<16x1xf32> to vector<16x16xf32>
    %258 = arith.divf %254, %257 : vector<16x16xf32>
    %259 = arith.truncf %258 : vector<16x16xf32> to vector<16x16xbf16>
    %260 = vector.extract_strided_slice %152 {offsets = [0, 24], sizes = [16, 8], strides = [1, 1]} : vector<16x32xf32> to vector<16x8xf32>
    %261 = arith.truncf %260 : vector<16x8xf32> to vector<16x8xbf16>
    %cst_85 = arith.constant dense<0.000000e+00> : vector<16x8xf32>
    %262 = tpu.matmul %259, %261, %cst_85 {dimension_numbers = #tpu.dot_dimension_numbers<[1], [0], [0], [1], [0, 0, 1, 1], [], []>} : vector<16x16xbf16>, vector<16x8xbf16>, vector<16x8xf32> -> vector<16x8xf32>
    %263 = arith.truncf %262 : vector<16x8xf32> to vector<16x8xbf16>
    %264 = vector.extract_strided_slice %13 {offsets = [24, 0], sizes = [8, 32], strides = [1, 1]} : vector<32x32xbf16> to vector<8x32xbf16>
    %cst_86 = arith.constant dense<0.000000e+00> : vector<16x32xf32>
    %265 = tpu.matmul %263, %264, %cst_86 {dimension_numbers = #tpu.dot_dimension_numbers<[1], [0], [0], [1], [0, 0, 1, 1], [], []>} : vector<16x8xbf16>, vector<8x32xbf16>, vector<16x32xf32> -> vector<16x32xf32>
    %266 = arith.addf %238, %265 : vector<16x32xf32>
    %267 = tpu.concatenate %149, %266 in 0 : vector<16x32xf32>, vector<16x32xf32> -> vector<32x32xf32>
    %268 = vector.broadcast %21 : vector<1x32xf32> to vector<32x32xf32>
    %269 = arith.addf %267, %268 : vector<32x32xf32>
    %270 = arith.addf %0, %269 : vector<32x32xf32>
    %c0_87 = arith.constant 0 : index
    %c0_88 = arith.constant 0 : index
    %c0_89 = arith.constant 0 : index
    %271 = vector.load %arg10[%c0_87, %c0_88, %c0_89] : memref<2x1x32xf32, #tpu.memory_space<vmem>>, vector<1x1x32xf32>
    %272 = vector.shape_cast %271 : vector<1x1x32xf32> to vector<1x32xf32>
    %c0_90 = arith.constant 0 : index
    %c0_91 = arith.constant 0 : index
    %c0_92 = arith.constant 0 : index
    %273 = vector.load %arg11[%c0_90, %c0_91, %c0_92] : memref<2x1x32xf32, #tpu.memory_space<vmem>>, vector<1x1x32xf32>
    %274 = vector.shape_cast %273 : vector<1x1x32xf32> to vector<1x32xf32>
    %cst_93 = arith.constant dense<0.000000e+00> : vector<32xf32>
    %275 = vector.multi_reduction <add>, %270, %cst_93 [1] : vector<32x32xf32> to vector<32xf32>
    %276 = vector.shape_cast %275 : vector<32xf32> to vector<32x1xf32>
    %cst_94 = arith.constant 3.200000e+01 : f32
    %277 = vector.broadcast %cst_94 : f32 to vector<32x1xf32>
    %278 = arith.divf %276, %277 : vector<32x1xf32>
    %279 = vector.broadcast %278 : vector<32x1xf32> to vector<32x32xf32>
    %280 = arith.subf %270, %279 : vector<32x32xf32>
    %281 = arith.mulf %280, %280 : vector<32x32xf32>
    %cst_95 = arith.constant dense<0.000000e+00> : vector<32xf32>
    %282 = vector.multi_reduction <add>, %281, %cst_95 [1] : vector<32x32xf32> to vector<32xf32>
    %283 = vector.shape_cast %282 : vector<32xf32> to vector<32x1xf32>
    %cst_96 = arith.constant 3.200000e+01 : f32
    %284 = vector.broadcast %cst_96 : f32 to vector<32x1xf32>
    %285 = arith.divf %283, %284 : vector<32x1xf32>
    %286 = vector.broadcast %278 : vector<32x1xf32> to vector<32x32xf32>
    %287 = arith.subf %270, %286 : vector<32x32xf32>
    %cst_97 = arith.constant 9.99999974E-6 : f32
    %288 = vector.broadcast %cst_97 : f32 to vector<32x1xf32>
    %289 = arith.addf %285, %288 : vector<32x1xf32>
    %290 = math.rsqrt %289 : vector<32x1xf32>
    %291 = vector.broadcast %290 : vector<32x1xf32> to vector<32x32xf32>
    %292 = arith.mulf %287, %291 : vector<32x32xf32>
    %293 = vector.broadcast %272 : vector<1x32xf32> to vector<32x32xf32>
    %294 = arith.mulf %292, %293 : vector<32x32xf32>
    %295 = vector.broadcast %274 : vector<1x32xf32> to vector<32x32xf32>
    %296 = arith.addf %294, %295 : vector<32x32xf32>
    %297 = arith.truncf %296 : vector<32x32xf32> to vector<32x32xbf16>
    %c0_98 = arith.constant 0 : index
    %c0_99 = arith.constant 0 : index
    %c0_100 = arith.constant 0 : index
    %298 = vector.load %arg12[%c0_98, %c0_99, %c0_100] : memref<2x32x64xf32, #tpu.memory_space<vmem>>, vector<1x32x64xf32>
    %299 = vector.shape_cast %298 : vector<1x32x64xf32> to vector<32x64xf32>
    %300 = arith.truncf %299 : vector<32x64xf32> to vector<32x64xbf16>
    %cst_101 = arith.constant dense<0.000000e+00> : vector<32x64xf32>
    %301 = tpu.matmul %297, %300, %cst_101 {dimension_numbers = #tpu.dot_dimension_numbers<[1], [0], [0], [1], [0, 0, 1, 1], [], []>} : vector<32x32xbf16>, vector<32x64xbf16>, vector<32x64xf32> -> vector<32x64xf32>
    %c0_102 = arith.constant 0 : index
    %c0_103 = arith.constant 0 : index
    %c0_104 = arith.constant 0 : index
    %302 = vector.load %arg13[%c0_102, %c0_103, %c0_104] : memref<2x1x64xf32, #tpu.memory_space<vmem>>, vector<1x1x64xf32>
    %303 = vector.shape_cast %302 : vector<1x1x64xf32> to vector<1x64xf32>
    %304 = vector.broadcast %303 : vector<1x64xf32> to vector<32x64xf32>
    %305 = arith.addf %301, %304 : vector<32x64xf32>
    %cst_105 = arith.constant 0.000000e+00 : f32
    %306 = vector.broadcast %cst_105 : f32 to vector<32x64xf32>
    %307 = arith.maximumf %305, %306 : vector<32x64xf32>
    %308 = arith.truncf %307 : vector<32x64xf32> to vector<32x64xbf16>
    %c0_106 = arith.constant 0 : index
    %c0_107 = arith.constant 0 : index
    %c0_108 = arith.constant 0 : index
    %309 = vector.load %arg14[%c0_106, %c0_107, %c0_108] : memref<2x64x32xf32, #tpu.memory_space<vmem>>, vector<1x64x32xf32>
    %310 = vector.shape_cast %309 : vector<1x64x32xf32> to vector<64x32xf32>
    %311 = arith.truncf %310 : vector<64x32xf32> to vector<64x32xbf16>
    %cst_109 = arith.constant dense<0.000000e+00> : vector<32x32xf32>
    %312 = tpu.matmul %308, %311, %cst_109 {dimension_numbers = #tpu.dot_dimension_numbers<[1], [0], [0], [1], [0, 0, 1, 1], [], []>} : vector<32x64xbf16>, vector<64x32xbf16>, vector<32x32xf32> -> vector<32x32xf32>
    %c0_110 = arith.constant 0 : index
    %c0_111 = arith.constant 0 : index
    %c0_112 = arith.constant 0 : index
    %313 = vector.load %arg15[%c0_110, %c0_111, %c0_112] : memref<2x1x32xf32, #tpu.memory_space<vmem>>, vector<1x1x32xf32>
    %314 = vector.shape_cast %313 : vector<1x1x32xf32> to vector<1x32xf32>
    %315 = vector.broadcast %314 : vector<1x32xf32> to vector<32x32xf32>
    %316 = arith.addf %312, %315 : vector<32x32xf32>
    %317 = arith.addf %296, %316 : vector<32x32xf32>
    %c0_113 = arith.constant 0 : index
    %c0_114 = arith.constant 0 : index
    %c0_115 = arith.constant 0 : index
    %318 = vector.load %arg16[%c0_113, %c0_114, %c0_115] : memref<2x1x32xf32, #tpu.memory_space<vmem>>, vector<1x1x32xf32>
    %319 = vector.shape_cast %318 : vector<1x1x32xf32> to vector<1x32xf32>
    %c0_116 = arith.constant 0 : index
    %c0_117 = arith.constant 0 : index
    %c0_118 = arith.constant 0 : index
    %320 = vector.load %arg17[%c0_116, %c0_117, %c0_118] : memref<2x1x32xf32, #tpu.memory_space<vmem>>, vector<1x1x32xf32>
    %321 = vector.shape_cast %320 : vector<1x1x32xf32> to vector<1x32xf32>
    %cst_119 = arith.constant dense<0.000000e+00> : vector<32xf32>
    %322 = vector.multi_reduction <add>, %317, %cst_119 [1] : vector<32x32xf32> to vector<32xf32>
    %323 = vector.shape_cast %322 : vector<32xf32> to vector<32x1xf32>
    %cst_120 = arith.constant 3.200000e+01 : f32
    %324 = vector.broadcast %cst_120 : f32 to vector<32x1xf32>
    %325 = arith.divf %323, %324 : vector<32x1xf32>
    %326 = vector.broadcast %325 : vector<32x1xf32> to vector<32x32xf32>
    %327 = arith.subf %317, %326 : vector<32x32xf32>
    %328 = arith.mulf %327, %327 : vector<32x32xf32>
    %cst_121 = arith.constant dense<0.000000e+00> : vector<32xf32>
    %329 = vector.multi_reduction <add>, %328, %cst_121 [1] : vector<32x32xf32> to vector<32xf32>
    %330 = vector.shape_cast %329 : vector<32xf32> to vector<32x1xf32>
    %cst_122 = arith.constant 3.200000e+01 : f32
    %331 = vector.broadcast %cst_122 : f32 to vector<32x1xf32>
    %332 = arith.divf %330, %331 : vector<32x1xf32>
    %333 = vector.broadcast %325 : vector<32x1xf32> to vector<32x32xf32>
    %334 = arith.subf %317, %333 : vector<32x32xf32>
    %cst_123 = arith.constant 9.99999974E-6 : f32
    %335 = vector.broadcast %cst_123 : f32 to vector<32x1xf32>
    %336 = arith.addf %332, %335 : vector<32x1xf32>
    %337 = math.rsqrt %336 : vector<32x1xf32>
    %338 = vector.broadcast %337 : vector<32x1xf32> to vector<32x32xf32>
    %339 = arith.mulf %334, %338 : vector<32x32xf32>
    %340 = vector.broadcast %319 : vector<1x32xf32> to vector<32x32xf32>
    %341 = arith.mulf %339, %340 : vector<32x32xf32>
    %342 = vector.broadcast %321 : vector<1x32xf32> to vector<32x32xf32>
    %343 = arith.addf %341, %342 : vector<32x32xf32>
    %c1 = arith.constant 1 : index
    %c0_124 = arith.constant 0 : index
    %c0_125 = arith.constant 0 : index
    %344 = vector.load %arg2[%c1, %c0_124, %c0_125] : memref<2x32x32xf32, #tpu.memory_space<vmem>>, vector<1x32x32xf32>
    %345 = vector.shape_cast %344 : vector<1x32x32xf32> to vector<32x32xf32>
    %346 = arith.truncf %345 : vector<32x32xf32> to vector<32x32xbf16>
    %c1_126 = arith.constant 1 : index
    %c0_127 = arith.constant 0 : index
    %c0_128 = arith.constant 0 : index
    %347 = vector.load %arg4[%c1_126, %c0_127, %c0_128] : memref<2x32x32xf32, #tpu.memory_space<vmem>>, vector<1x32x32xf32>
    %348 = vector.shape_cast %347 : vector<1x32x32xf32> to vector<32x32xf32>
    %349 = arith.truncf %348 : vector<32x32xf32> to vector<32x32xbf16>
    %c1_129 = arith.constant 1 : index
    %c0_130 = arith.constant 0 : index
    %c0_131 = arith.constant 0 : index
    %350 = vector.load %arg6[%c1_129, %c0_130, %c0_131] : memref<2x32x32xf32, #tpu.memory_space<vmem>>, vector<1x32x32xf32>
    %351 = vector.shape_cast %350 : vector<1x32x32xf32> to vector<32x32xf32>
    %352 = arith.truncf %351 : vector<32x32xf32> to vector<32x32xbf16>
    %c1_132 = arith.constant 1 : index
    %c0_133 = arith.constant 0 : index
    %c0_134 = arith.constant 0 : index
    %353 = vector.load %arg8[%c1_132, %c0_133, %c0_134] : memref<2x32x32xf32, #tpu.memory_space<vmem>>, vector<1x32x32xf32>
    %354 = vector.shape_cast %353 : vector<1x32x32xf32> to vector<32x32xf32>
    %355 = arith.truncf %354 : vector<32x32xf32> to vector<32x32xbf16>
    %c1_135 = arith.constant 1 : index
    %c0_136 = arith.constant 0 : index
    %c0_137 = arith.constant 0 : index
    %356 = vector.load %arg3[%c1_135, %c0_136, %c0_137] : memref<2x1x32xf32, #tpu.memory_space<vmem>>, vector<1x1x32xf32>
    %357 = vector.shape_cast %356 : vector<1x1x32xf32> to vector<1x32xf32>
    %c1_138 = arith.constant 1 : index
    %c0_139 = arith.constant 0 : index
    %c0_140 = arith.constant 0 : index
    %358 = vector.load %arg5[%c1_138, %c0_139, %c0_140] : memref<2x1x32xf32, #tpu.memory_space<vmem>>, vector<1x1x32xf32>
    %359 = vector.shape_cast %358 : vector<1x1x32xf32> to vector<1x32xf32>
    %c1_141 = arith.constant 1 : index
    %c0_142 = arith.constant 0 : index
    %c0_143 = arith.constant 0 : index
    %360 = vector.load %arg7[%c1_141, %c0_142, %c0_143] : memref<2x1x32xf32, #tpu.memory_space<vmem>>, vector<1x1x32xf32>
    %361 = vector.shape_cast %360 : vector<1x1x32xf32> to vector<1x32xf32>
    %c1_144 = arith.constant 1 : index
    %c0_145 = arith.constant 0 : index
    %c0_146 = arith.constant 0 : index
    %362 = vector.load %arg9[%c1_144, %c0_145, %c0_146] : memref<2x1x32xf32, #tpu.memory_space<vmem>>, vector<1x1x32xf32>
    %363 = vector.shape_cast %362 : vector<1x1x32xf32> to vector<1x32xf32>
    %364 = vector.extract_strided_slice %343 {offsets = [0, 0], sizes = [1, 32], strides = [1, 1]} : vector<32x32xf32> to vector<1x32xf32>
    %365 = vector.extract_strided_slice %343 {offsets = [16, 0], sizes = [1, 32], strides = [1, 1]} : vector<32x32xf32> to vector<1x32xf32>
    %366 = tpu.concatenate %364, %365 in 0 : vector<1x32xf32>, vector<1x32xf32> -> vector<2x32xf32>
    %367 = arith.truncf %343 : vector<32x32xf32> to vector<32x32xbf16>
    %368 = arith.truncf %366 : vector<2x32xf32> to vector<2x32xbf16>
    %cst_147 = arith.constant dense<0.000000e+00> : vector<2x32xf32>
    %369 = tpu.matmul %368, %346, %cst_147 {dimension_numbers = #tpu.dot_dimension_numbers<[1], [0], [0], [1], [0, 0, 1, 1], [], []>} : vector<2x32xbf16>, vector<32x32xbf16>, vector<2x32xf32> -> vector<2x32xf32>
    %370 = vector.broadcast %357 : vector<1x32xf32> to vector<2x32xf32>
    %371 = arith.addf %369, %370 : vector<2x32xf32>
    %cst_148 = arith.constant dense<0.000000e+00> : vector<32x32xf32>
    %372 = tpu.matmul %367, %349, %cst_148 {dimension_numbers = #tpu.dot_dimension_numbers<[1], [0], [0], [1], [0, 0, 1, 1], [], []>} : vector<32x32xbf16>, vector<32x32xbf16>, vector<32x32xf32> -> vector<32x32xf32>
    %373 = vector.broadcast %359 : vector<1x32xf32> to vector<32x32xf32>
    %374 = arith.addf %372, %373 : vector<32x32xf32>
    %cst_149 = arith.constant dense<0.000000e+00> : vector<32x32xf32>
    %375 = tpu.matmul %367, %352, %cst_149 {dimension_numbers = #tpu.dot_dimension_numbers<[1], [0], [0], [1], [0, 0, 1, 1], [], []>} : vector<32x32xbf16>, vector<32x32xbf16>, vector<32x32xf32> -> vector<32x32xf32>
    %376 = vector.broadcast %361 : vector<1x32xf32> to vector<32x32xf32>
    %377 = arith.addf %375, %376 : vector<32x32xf32>
    %378 = vector.extract_strided_slice %371 {offsets = [0, 0], sizes = [1, 32], strides = [1, 1]} : vector<2x32xf32> to vector<1x32xf32>
    %379 = vector.extract_strided_slice %374 {offsets = [0, 0], sizes = [16, 32], strides = [1, 1]} : vector<32x32xf32> to vector<16x32xf32>
    %380 = vector.extract_strided_slice %377 {offsets = [0, 0], sizes = [16, 32], strides = [1, 1]} : vector<32x32xf32> to vector<16x32xf32>
    %381 = vector.extract_strided_slice %1 {offsets = [0, 0], sizes = [1, 16], strides = [1, 1]} : vector<2x16xf32> to vector<1x16xf32>
    %cst_150 = arith.constant 0.000000e+00 : f32
    %382 = vector.broadcast %cst_150 : f32 to vector<1x32xf32>
    %383 = vector.extract_strided_slice %378 {offsets = [0, 0], sizes = [1, 8], strides = [1, 1]} : vector<1x32xf32> to vector<1x8xf32>
    %384 = arith.truncf %383 : vector<1x8xf32> to vector<1x8xbf16>
    %385 = vector.extract_strided_slice %379 {offsets = [0, 0], sizes = [16, 8], strides = [1, 1]} : vector<16x32xf32> to vector<16x8xf32>
    %386 = arith.truncf %385 : vector<16x8xf32> to vector<16x8xbf16>
    %cst_151 = arith.constant dense<0.000000e+00> : vector<1x16xf32>
    %387 = tpu.matmul %384, %386, %cst_151 {dimension_numbers = #tpu.dot_dimension_numbers<[1], [1], [0], [0], [0, 0, 1, 0], [], []>} : vector<1x8xbf16>, vector<16x8xbf16>, vector<1x16xf32> -> vector<1x16xf32>
    %cst_152 = arith.constant 0.353553385 : f32
    %388 = vector.broadcast %cst_152 : f32 to vector<1x16xf32>
    %389 = arith.mulf %387, %388 : vector<1x16xf32>
    %390 = arith.addf %389, %381 : vector<1x16xf32>
    %cst_153 = arith.constant dense<0xFF800000> : vector<1xf32>
    %391 = vector.multi_reduction <maximumf>, %390, %cst_153 [1] : vector<1x16xf32> to vector<1xf32>
    %cst_154 = arith.constant 0xFF800000 : f32
    %392 = vector.broadcast %cst_154 : f32 to vector<1xf32>
    %393 = arith.maximumf %392, %391 : vector<1xf32>
    %394 = vector.shape_cast %393 : vector<1xf32> to vector<1x1xf32>
    %395 = vector.broadcast %394 : vector<1x1xf32> to vector<1x16xf32>
    %396 = arith.subf %390, %395 : vector<1x16xf32>
    %397 = math.exp %396 : vector<1x16xf32>
    %cst_155 = arith.constant dense<0.000000e+00> : vector<1xf32>
    %398 = vector.multi_reduction <add>, %397, %cst_155 [1] : vector<1x16xf32> to vector<1xf32>
    %399 = vector.shape_cast %398 : vector<1xf32> to vector<1x1xf32>
    %400 = vector.broadcast %399 : vector<1x1xf32> to vector<1x16xf32>
    %401 = arith.divf %397, %400 : vector<1x16xf32>
    %402 = arith.truncf %401 : vector<1x16xf32> to vector<1x16xbf16>
    %403 = vector.extract_strided_slice %380 {offsets = [0, 0], sizes = [16, 8], strides = [1, 1]} : vector<16x32xf32> to vector<16x8xf32>
    %404 = arith.truncf %403 : vector<16x8xf32> to vector<16x8xbf16>
    %cst_156 = arith.constant dense<0.000000e+00> : vector<1x8xf32>
    %405 = tpu.matmul %402, %404, %cst_156 {dimension_numbers = #tpu.dot_dimension_numbers<[1], [0], [0], [1], [0, 0, 1, 1], [], []>} : vector<1x16xbf16>, vector<16x8xbf16>, vector<1x8xf32> -> vector<1x8xf32>
    %406 = arith.truncf %405 : vector<1x8xf32> to vector<1x8xbf16>
    %407 = vector.extract_strided_slice %355 {offsets = [0, 0], sizes = [8, 32], strides = [1, 1]} : vector<32x32xbf16> to vector<8x32xbf16>
    %cst_157 = arith.constant dense<0.000000e+00> : vector<1x32xf32>
    %408 = tpu.matmul %406, %407, %cst_157 {dimension_numbers = #tpu.dot_dimension_numbers<[1], [0], [0], [1], [0, 0, 1, 1], [], []>} : vector<1x8xbf16>, vector<8x32xbf16>, vector<1x32xf32> -> vector<1x32xf32>
    %409 = arith.addf %382, %408 : vector<1x32xf32>
    %410 = vector.extract_strided_slice %378 {offsets = [0, 8], sizes = [1, 8], strides = [1, 1]} : vector<1x32xf32> to vector<1x8xf32>
    %411 = arith.truncf %410 : vector<1x8xf32> to vector<1x8xbf16>
    %412 = vector.extract_strided_slice %379 {offsets = [0, 8], sizes = [16, 8], strides = [1, 1]} : vector<16x32xf32> to vector<16x8xf32>
    %413 = arith.truncf %412 : vector<16x8xf32> to vector<16x8xbf16>
    %cst_158 = arith.constant dense<0.000000e+00> : vector<1x16xf32>
    %414 = tpu.matmul %411, %413, %cst_158 {dimension_numbers = #tpu.dot_dimension_numbers<[1], [1], [0], [0], [0, 0, 1, 0], [], []>} : vector<1x8xbf16>, vector<16x8xbf16>, vector<1x16xf32> -> vector<1x16xf32>
    %cst_159 = arith.constant 0.353553385 : f32
    %415 = vector.broadcast %cst_159 : f32 to vector<1x16xf32>
    %416 = arith.mulf %414, %415 : vector<1x16xf32>
    %417 = arith.addf %416, %381 : vector<1x16xf32>
    %cst_160 = arith.constant dense<0xFF800000> : vector<1xf32>
    %418 = vector.multi_reduction <maximumf>, %417, %cst_160 [1] : vector<1x16xf32> to vector<1xf32>
    %cst_161 = arith.constant 0xFF800000 : f32
    %419 = vector.broadcast %cst_161 : f32 to vector<1xf32>
    %420 = arith.maximumf %419, %418 : vector<1xf32>
    %421 = vector.shape_cast %420 : vector<1xf32> to vector<1x1xf32>
    %422 = vector.broadcast %421 : vector<1x1xf32> to vector<1x16xf32>
    %423 = arith.subf %417, %422 : vector<1x16xf32>
    %424 = math.exp %423 : vector<1x16xf32>
    %cst_162 = arith.constant dense<0.000000e+00> : vector<1xf32>
    %425 = vector.multi_reduction <add>, %424, %cst_162 [1] : vector<1x16xf32> to vector<1xf32>
    %426 = vector.shape_cast %425 : vector<1xf32> to vector<1x1xf32>
    %427 = vector.broadcast %426 : vector<1x1xf32> to vector<1x16xf32>
    %428 = arith.divf %424, %427 : vector<1x16xf32>
    %429 = arith.truncf %428 : vector<1x16xf32> to vector<1x16xbf16>
    %430 = vector.extract_strided_slice %380 {offsets = [0, 8], sizes = [16, 8], strides = [1, 1]} : vector<16x32xf32> to vector<16x8xf32>
    %431 = arith.truncf %430 : vector<16x8xf32> to vector<16x8xbf16>
    %cst_163 = arith.constant dense<0.000000e+00> : vector<1x8xf32>
    %432 = tpu.matmul %429, %431, %cst_163 {dimension_numbers = #tpu.dot_dimension_numbers<[1], [0], [0], [1], [0, 0, 1, 1], [], []>} : vector<1x16xbf16>, vector<16x8xbf16>, vector<1x8xf32> -> vector<1x8xf32>
    %433 = arith.truncf %432 : vector<1x8xf32> to vector<1x8xbf16>
    %434 = vector.extract_strided_slice %355 {offsets = [8, 0], sizes = [8, 32], strides = [1, 1]} : vector<32x32xbf16> to vector<8x32xbf16>
    %cst_164 = arith.constant dense<0.000000e+00> : vector<1x32xf32>
    %435 = tpu.matmul %433, %434, %cst_164 {dimension_numbers = #tpu.dot_dimension_numbers<[1], [0], [0], [1], [0, 0, 1, 1], [], []>} : vector<1x8xbf16>, vector<8x32xbf16>, vector<1x32xf32> -> vector<1x32xf32>
    %436 = arith.addf %409, %435 : vector<1x32xf32>
    %437 = vector.extract_strided_slice %378 {offsets = [0, 16], sizes = [1, 8], strides = [1, 1]} : vector<1x32xf32> to vector<1x8xf32>
    %438 = arith.truncf %437 : vector<1x8xf32> to vector<1x8xbf16>
    %439 = vector.extract_strided_slice %379 {offsets = [0, 16], sizes = [16, 8], strides = [1, 1]} : vector<16x32xf32> to vector<16x8xf32>
    %440 = arith.truncf %439 : vector<16x8xf32> to vector<16x8xbf16>
    %cst_165 = arith.constant dense<0.000000e+00> : vector<1x16xf32>
    %441 = tpu.matmul %438, %440, %cst_165 {dimension_numbers = #tpu.dot_dimension_numbers<[1], [1], [0], [0], [0, 0, 1, 0], [], []>} : vector<1x8xbf16>, vector<16x8xbf16>, vector<1x16xf32> -> vector<1x16xf32>
    %cst_166 = arith.constant 0.353553385 : f32
    %442 = vector.broadcast %cst_166 : f32 to vector<1x16xf32>
    %443 = arith.mulf %441, %442 : vector<1x16xf32>
    %444 = arith.addf %443, %381 : vector<1x16xf32>
    %cst_167 = arith.constant dense<0xFF800000> : vector<1xf32>
    %445 = vector.multi_reduction <maximumf>, %444, %cst_167 [1] : vector<1x16xf32> to vector<1xf32>
    %cst_168 = arith.constant 0xFF800000 : f32
    %446 = vector.broadcast %cst_168 : f32 to vector<1xf32>
    %447 = arith.maximumf %446, %445 : vector<1xf32>
    %448 = vector.shape_cast %447 : vector<1xf32> to vector<1x1xf32>
    %449 = vector.broadcast %448 : vector<1x1xf32> to vector<1x16xf32>
    %450 = arith.subf %444, %449 : vector<1x16xf32>
    %451 = math.exp %450 : vector<1x16xf32>
    %cst_169 = arith.constant dense<0.000000e+00> : vector<1xf32>
    %452 = vector.multi_reduction <add>, %451, %cst_169 [1] : vector<1x16xf32> to vector<1xf32>
    %453 = vector.shape_cast %452 : vector<1xf32> to vector<1x1xf32>
    %454 = vector.broadcast %453 : vector<1x1xf32> to vector<1x16xf32>
    %455 = arith.divf %451, %454 : vector<1x16xf32>
    %456 = arith.truncf %455 : vector<1x16xf32> to vector<1x16xbf16>
    %457 = vector.extract_strided_slice %380 {offsets = [0, 16], sizes = [16, 8], strides = [1, 1]} : vector<16x32xf32> to vector<16x8xf32>
    %458 = arith.truncf %457 : vector<16x8xf32> to vector<16x8xbf16>
    %cst_170 = arith.constant dense<0.000000e+00> : vector<1x8xf32>
    %459 = tpu.matmul %456, %458, %cst_170 {dimension_numbers = #tpu.dot_dimension_numbers<[1], [0], [0], [1], [0, 0, 1, 1], [], []>} : vector<1x16xbf16>, vector<16x8xbf16>, vector<1x8xf32> -> vector<1x8xf32>
    %460 = arith.truncf %459 : vector<1x8xf32> to vector<1x8xbf16>
    %461 = vector.extract_strided_slice %355 {offsets = [16, 0], sizes = [8, 32], strides = [1, 1]} : vector<32x32xbf16> to vector<8x32xbf16>
    %cst_171 = arith.constant dense<0.000000e+00> : vector<1x32xf32>
    %462 = tpu.matmul %460, %461, %cst_171 {dimension_numbers = #tpu.dot_dimension_numbers<[1], [0], [0], [1], [0, 0, 1, 1], [], []>} : vector<1x8xbf16>, vector<8x32xbf16>, vector<1x32xf32> -> vector<1x32xf32>
    %463 = arith.addf %436, %462 : vector<1x32xf32>
    %464 = vector.extract_strided_slice %378 {offsets = [0, 24], sizes = [1, 8], strides = [1, 1]} : vector<1x32xf32> to vector<1x8xf32>
    %465 = arith.truncf %464 : vector<1x8xf32> to vector<1x8xbf16>
    %466 = vector.extract_strided_slice %379 {offsets = [0, 24], sizes = [16, 8], strides = [1, 1]} : vector<16x32xf32> to vector<16x8xf32>
    %467 = arith.truncf %466 : vector<16x8xf32> to vector<16x8xbf16>
    %cst_172 = arith.constant dense<0.000000e+00> : vector<1x16xf32>
    %468 = tpu.matmul %465, %467, %cst_172 {dimension_numbers = #tpu.dot_dimension_numbers<[1], [1], [0], [0], [0, 0, 1, 0], [], []>} : vector<1x8xbf16>, vector<16x8xbf16>, vector<1x16xf32> -> vector<1x16xf32>
    %cst_173 = arith.constant 0.353553385 : f32
    %469 = vector.broadcast %cst_173 : f32 to vector<1x16xf32>
    %470 = arith.mulf %468, %469 : vector<1x16xf32>
    %471 = arith.addf %470, %381 : vector<1x16xf32>
    %cst_174 = arith.constant dense<0xFF800000> : vector<1xf32>
    %472 = vector.multi_reduction <maximumf>, %471, %cst_174 [1] : vector<1x16xf32> to vector<1xf32>
    %cst_175 = arith.constant 0xFF800000 : f32
    %473 = vector.broadcast %cst_175 : f32 to vector<1xf32>
    %474 = arith.maximumf %473, %472 : vector<1xf32>
    %475 = vector.shape_cast %474 : vector<1xf32> to vector<1x1xf32>
    %476 = vector.broadcast %475 : vector<1x1xf32> to vector<1x16xf32>
    %477 = arith.subf %471, %476 : vector<1x16xf32>
    %478 = math.exp %477 : vector<1x16xf32>
    %cst_176 = arith.constant dense<0.000000e+00> : vector<1xf32>
    %479 = vector.multi_reduction <add>, %478, %cst_176 [1] : vector<1x16xf32> to vector<1xf32>
    %480 = vector.shape_cast %479 : vector<1xf32> to vector<1x1xf32>
    %481 = vector.broadcast %480 : vector<1x1xf32> to vector<1x16xf32>
    %482 = arith.divf %478, %481 : vector<1x16xf32>
    %483 = arith.truncf %482 : vector<1x16xf32> to vector<1x16xbf16>
    %484 = vector.extract_strided_slice %380 {offsets = [0, 24], sizes = [16, 8], strides = [1, 1]} : vector<16x32xf32> to vector<16x8xf32>
    %485 = arith.truncf %484 : vector<16x8xf32> to vector<16x8xbf16>
    %cst_177 = arith.constant dense<0.000000e+00> : vector<1x8xf32>
    %486 = tpu.matmul %483, %485, %cst_177 {dimension_numbers = #tpu.dot_dimension_numbers<[1], [0], [0], [1], [0, 0, 1, 1], [], []>} : vector<1x16xbf16>, vector<16x8xbf16>, vector<1x8xf32> -> vector<1x8xf32>
    %487 = arith.truncf %486 : vector<1x8xf32> to vector<1x8xbf16>
    %488 = vector.extract_strided_slice %355 {offsets = [24, 0], sizes = [8, 32], strides = [1, 1]} : vector<32x32xbf16> to vector<8x32xbf16>
    %cst_178 = arith.constant dense<0.000000e+00> : vector<1x32xf32>
    %489 = tpu.matmul %487, %488, %cst_178 {dimension_numbers = #tpu.dot_dimension_numbers<[1], [0], [0], [1], [0, 0, 1, 1], [], []>} : vector<1x8xbf16>, vector<8x32xbf16>, vector<1x32xf32> -> vector<1x32xf32>
    %490 = arith.addf %463, %489 : vector<1x32xf32>
    %491 = vector.extract_strided_slice %371 {offsets = [1, 0], sizes = [1, 32], strides = [1, 1]} : vector<2x32xf32> to vector<1x32xf32>
    %492 = vector.extract_strided_slice %374 {offsets = [16, 0], sizes = [16, 32], strides = [1, 1]} : vector<32x32xf32> to vector<16x32xf32>
    %493 = vector.extract_strided_slice %377 {offsets = [16, 0], sizes = [16, 32], strides = [1, 1]} : vector<32x32xf32> to vector<16x32xf32>
    %494 = vector.extract_strided_slice %1 {offsets = [1, 0], sizes = [1, 16], strides = [1, 1]} : vector<2x16xf32> to vector<1x16xf32>
    %cst_179 = arith.constant 0.000000e+00 : f32
    %495 = vector.broadcast %cst_179 : f32 to vector<1x32xf32>
    %496 = vector.extract_strided_slice %491 {offsets = [0, 0], sizes = [1, 8], strides = [1, 1]} : vector<1x32xf32> to vector<1x8xf32>
    %497 = arith.truncf %496 : vector<1x8xf32> to vector<1x8xbf16>
    %498 = vector.extract_strided_slice %492 {offsets = [0, 0], sizes = [16, 8], strides = [1, 1]} : vector<16x32xf32> to vector<16x8xf32>
    %499 = arith.truncf %498 : vector<16x8xf32> to vector<16x8xbf16>
    %cst_180 = arith.constant dense<0.000000e+00> : vector<1x16xf32>
    %500 = tpu.matmul %497, %499, %cst_180 {dimension_numbers = #tpu.dot_dimension_numbers<[1], [1], [0], [0], [0, 0, 1, 0], [], []>} : vector<1x8xbf16>, vector<16x8xbf16>, vector<1x16xf32> -> vector<1x16xf32>
    %cst_181 = arith.constant 0.353553385 : f32
    %501 = vector.broadcast %cst_181 : f32 to vector<1x16xf32>
    %502 = arith.mulf %500, %501 : vector<1x16xf32>
    %503 = arith.addf %502, %494 : vector<1x16xf32>
    %cst_182 = arith.constant dense<0xFF800000> : vector<1xf32>
    %504 = vector.multi_reduction <maximumf>, %503, %cst_182 [1] : vector<1x16xf32> to vector<1xf32>
    %cst_183 = arith.constant 0xFF800000 : f32
    %505 = vector.broadcast %cst_183 : f32 to vector<1xf32>
    %506 = arith.maximumf %505, %504 : vector<1xf32>
    %507 = vector.shape_cast %506 : vector<1xf32> to vector<1x1xf32>
    %508 = vector.broadcast %507 : vector<1x1xf32> to vector<1x16xf32>
    %509 = arith.subf %503, %508 : vector<1x16xf32>
    %510 = math.exp %509 : vector<1x16xf32>
    %cst_184 = arith.constant dense<0.000000e+00> : vector<1xf32>
    %511 = vector.multi_reduction <add>, %510, %cst_184 [1] : vector<1x16xf32> to vector<1xf32>
    %512 = vector.shape_cast %511 : vector<1xf32> to vector<1x1xf32>
    %513 = vector.broadcast %512 : vector<1x1xf32> to vector<1x16xf32>
    %514 = arith.divf %510, %513 : vector<1x16xf32>
    %515 = arith.truncf %514 : vector<1x16xf32> to vector<1x16xbf16>
    %516 = vector.extract_strided_slice %493 {offsets = [0, 0], sizes = [16, 8], strides = [1, 1]} : vector<16x32xf32> to vector<16x8xf32>
    %517 = arith.truncf %516 : vector<16x8xf32> to vector<16x8xbf16>
    %cst_185 = arith.constant dense<0.000000e+00> : vector<1x8xf32>
    %518 = tpu.matmul %515, %517, %cst_185 {dimension_numbers = #tpu.dot_dimension_numbers<[1], [0], [0], [1], [0, 0, 1, 1], [], []>} : vector<1x16xbf16>, vector<16x8xbf16>, vector<1x8xf32> -> vector<1x8xf32>
    %519 = arith.truncf %518 : vector<1x8xf32> to vector<1x8xbf16>
    %520 = vector.extract_strided_slice %355 {offsets = [0, 0], sizes = [8, 32], strides = [1, 1]} : vector<32x32xbf16> to vector<8x32xbf16>
    %cst_186 = arith.constant dense<0.000000e+00> : vector<1x32xf32>
    %521 = tpu.matmul %519, %520, %cst_186 {dimension_numbers = #tpu.dot_dimension_numbers<[1], [0], [0], [1], [0, 0, 1, 1], [], []>} : vector<1x8xbf16>, vector<8x32xbf16>, vector<1x32xf32> -> vector<1x32xf32>
    %522 = arith.addf %495, %521 : vector<1x32xf32>
    %523 = vector.extract_strided_slice %491 {offsets = [0, 8], sizes = [1, 8], strides = [1, 1]} : vector<1x32xf32> to vector<1x8xf32>
    %524 = arith.truncf %523 : vector<1x8xf32> to vector<1x8xbf16>
    %525 = vector.extract_strided_slice %492 {offsets = [0, 8], sizes = [16, 8], strides = [1, 1]} : vector<16x32xf32> to vector<16x8xf32>
    %526 = arith.truncf %525 : vector<16x8xf32> to vector<16x8xbf16>
    %cst_187 = arith.constant dense<0.000000e+00> : vector<1x16xf32>
    %527 = tpu.matmul %524, %526, %cst_187 {dimension_numbers = #tpu.dot_dimension_numbers<[1], [1], [0], [0], [0, 0, 1, 0], [], []>} : vector<1x8xbf16>, vector<16x8xbf16>, vector<1x16xf32> -> vector<1x16xf32>
    %cst_188 = arith.constant 0.353553385 : f32
    %528 = vector.broadcast %cst_188 : f32 to vector<1x16xf32>
    %529 = arith.mulf %527, %528 : vector<1x16xf32>
    %530 = arith.addf %529, %494 : vector<1x16xf32>
    %cst_189 = arith.constant dense<0xFF800000> : vector<1xf32>
    %531 = vector.multi_reduction <maximumf>, %530, %cst_189 [1] : vector<1x16xf32> to vector<1xf32>
    %cst_190 = arith.constant 0xFF800000 : f32
    %532 = vector.broadcast %cst_190 : f32 to vector<1xf32>
    %533 = arith.maximumf %532, %531 : vector<1xf32>
    %534 = vector.shape_cast %533 : vector<1xf32> to vector<1x1xf32>
    %535 = vector.broadcast %534 : vector<1x1xf32> to vector<1x16xf32>
    %536 = arith.subf %530, %535 : vector<1x16xf32>
    %537 = math.exp %536 : vector<1x16xf32>
    %cst_191 = arith.constant dense<0.000000e+00> : vector<1xf32>
    %538 = vector.multi_reduction <add>, %537, %cst_191 [1] : vector<1x16xf32> to vector<1xf32>
    %539 = vector.shape_cast %538 : vector<1xf32> to vector<1x1xf32>
    %540 = vector.broadcast %539 : vector<1x1xf32> to vector<1x16xf32>
    %541 = arith.divf %537, %540 : vector<1x16xf32>
    %542 = arith.truncf %541 : vector<1x16xf32> to vector<1x16xbf16>
    %543 = vector.extract_strided_slice %493 {offsets = [0, 8], sizes = [16, 8], strides = [1, 1]} : vector<16x32xf32> to vector<16x8xf32>
    %544 = arith.truncf %543 : vector<16x8xf32> to vector<16x8xbf16>
    %cst_192 = arith.constant dense<0.000000e+00> : vector<1x8xf32>
    %545 = tpu.matmul %542, %544, %cst_192 {dimension_numbers = #tpu.dot_dimension_numbers<[1], [0], [0], [1], [0, 0, 1, 1], [], []>} : vector<1x16xbf16>, vector<16x8xbf16>, vector<1x8xf32> -> vector<1x8xf32>
    %546 = arith.truncf %545 : vector<1x8xf32> to vector<1x8xbf16>
    %547 = vector.extract_strided_slice %355 {offsets = [8, 0], sizes = [8, 32], strides = [1, 1]} : vector<32x32xbf16> to vector<8x32xbf16>
    %cst_193 = arith.constant dense<0.000000e+00> : vector<1x32xf32>
    %548 = tpu.matmul %546, %547, %cst_193 {dimension_numbers = #tpu.dot_dimension_numbers<[1], [0], [0], [1], [0, 0, 1, 1], [], []>} : vector<1x8xbf16>, vector<8x32xbf16>, vector<1x32xf32> -> vector<1x32xf32>
    %549 = arith.addf %522, %548 : vector<1x32xf32>
    %550 = vector.extract_strided_slice %491 {offsets = [0, 16], sizes = [1, 8], strides = [1, 1]} : vector<1x32xf32> to vector<1x8xf32>
    %551 = arith.truncf %550 : vector<1x8xf32> to vector<1x8xbf16>
    %552 = vector.extract_strided_slice %492 {offsets = [0, 16], sizes = [16, 8], strides = [1, 1]} : vector<16x32xf32> to vector<16x8xf32>
    %553 = arith.truncf %552 : vector<16x8xf32> to vector<16x8xbf16>
    %cst_194 = arith.constant dense<0.000000e+00> : vector<1x16xf32>
    %554 = tpu.matmul %551, %553, %cst_194 {dimension_numbers = #tpu.dot_dimension_numbers<[1], [1], [0], [0], [0, 0, 1, 0], [], []>} : vector<1x8xbf16>, vector<16x8xbf16>, vector<1x16xf32> -> vector<1x16xf32>
    %cst_195 = arith.constant 0.353553385 : f32
    %555 = vector.broadcast %cst_195 : f32 to vector<1x16xf32>
    %556 = arith.mulf %554, %555 : vector<1x16xf32>
    %557 = arith.addf %556, %494 : vector<1x16xf32>
    %cst_196 = arith.constant dense<0xFF800000> : vector<1xf32>
    %558 = vector.multi_reduction <maximumf>, %557, %cst_196 [1] : vector<1x16xf32> to vector<1xf32>
    %cst_197 = arith.constant 0xFF800000 : f32
    %559 = vector.broadcast %cst_197 : f32 to vector<1xf32>
    %560 = arith.maximumf %559, %558 : vector<1xf32>
    %561 = vector.shape_cast %560 : vector<1xf32> to vector<1x1xf32>
    %562 = vector.broadcast %561 : vector<1x1xf32> to vector<1x16xf32>
    %563 = arith.subf %557, %562 : vector<1x16xf32>
    %564 = math.exp %563 : vector<1x16xf32>
    %cst_198 = arith.constant dense<0.000000e+00> : vector<1xf32>
    %565 = vector.multi_reduction <add>, %564, %cst_198 [1] : vector<1x16xf32> to vector<1xf32>
    %566 = vector.shape_cast %565 : vector<1xf32> to vector<1x1xf32>
    %567 = vector.broadcast %566 : vector<1x1xf32> to vector<1x16xf32>
    %568 = arith.divf %564, %567 : vector<1x16xf32>
    %569 = arith.truncf %568 : vector<1x16xf32> to vector<1x16xbf16>
    %570 = vector.extract_strided_slice %493 {offsets = [0, 16], sizes = [16, 8], strides = [1, 1]} : vector<16x32xf32> to vector<16x8xf32>
    %571 = arith.truncf %570 : vector<16x8xf32> to vector<16x8xbf16>
    %cst_199 = arith.constant dense<0.000000e+00> : vector<1x8xf32>
    %572 = tpu.matmul %569, %571, %cst_199 {dimension_numbers = #tpu.dot_dimension_numbers<[1], [0], [0], [1], [0, 0, 1, 1], [], []>} : vector<1x16xbf16>, vector<16x8xbf16>, vector<1x8xf32> -> vector<1x8xf32>
    %573 = arith.truncf %572 : vector<1x8xf32> to vector<1x8xbf16>
    %574 = vector.extract_strided_slice %355 {offsets = [16, 0], sizes = [8, 32], strides = [1, 1]} : vector<32x32xbf16> to vector<8x32xbf16>
    %cst_200 = arith.constant dense<0.000000e+00> : vector<1x32xf32>
    %575 = tpu.matmul %573, %574, %cst_200 {dimension_numbers = #tpu.dot_dimension_numbers<[1], [0], [0], [1], [0, 0, 1, 1], [], []>} : vector<1x8xbf16>, vector<8x32xbf16>, vector<1x32xf32> -> vector<1x32xf32>
    %576 = arith.addf %549, %575 : vector<1x32xf32>
    %577 = vector.extract_strided_slice %491 {offsets = [0, 24], sizes = [1, 8], strides = [1, 1]} : vector<1x32xf32> to vector<1x8xf32>
    %578 = arith.truncf %577 : vector<1x8xf32> to vector<1x8xbf16>
    %579 = vector.extract_strided_slice %492 {offsets = [0, 24], sizes = [16, 8], strides = [1, 1]} : vector<16x32xf32> to vector<16x8xf32>
    %580 = arith.truncf %579 : vector<16x8xf32> to vector<16x8xbf16>
    %cst_201 = arith.constant dense<0.000000e+00> : vector<1x16xf32>
    %581 = tpu.matmul %578, %580, %cst_201 {dimension_numbers = #tpu.dot_dimension_numbers<[1], [1], [0], [0], [0, 0, 1, 0], [], []>} : vector<1x8xbf16>, vector<16x8xbf16>, vector<1x16xf32> -> vector<1x16xf32>
    %cst_202 = arith.constant 0.353553385 : f32
    %582 = vector.broadcast %cst_202 : f32 to vector<1x16xf32>
    %583 = arith.mulf %581, %582 : vector<1x16xf32>
    %584 = arith.addf %583, %494 : vector<1x16xf32>
    %cst_203 = arith.constant dense<0xFF800000> : vector<1xf32>
    %585 = vector.multi_reduction <maximumf>, %584, %cst_203 [1] : vector<1x16xf32> to vector<1xf32>
    %cst_204 = arith.constant 0xFF800000 : f32
    %586 = vector.broadcast %cst_204 : f32 to vector<1xf32>
    %587 = arith.maximumf %586, %585 : vector<1xf32>
    %588 = vector.shape_cast %587 : vector<1xf32> to vector<1x1xf32>
    %589 = vector.broadcast %588 : vector<1x1xf32> to vector<1x16xf32>
    %590 = arith.subf %584, %589 : vector<1x16xf32>
    %591 = math.exp %590 : vector<1x16xf32>
    %cst_205 = arith.constant dense<0.000000e+00> : vector<1xf32>
    %592 = vector.multi_reduction <add>, %591, %cst_205 [1] : vector<1x16xf32> to vector<1xf32>
    %593 = vector.shape_cast %592 : vector<1xf32> to vector<1x1xf32>
    %594 = vector.broadcast %593 : vector<1x1xf32> to vector<1x16xf32>
    %595 = arith.divf %591, %594 : vector<1x16xf32>
    %596 = arith.truncf %595 : vector<1x16xf32> to vector<1x16xbf16>
    %597 = vector.extract_strided_slice %493 {offsets = [0, 24], sizes = [16, 8], strides = [1, 1]} : vector<16x32xf32> to vector<16x8xf32>
    %598 = arith.truncf %597 : vector<16x8xf32> to vector<16x8xbf16>
    %cst_206 = arith.constant dense<0.000000e+00> : vector<1x8xf32>
    %599 = tpu.matmul %596, %598, %cst_206 {dimension_numbers = #tpu.dot_dimension_numbers<[1], [0], [0], [1], [0, 0, 1, 1], [], []>} : vector<1x16xbf16>, vector<16x8xbf16>, vector<1x8xf32> -> vector<1x8xf32>
    %600 = arith.truncf %599 : vector<1x8xf32> to vector<1x8xbf16>
    %601 = vector.extract_strided_slice %355 {offsets = [24, 0], sizes = [8, 32], strides = [1, 1]} : vector<32x32xbf16> to vector<8x32xbf16>
    %cst_207 = arith.constant dense<0.000000e+00> : vector<1x32xf32>
    %602 = tpu.matmul %600, %601, %cst_207 {dimension_numbers = #tpu.dot_dimension_numbers<[1], [0], [0], [1], [0, 0, 1, 1], [], []>} : vector<1x8xbf16>, vector<8x32xbf16>, vector<1x32xf32> -> vector<1x32xf32>
    %603 = arith.addf %576, %602 : vector<1x32xf32>
    %604 = tpu.concatenate %490, %603 in 0 : vector<1x32xf32>, vector<1x32xf32> -> vector<2x32xf32>
    %605 = vector.broadcast %363 : vector<1x32xf32> to vector<2x32xf32>
    %606 = arith.addf %604, %605 : vector<2x32xf32>
    %607 = arith.addf %366, %606 : vector<2x32xf32>
    %c1_208 = arith.constant 1 : index
    %c0_209 = arith.constant 0 : index
    %c0_210 = arith.constant 0 : index
    %608 = vector.load %arg10[%c1_208, %c0_209, %c0_210] : memref<2x1x32xf32, #tpu.memory_space<vmem>>, vector<1x1x32xf32>
    %609 = vector.shape_cast %608 : vector<1x1x32xf32> to vector<1x32xf32>
    %c1_211 = arith.constant 1 : index
    %c0_212 = arith.constant 0 : index
    %c0_213 = arith.constant 0 : index
    %610 = vector.load %arg11[%c1_211, %c0_212, %c0_213] : memref<2x1x32xf32, #tpu.memory_space<vmem>>, vector<1x1x32xf32>
    %611 = vector.shape_cast %610 : vector<1x1x32xf32> to vector<1x32xf32>
    %cst_214 = arith.constant dense<0.000000e+00> : vector<2xf32>
    %612 = vector.multi_reduction <add>, %607, %cst_214 [1] : vector<2x32xf32> to vector<2xf32>
    %613 = vector.shape_cast %612 : vector<2xf32> to vector<2x1xf32>
    %cst_215 = arith.constant 3.200000e+01 : f32
    %614 = vector.broadcast %cst_215 : f32 to vector<2x1xf32>
    %615 = arith.divf %613, %614 : vector<2x1xf32>
    %616 = vector.broadcast %615 : vector<2x1xf32> to vector<2x32xf32>
    %617 = arith.subf %607, %616 : vector<2x32xf32>
    %618 = arith.mulf %617, %617 : vector<2x32xf32>
    %cst_216 = arith.constant dense<0.000000e+00> : vector<2xf32>
    %619 = vector.multi_reduction <add>, %618, %cst_216 [1] : vector<2x32xf32> to vector<2xf32>
    %620 = vector.shape_cast %619 : vector<2xf32> to vector<2x1xf32>
    %cst_217 = arith.constant 3.200000e+01 : f32
    %621 = vector.broadcast %cst_217 : f32 to vector<2x1xf32>
    %622 = arith.divf %620, %621 : vector<2x1xf32>
    %623 = vector.broadcast %615 : vector<2x1xf32> to vector<2x32xf32>
    %624 = arith.subf %607, %623 : vector<2x32xf32>
    %cst_218 = arith.constant 9.99999974E-6 : f32
    %625 = vector.broadcast %cst_218 : f32 to vector<2x1xf32>
    %626 = arith.addf %622, %625 : vector<2x1xf32>
    %627 = math.rsqrt %626 : vector<2x1xf32>
    %628 = vector.broadcast %627 : vector<2x1xf32> to vector<2x32xf32>
    %629 = arith.mulf %624, %628 : vector<2x32xf32>
    %630 = vector.broadcast %609 : vector<1x32xf32> to vector<2x32xf32>
    %631 = arith.mulf %629, %630 : vector<2x32xf32>
    %632 = vector.broadcast %611 : vector<1x32xf32> to vector<2x32xf32>
    %633 = arith.addf %631, %632 : vector<2x32xf32>
    %634 = arith.truncf %633 : vector<2x32xf32> to vector<2x32xbf16>
    %c1_219 = arith.constant 1 : index
    %c0_220 = arith.constant 0 : index
    %c0_221 = arith.constant 0 : index
    %635 = vector.load %arg12[%c1_219, %c0_220, %c0_221] : memref<2x32x64xf32, #tpu.memory_space<vmem>>, vector<1x32x64xf32>
    %636 = vector.shape_cast %635 : vector<1x32x64xf32> to vector<32x64xf32>
    %637 = arith.truncf %636 : vector<32x64xf32> to vector<32x64xbf16>
    %cst_222 = arith.constant dense<0.000000e+00> : vector<2x64xf32>
    %638 = tpu.matmul %634, %637, %cst_222 {dimension_numbers = #tpu.dot_dimension_numbers<[1], [0], [0], [1], [0, 0, 1, 1], [], []>} : vector<2x32xbf16>, vector<32x64xbf16>, vector<2x64xf32> -> vector<2x64xf32>
    %c1_223 = arith.constant 1 : index
    %c0_224 = arith.constant 0 : index
    %c0_225 = arith.constant 0 : index
    %639 = vector.load %arg13[%c1_223, %c0_224, %c0_225] : memref<2x1x64xf32, #tpu.memory_space<vmem>>, vector<1x1x64xf32>
    %640 = vector.shape_cast %639 : vector<1x1x64xf32> to vector<1x64xf32>
    %641 = vector.broadcast %640 : vector<1x64xf32> to vector<2x64xf32>
    %642 = arith.addf %638, %641 : vector<2x64xf32>
    %cst_226 = arith.constant 0.000000e+00 : f32
    %643 = vector.broadcast %cst_226 : f32 to vector<2x64xf32>
    %644 = arith.maximumf %642, %643 : vector<2x64xf32>
    %645 = arith.truncf %644 : vector<2x64xf32> to vector<2x64xbf16>
    %c1_227 = arith.constant 1 : index
    %c0_228 = arith.constant 0 : index
    %c0_229 = arith.constant 0 : index
    %646 = vector.load %arg14[%c1_227, %c0_228, %c0_229] : memref<2x64x32xf32, #tpu.memory_space<vmem>>, vector<1x64x32xf32>
    %647 = vector.shape_cast %646 : vector<1x64x32xf32> to vector<64x32xf32>
    %648 = arith.truncf %647 : vector<64x32xf32> to vector<64x32xbf16>
    %cst_230 = arith.constant dense<0.000000e+00> : vector<2x32xf32>
    %649 = tpu.matmul %645, %648, %cst_230 {dimension_numbers = #tpu.dot_dimension_numbers<[1], [0], [0], [1], [0, 0, 1, 1], [], []>} : vector<2x64xbf16>, vector<64x32xbf16>, vector<2x32xf32> -> vector<2x32xf32>
    %c1_231 = arith.constant 1 : index
    %c0_232 = arith.constant 0 : index
    %c0_233 = arith.constant 0 : index
    %650 = vector.load %arg15[%c1_231, %c0_232, %c0_233] : memref<2x1x32xf32, #tpu.memory_space<vmem>>, vector<1x1x32xf32>
    %651 = vector.shape_cast %650 : vector<1x1x32xf32> to vector<1x32xf32>
    %652 = vector.broadcast %651 : vector<1x32xf32> to vector<2x32xf32>
    %653 = arith.addf %649, %652 : vector<2x32xf32>
    %654 = arith.addf %633, %653 : vector<2x32xf32>
    %c1_234 = arith.constant 1 : index
    %c0_235 = arith.constant 0 : index
    %c0_236 = arith.constant 0 : index
    %655 = vector.load %arg16[%c1_234, %c0_235, %c0_236] : memref<2x1x32xf32, #tpu.memory_space<vmem>>, vector<1x1x32xf32>
    %656 = vector.shape_cast %655 : vector<1x1x32xf32> to vector<1x32xf32>
    %c1_237 = arith.constant 1 : index
    %c0_238 = arith.constant 0 : index
    %c0_239 = arith.constant 0 : index
    %657 = vector.load %arg17[%c1_237, %c0_238, %c0_239] : memref<2x1x32xf32, #tpu.memory_space<vmem>>, vector<1x1x32xf32>
    %658 = vector.shape_cast %657 : vector<1x1x32xf32> to vector<1x32xf32>
    %cst_240 = arith.constant dense<0.000000e+00> : vector<2xf32>
    %659 = vector.multi_reduction <add>, %654, %cst_240 [1] : vector<2x32xf32> to vector<2xf32>
    %660 = vector.shape_cast %659 : vector<2xf32> to vector<2x1xf32>
    %cst_241 = arith.constant 3.200000e+01 : f32
    %661 = vector.broadcast %cst_241 : f32 to vector<2x1xf32>
    %662 = arith.divf %660, %661 : vector<2x1xf32>
    %663 = vector.broadcast %662 : vector<2x1xf32> to vector<2x32xf32>
    %664 = arith.subf %654, %663 : vector<2x32xf32>
    %665 = arith.mulf %664, %664 : vector<2x32xf32>
    %cst_242 = arith.constant dense<0.000000e+00> : vector<2xf32>
    %666 = vector.multi_reduction <add>, %665, %cst_242 [1] : vector<2x32xf32> to vector<2xf32>
    %667 = vector.shape_cast %666 : vector<2xf32> to vector<2x1xf32>
    %cst_243 = arith.constant 3.200000e+01 : f32
    %668 = vector.broadcast %cst_243 : f32 to vector<2x1xf32>
    %669 = arith.divf %667, %668 : vector<2x1xf32>
    %670 = vector.broadcast %662 : vector<2x1xf32> to vector<2x32xf32>
    %671 = arith.subf %654, %670 : vector<2x32xf32>
    %cst_244 = arith.constant 9.99999974E-6 : f32
    %672 = vector.broadcast %cst_244 : f32 to vector<2x1xf32>
    %673 = arith.addf %669, %672 : vector<2x1xf32>
    %674 = math.rsqrt %673 : vector<2x1xf32>
    %675 = vector.broadcast %674 : vector<2x1xf32> to vector<2x32xf32>
    %676 = arith.mulf %671, %675 : vector<2x32xf32>
    %677 = vector.broadcast %656 : vector<1x32xf32> to vector<2x32xf32>
    %678 = arith.mulf %676, %677 : vector<2x32xf32>
    %679 = vector.broadcast %658 : vector<1x32xf32> to vector<2x32xf32>
    %680 = arith.addf %678, %679 : vector<2x32xf32>
    %c0_245 = arith.constant 0 : index
    %c0_246 = arith.constant 0 : index
    %681 = vector.load %arg18[%c0_245, %c0_246] : memref<32x5xf32, #tpu.memory_space<vmem>>, vector<32x5xf32>
    %cst_247 = arith.constant dense<0.000000e+00> : vector<2x5xf32>
    %682 = tpu.matmul %680, %681, %cst_247 {dimension_numbers = #tpu.dot_dimension_numbers<[1], [0], [0], [1], [0, 0, 1, 1], [], []>} : vector<2x32xf32>, vector<32x5xf32>, vector<2x5xf32> -> vector<2x5xf32>
    %c0_248 = arith.constant 0 : index
    %c0_249 = arith.constant 0 : index
    %683 = vector.load %arg19[%c0_248, %c0_249] : memref<1x5xf32, #tpu.memory_space<vmem>>, vector<1x5xf32>
    %684 = vector.broadcast %683 : vector<1x5xf32> to vector<2x5xf32>
    %685 = arith.addf %682, %684 : vector<2x5xf32>
    %c0_250 = arith.constant 0 : index
    %c0_251 = arith.constant 0 : index
    %686 = vector.load %arg20[%c0_250, %c0_251] : memref<2x5xf32, #tpu.memory_space<vmem>>, vector<2x5xf32>
    tpu.vector_store %arg20[%c0_250, %c0_251], %685 {strides = array<i32>} : memref<2x5xf32, #tpu.memory_space<vmem>>, vector<2x5xf32>,
    return
  }
}

</mosaic_0001>

<bundles_post_ra>
// kernel: tpu_custom_call.1
= control target key start
LH: loop header
LB: loop body
LE: loop exit
PB: predicated region body
PF: predicated region fallthrough
CT: control target
= control target key end

     0   :  { %s6013_s0 = inlined_call_operand.hbm [shape: f32[32,32], index: 0, kind: input, shape index: {}]   ;;  %s6014_s1 = inlined_call_operand.hbm [shape: f32[2,16], index: 1, kind: input, shape index: {}]   ;;  %s6015_s2 = inlined_call_operand.vmem [shape: f32[2,32,32], index: 2, kind: input, shape index: {}]   ;;  %s6016_s3 = inlined_call_operand.hbm [shape: f32[2,1,32], index: 3, kind: input, shape index: {}]   ;;  %s6017_s4 = inlined_call_operand.vmem [shape: f32[2,32,32], index: 4, kind: input, shape index: {}]   ;;  %s6018_s5 = inlined_call_operand.hbm [shape: f32[2,1,32], index: 5, kind: input, shape index: {}]   ;;  %s6019_s6 = inlined_call_operand.vmem [shape: f32[2,32,32], index: 6, kind: input, shape index: {}]   ;;  %s6020_s7 = inlined_call_operand.hbm [shape: f32[2,1,32], index: 7, kind: input, shape index: {}]   ;;  %s6021_s8 = inlined_call_operand.hbm [shape: f32[2,32,32], index: 8, kind: input, shape index: {}]   ;;  %s6022_s9 = inlined_call_operand.hbm [shape: f32[2,1,32], index: 9, kind: input, shape index: {}]   ;;  %s6023_s10 = inlined_call_operand.hbm [shape: f32[2,1,32], index: 10, kind: input, shape index: {}]   ;;  %s6024_s11 = inlined_call_operand.hbm [shape: f32[2,1,32], index: 11, kind: input, shape index: {}]   ;;  %s6025_s12 = inlined_call_operand.hbm [shape: f32[2,32,64], index: 12, kind: input, shape index: {}]   ;;  %s6026_s13 = inlined_call_operand.hbm [shape: f32[2,1,64], index: 13, kind: input, shape index: {}]   ;;  %s6027_s14 = inlined_call_operand.vmem [shape: f32[2,64,32], index: 14, kind: input, shape index: {}]   ;;  %s6028_s15 = inlined_call_operand.hbm [shape: f32[2,1,32], index: 15, kind: input, shape index: {}]   ;;  %s6029_s16 = inlined_call_operand.hbm [shape: f32[2,1,32], index: 16, kind: input, shape index: {}]   ;;  %s6030_s17 = inlined_call_operand.hbm [shape: f32[2,1,32], index: 17, kind: input, shape index: {}]   ;;  %s6031_s18 = inlined_call_operand.vmem [shape: f32[32,5], index: 18, kind: input, shape index: {}]   ;;  %s6032_s19 = inlined_call_operand.hbm [shape: f32[1,5], index: 19, kind: input, shape index: {}]   ;;  %s6033_s20 = inlined_call_operand.hbm [shape: f32[2,5], index: 20, kind: output, shape index: {}]  }
   0x1   :  { %6036 = sst [smem:[#allocation36_spill]] %s6013_s0 }
   0x2   :  { %6037 = sst [smem:[#allocation37_spill]] %s6014_s1 }
   0x3   :  { %6038 = sst [smem:[#allocation38_spill]] %s6015_s2 }
   0x4   :  { %6039 = sst [smem:[#allocation39_spill]] %s6016_s3 }
   0x5   :  { %6040 = sst [smem:[#allocation40_spill]] %s6017_s4 }
   0x6   :  { %25 = vsyncpa [#allocation3], 0 }
   0x7   :  { %26 = vsyncpa [#allocation6], 0 }
   0x8   :  { %27 = vsyncpa [#allocation9], 0 }
   0x9   :  { %28 = vsyncpa [#allocation12], 0 }
   0xa   :  { %29 = vsyncpa [#allocation15], 0 }
   0xb   :  { %30 = vsyncpa [#allocation18], 0 }
   0xc   :  { %31 = vsyncpa [#allocation21], 0 }
   0xd   :  { %32 = vsyncpa [#allocation24], 0 }
   0xe   :  { %33 = vsyncpa [#allocation4], 0  ;;  %s5076_s1 = smov [#allocation5]  }
   0xf   :  { %s52_s22 = sshll.u32 %s5076_s1, 4  ;;  %s53_s22 = int_to_ptr.vmem [resolvable:$true] %s52_s22 }
  0x10   :  { %s4746_s23 = scalar_lea.vmem %s53_s22, 32  ;;  %p4751_p1 = scmp.lt.s32.totalorder %s53_s22, %s53_s22 }
  0x11   :  { %p4747_p0 = scmp.ne.s32.totalorder %s53_s22, %s4746_s23  ;;  %p4752_p2 = scmp.lt.s32.totalorder %s4746_s23, %s4746_s23 }
  0x13   :  { %p4753_p3 = por %p4752_p2, %p4751_p1 }
  0x15   :  { %p4754_p4 = pnand %p4753_p3, %p4747_p0 }
  0x17   :  { %4757 = shalt.err (!%p4754_p4)
}
  0x18   :  { %s6041_s25 = sld [smem:[#allocation37_spill]]  ;;  %s5077_s3 = smov [#allocation8]  }
  0x19   :  { %s77_s26 = sshll.u32 %s5077_s3, 4  ;;  %s78_s26 = int_to_ptr.vmem [resolvable:$true] %s77_s26 }
  0x1a   :  { %s4766_s27 = scalar_lea.vmem %s78_s26, 32  ;;  %p4771_p6 = scmp.lt.s32.totalorder %s78_s26, %s78_s26 }
  0x1b   :  { %p4767_p5 = scmp.ne.s32.totalorder %s78_s26, %s4766_s27  ;;  %p4772_p7 = scmp.lt.s32.totalorder %s4766_s27, %s4766_s27 }
  0x1d   :  { %p4773_p8 = por %p4772_p7, %p4771_p6 }
  0x1e   :  { %55 = dma.hbm_to_vmem [thread:$0]  %s6041_s25, 32, %s53_s22, [#allocation6]  }
  0x1f   :  { %p4774_p9 = pnand %p4773_p8, %p4767_p5 }
  0x21   :  { %4777 = shalt.err (!%p4774_p9)
}
  0x22   :  { %s5078_s28 = smov 16   ;;  %s5079_s4 = smov 1  }
  0x23   :  { %83 = dma.hbm_to_vmem [thread:$0]  %s6018_s5, 32, %s78_s26, [#allocation9], %s5078_s28, %s5078_s28, %s5079_s4  }
  0x24   :  { %s5080_s0 = smov [#allocation11]   ;;  %s5081_s1 = smov [#allocation14]  }
  0x25   :  { %s103_s21 = sshll.u32 %s5080_s0, 4  ;;  %s127_s22 = sshll.u32 %s5081_s1, 4  ;;  %s104_s21 = int_to_ptr.vmem [resolvable:$true] %s103_s21  ;;  %s128_s22 = int_to_ptr.vmem [resolvable:$true] %s127_s22 }
  0x26   :  { %s4786_s23 = scalar_lea.vmem %s104_s21, 1024  ;;  %p4791_p11 = scmp.lt.s32.totalorder %s104_s21, %s104_s21 }
  0x27   :  { %p4787_p10 = scmp.ne.s32.totalorder %s104_s21, %s4786_s23  ;;  %p4792_p12 = scmp.lt.s32.totalorder %s4786_s23, %s4786_s23 }
  0x29   :  { %p4793_p13 = por %p4792_p12, %p4791_p11 }
  0x2b   :  { %p4794_p0 = pnand %p4793_p13, %p4787_p10 }
  0x2d   :  { %4797 = shalt.err (!%p4794_p0)
}
  0x2e   :  { %s5082_s24 = smov 128   ;;  %s5083_s2 = smov 8  }
  0x2f   :  { %109 = dma.hbm_to_vmem [thread:$0]  %s6021_s8, 1024, %s104_s21, [#allocation12], %s5082_s24, %s5082_s24, %s5083_s2  }
  0x30   :  { %s4806_s3 = scalar_lea.vmem %s128_s22, 32  ;;  %p4811_p2 = scmp.lt.s32.totalorder %s128_s22, %s128_s22 }
  0x31   :  { %p4807_p1 = scmp.ne.s32.totalorder %s128_s22, %s4806_s3  ;;  %p4812_p3 = scmp.lt.s32.totalorder %s4806_s3, %s4806_s3 }
  0x33   :  { %p4813_p4 = por %p4812_p3, %p4811_p2 }
  0x35   :  { %p4814_p5 = pnand %p4813_p4, %p4807_p1 }
  0x37   :  { %4817 = shalt.err (!%p4814_p5)
}
  0x38   :  { %133 = dma.hbm_to_vmem [thread:$0]  %s6023_s10, 32, %s128_s22, [#allocation15], %s5078_s28, %s5078_s28, %s5079_s4  }
  0x39   :  { %s5084_s29 = smov [#allocation17]   ;;  %s5085_s0 = smov [#allocation20]  }
  0x3a   :  { %s151_s30 = sshll.u32 %s5084_s29, 4  ;;  %s177_s1 = sshll.u32 %s5085_s0, 4  ;;  %s152_s30 = int_to_ptr.vmem [resolvable:$true] %s151_s30  ;;  %s178_s1 = int_to_ptr.vmem [resolvable:$true] %s177_s1 }
  0x3b   :  { %s4826_s8 = scalar_lea.vmem %s152_s30, 1024  ;;  %p4831_p7 = scmp.lt.s32.totalorder %s152_s30, %s152_s30 }
  0x3c   :  { %p4827_p6 = scmp.ne.s32.totalorder %s152_s30, %s4826_s8  ;;  %p4832_p8 = scmp.lt.s32.totalorder %s4826_s8, %s4826_s8 }
  0x3e   :  { %p4833_p9 = por %p4832_p8, %p4831_p7 }
  0x40   :  { %p4834_p10 = pnand %p4833_p9, %p4827_p6 }
  0x42   :  { %4837 = shalt.err (!%p4834_p10)
}
  0x43   :  { %157 = dma.hbm_to_vmem [thread:$0]  %s6025_s12, 1024, %s152_s30, [#allocation18], %s5082_s24, %s5082_s24, %s5083_s2  }
  0x44   :  { %s4846_s10 = scalar_lea.vmem %s178_s1, 32  ;;  %p4851_p12 = scmp.lt.s32.totalorder %s178_s1, %s178_s1 }
  0x45   :  { %p4847_p11 = scmp.ne.s32.totalorder %s178_s1, %s4846_s10  ;;  %p4852_p13 = scmp.lt.s32.totalorder %s4846_s10, %s4846_s10 }
  0x47   :  { %p4853_p0 = por %p4852_p13, %p4851_p12 }
  0x49   :  { %p4854_p1 = pnand %p4853_p0, %p4847_p11 }
  0x4b   :  { %4857 = shalt.err (!%p4854_p1)
}
  0x4c   :  { %183 = dma.hbm_to_vmem [thread:$0]  %s6028_s15, 32, %s178_s1, [#allocation21], %s5078_s28, %s5078_s28, %s5079_s4  }
  0x4d   :  { %s5086_s5 = smov [#allocation23]   ;;  %s5087_s26 = smov [#allocation2]  }
  0x4e   :  { %s201_s3 = sshll.u32 %s5086_s5, 4  ;;  %s39_s27 = sshll.u32 %s5087_s26, 4  ;;  %s202_s3 = int_to_ptr.vmem [resolvable:$true] %s201_s3  ;;  %s40_s27 = int_to_ptr.vmem [resolvable:$true] %s39_s27 }
  0x4f   :  { %s4866_s12 = scalar_lea.vmem %s202_s3, 32  ;;  %p4871_p3 = scmp.lt.s32.totalorder %s202_s3, %s202_s3 }
  0x50   :  { %p4867_p2 = scmp.ne.s32.totalorder %s202_s3, %s4866_s12  ;;  %p4872_p4 = scmp.lt.s32.totalorder %s4866_s12, %s4866_s12 }
  0x52   :  { %p4873_p5 = por %p4872_p4, %p4871_p3 }
  0x54   :  { %p4874_p6 = pnand %p4873_p5, %p4867_p2 }
  0x56   :  { %4877 = shalt.err (!%p4874_p6)
}
  0x57   :  { %207 = dma.hbm_to_vmem [thread:$0]  %s6030_s17, 32, %s202_s3, [#allocation24], %s5078_s28, %s5078_s28, %s5079_s4  }
  0x58   :  { %s4886_s15 = scalar_lea.vmem %s40_s27, 512  ;;  %p4891_p8 = scmp.lt.s32.totalorder %s40_s27, %s40_s27 }
  0x59   :  { %p4887_p7 = scmp.ne.s32.totalorder %s40_s27, %s4886_s15  ;;  %p4892_p9 = scmp.lt.s32.totalorder %s4886_s15, %s4886_s15 }
  0x5b   :  { %p4893_p10 = por %p4892_p9, %p4891_p8 }
  0x5d   :  { %p4894_p11 = pnand %p4893_p10, %p4887_p7 }
  0x5f   :  { %4897 = shalt.err (!%p4894_p11)
}
  0x60   :  { %s6042_s8 = sld [smem:[#allocation36_spill]]  ;;  %s5088_s21 = smov [#allocation7]  }
  0x61   :  { %s63_s23 = sshll.u32 %s5088_s21, 4  ;;  %s5089_s10 = smov [#allocation10]   ;;  %s64_s23 = int_to_ptr.vmem [resolvable:$true] %s63_s23 }
  0x62   :  { %s91_s22 = sshll.u32 %s5089_s10, 4  ;;  %s4906_s17 = scalar_lea.vmem %s64_s23, 32  ;;  %s92_s22 = int_to_ptr.vmem [resolvable:$true] %s91_s22 }
  0x63   :  { %p4907_p12 = scmp.ne.s32.totalorder %s64_s23, %s4906_s17  ;;  %p4911_p13 = scmp.lt.s32.totalorder %s64_s23, %s64_s23 }
  0x64   :  { %p4912_p0 = scmp.lt.s32.totalorder %s4906_s17, %s4906_s17 }
  0x66   :  { %45 = dma.hbm_to_vmem [thread:$0]  %s6042_s8, 512, %s40_s27, [#allocation3], %s5082_s24, %s5082_s24, %s5083_s2  }
  0x67   :  { %p4913_p1 = por %p4912_p0, %p4911_p13 }
  0x69   :  { %p4914_p2 = pnand %p4913_p1, %p4907_p12 }
  0x6b   :  { %4917 = shalt.err (!%p4914_p2)
}
  0x6c   :  { %s6043_s3 = sld [smem:[#allocation39_spill]]  ;;  %s4926_s24 = scalar_lea.vmem %s92_s22, 32 }
  0x6d   :  { %p4927_p3 = scmp.ne.s32.totalorder %s92_s22, %s4926_s24  ;;  %p4931_p4 = scmp.lt.s32.totalorder %s92_s22, %s92_s22 }
  0x6e   :  { %p4932_p5 = scmp.lt.s32.totalorder %s4926_s24, %s4926_s24 }
  0x70   :  { %p4933_p6 = por %p4932_p5, %p4931_p4 }
  0x72   :  { %69 = dma.hbm_to_vmem [thread:$0]  %s6043_s3, 32, %s64_s23, [#allocation6], %s5078_s28, %s5078_s28, %s5079_s4  }
  0x73   :  { %p4934_p7 = pnand %p4933_p6, %p4927_p3 }
  0x75   :  { %4937 = shalt.err (!%p4934_p7)
}
  0x76   :  { %97 = dma.hbm_to_vmem [thread:$0]  %s6020_s7, 32, %s92_s22, [#allocation9], %s5078_s28, %s5078_s28, %s5079_s4  }
  0x77   :  { %s5090_s27 = smov [#allocation13]   ;;  %s5091_s29 = smov [#allocation16]  }
  0x78   :  { %s115_s12 = sshll.u32 %s5090_s27, 4  ;;  %s139_s30 = sshll.u32 %s5091_s29, 4  ;;  %s116_s12 = int_to_ptr.vmem [resolvable:$true] %s115_s12  ;;  %s140_s30 = int_to_ptr.vmem [resolvable:$true] %s139_s30 }
  0x79   :  { %s4946_s15 = scalar_lea.vmem %s116_s12, 32  ;;  %p4951_p9 = scmp.lt.s32.totalorder %s116_s12, %s116_s12 }
  0x7a   :  { %p4947_p8 = scmp.ne.s32.totalorder %s116_s12, %s4946_s15  ;;  %p4952_p10 = scmp.lt.s32.totalorder %s4946_s15, %s4946_s15 }
  0x7c   :  { %p4953_p11 = por %p4952_p10, %p4951_p9 }
  0x7e   :  { %p4954_p12 = pnand %p4953_p11, %p4947_p8 }
  0x80   :  { %4957 = shalt.err (!%p4954_p12)
}
  0x81   :  { %121 = dma.hbm_to_vmem [thread:$0]  %s6022_s9, 32, %s116_s12, [#allocation12], %s5078_s28, %s5078_s28, %s5079_s4  }
  0x82   :  { %s4966_s7 = scalar_lea.vmem %s140_s30, 32  ;;  %p4971_p0 = scmp.lt.s32.totalorder %s140_s30, %s140_s30 }
  0x83   :  { %p4967_p13 = scmp.ne.s32.totalorder %s140_s30, %s4966_s7  ;;  %p4972_p1 = scmp.lt.s32.totalorder %s4966_s7, %s4966_s7 }
  0x85   :  { %p4973_p2 = por %p4972_p1, %p4971_p0 }
  0x87   :  { %p4974_p3 = pnand %p4973_p2, %p4967_p13 }
  0x89   :  { %4977 = shalt.err (!%p4974_p3)
}
  0x8a   :  { %145 = dma.hbm_to_vmem [thread:$0]  %s6024_s11, 32, %s140_s30, [#allocation15], %s5078_s28, %s5078_s28, %s5079_s4  }
  0x8b   :  { %s5092_s23 = smov [#allocation19]   ;;  %s5093_s22 = smov [#allocation22]  }
  0x8c   :  { %s163_s10 = sshll.u32 %s5092_s23, 4  ;;  %s189_s17 = sshll.u32 %s5093_s22, 4  ;;  %s164_s10 = int_to_ptr.vmem [resolvable:$true] %s163_s10  ;;  %s190_s17 = int_to_ptr.vmem [resolvable:$true] %s189_s17 }
  0x8d   :  { %s4986_s9 = scalar_lea.vmem %s164_s10, 32  ;;  %p4991_p5 = scmp.lt.s32.totalorder %s164_s10, %s164_s10 }
  0x8e   :  { %p4987_p4 = scmp.ne.s32.totalorder %s164_s10, %s4986_s9  ;;  %p4992_p6 = scmp.lt.s32.totalorder %s4986_s9, %s4986_s9 }
  0x90   :  { %p4993_p7 = por %p4992_p6, %p4991_p5 }
  0x92   :  { %p4994_p8 = pnand %p4993_p7, %p4987_p4 }
  0x94   :  { %4997 = shalt.err (!%p4994_p8)
}
  0x95   :  { %169 = dma.hbm_to_vmem [thread:$0]  %s6026_s13, 32, %s164_s10, [#allocation18], %s5078_s28, %s5078_s28, %s5079_s4  }
  0x96   :  { %s5006_s11 = scalar_lea.vmem %s190_s17, 32  ;;  %p5011_p10 = scmp.lt.s32.totalorder %s190_s17, %s190_s17 }
  0x97   :  { %p5007_p9 = scmp.ne.s32.totalorder %s190_s17, %s5006_s11  ;;  %p5012_p11 = scmp.lt.s32.totalorder %s5006_s11, %s5006_s11 }
  0x99   :  { %p5013_p12 = por %p5012_p11, %p5011_p10 }
  0x9b   :  { %p5014_p13 = pnand %p5013_p12, %p5007_p9 }
  0x9d   :  { %5017 = shalt.err (!%p5014_p13)
}
  0x9e   :  { %195 = dma.hbm_to_vmem [thread:$0]  %s6029_s16, 32, %s190_s17, [#allocation21], %s5078_s28, %s5078_s28, %s5079_s4  }
  0x9f   :  { %s5094_s2 = smov [#allocation25]  }
  0xa0   :  { %s216_s26 = sshll.u32 %s5094_s2, 4  ;;  %s217_s26 = int_to_ptr.vmem [resolvable:$true] %s216_s26 }
  0xa1   :  { %s5026_s27 = scalar_lea.vmem %s217_s26, 16  ;;  %s5030_s13 = scalar_lea.vmem %s217_s26, 32 }
  0xa2   :  { %p5027_p0 = scmp.ne.s32.totalorder %s217_s26, %s5026_s27  ;;  %p5031_p1 = scmp.lt.s32.totalorder %s217_s26, %s217_s26 }
  0xa3   :  { %p5032_p2 = scmp.lt.s32.totalorder %s5030_s13, %s5026_s27 }
  0xa5   :  { %p5033_p3 = por %p5032_p2, %p5031_p1 }
  0xa7   :  { %p5034_p4 = pnand %p5033_p3, %p5027_p0 }
  0xa9   :  { %5037 = shalt.err (!%p5034_p4)
}
  0xaa   :  { %219 = dma.hbm_to_vmem [thread:$0]  %s6032_s19, 16, %s217_s26, [#allocation24]  }
  0xab   :  { %5058 = dma.done.wait [#allocation3], 512  }
  0xac   :  { %5059 = vsyncadd [#allocation3], 4294966784 }
  0xad   :  { %5060 = dma.done.wait [#allocation6], 64  }
  0xae   :  { %5061 = vsyncadd [#allocation6], 4294967232 }
  0xaf   :  { %5062 = dma.done.wait [#allocation9], 64  }
  0xb0   :  { %5063 = vsyncadd [#allocation9], 4294967232 }
  0xb1   :  { %5064 = dma.done.wait [#allocation12], 1056  }
  0xb2   :  { %5065 = vsyncadd [#allocation12], 4294966240 }
  0xb3   :  { %5066 = dma.done.wait [#allocation15], 64  }
  0xb4   :  { %5067 = vsyncadd [#allocation15], 4294967232 }
  0xb5   :  { %5068 = dma.done.wait [#allocation18], 1056  }
  0xb6   :  { %5069 = vsyncadd [#allocation18], 4294966240 }
  0xb7   :  { %5070 = dma.done.wait [#allocation21], 64  }
  0xb8   :  { %5071 = vsyncadd [#allocation21], 4294967232 }
  0xb9   :  { %5072 = dma.done.wait [#allocation24], 48  }
  0xba   :  { %5073 = vsyncadd [#allocation24], 4294967248  ;;  %s6044_s4 = sld [smem:[#allocation38_spill]]  ;;  %v266_v5 = vld [vmem:[#allocation2] sm:$0xff]  ;;  %v267_v6 = vld [vmem:[#allocation2 + $0x8] sm:$0xff]  ;;  %vm307_vm0 = vcmask 261120   ;;  %v525_v51 = vlaneseq }
  0xbb   :  { %v299_v8 = vpack.c.bf16 %v267_v6, %v266_v5  ;;  %s6045_s23 = sld [smem:[#allocation40_spill]]  ;;  %v268_v11 = vld [vmem:[#allocation2 + $0x10] sm:$0xff]  ;;  %v269_v12 = vld [vmem:[#allocation2 + $0x18] sm:$0xff]  ;;  %v5095_v18 = vmov 0.0   ;;  %vm5096_vm1 = vmmov 0   ;;  %vm475_vm2 = vcmask 64512  }
  0xbc   :  { %v300_v16 = vpack.c.bf16 %v269_v12, %v268_v11  ;;  %v3956_v19 = vld [vmem:[#allocation7] ss:$0 sm:$0xff]  ;;  %v3959_v26 = vld [vmem:[#allocation8] ss:$0 sm:$0xff]  ;;  %s5097_s11 = smov 120   ;;  %v285_v42 = vld [vmem:[%s6019_s6 + $0x10] sm:$0xff] }
  0xbd   :  { %4209 = vmatprep.mubr.msk.bf16.mxu1 %vm307_vm0, %v299_v8  ;;  %4225 = vmatprep.mubr.msk.bf16.mxu0 %vm307_vm0, %v299_v8  ;;  %v286_v43 = vld [vmem:[%s6019_s6 + $0x18] sm:$0xff]  ;;  %v283_v44 = vld [vmem:[%s6019_s6] sm:$0xff]  ;;  %v284_v46 = vld [vmem:[%s6019_s6 + $0x8] sm:$0xff]  ;;  %v5362_v52 = vshrl.u32 %v525_v51, 7  ;;  %vm531_vm3 = vcmask 130048   ;;  %s5098_s16 = smov 112  }
  0xbe   :  { %v288_v45 = vpack.c.bf16 %v286_v43, %v285_v42  ;;  %v287_v47 = vpack.c.bf16 %v284_v46, %v283_v44  ;;  %v5365_v54 = vld [vmem:[#allocation5] sm:$0x3]  ;;  %vm735_vm4 = vcmask 1043456   ;;  %s5099_s28 = smov 104   ;;  %vm2050_vm5 = vcmask 523264   ;;  %s5100_s25 = smov [#allocation26]  }
  0xbf   :  { %v527_v53 = vsub.s32 0, %v5362_v52  ;;  %vm2223_vm6 = vcmask 1040384   ;;  %vm2443_vm7 = vcmask 122880   ;;  %vm3663_vm8 = vcmask 254976  }
  0xc0   :  { %v273_v0 = vld [vmem:[%s6044_s4 + $0x10] sm:$0xff]  ;;  %v274_v1 = vld [vmem:[%s6044_s4 + $0x18] sm:$0xff]  ;;  %v271_v2 = vld [vmem:[%s6044_s4] sm:$0xff]  ;;  %4221 = vmatprep.subr.bf16.mxu0 %v288_v45  ;;  %vm3932_vm9 = vcmask 33792  }
  0xc1   :  { %v276_v3 = vpack.c.bf16 %v274_v1, %v273_v0  ;;  %v272_v4 = vld [vmem:[%s6044_s4 + $0x8] sm:$0xff]  ;;  %v279_v9 = vld [vmem:[%s6045_s23 + $0x10] sm:$0xff]  ;;  %v280_v10 = vld [vmem:[%s6045_s23 + $0x18] sm:$0xff]  ;;  %4222 = vmatpush3.bf16.msra.mxu0 %v288_v45  ;;  %v5368_v55 = vrot.slane %v5365_v54, %v527_v53 }
  0xc2   :  { %v275_v7 = vpack.c.bf16 %v272_v4, %v271_v2  ;;  %v282_v13 = vpack.c.bf16 %v280_v10, %v279_v9  ;;  %v277_v14 = vld [vmem:[%s6045_s23] sm:$0xff]  ;;  %v278_v15 = vld [vmem:[%s6045_s23 + $0x8] sm:$0xff]  ;;  %4223 = vmatprep.subr.bf16.mxu0 %v287_v47 }
  0xc3   :  { %4205 = vmatprep.subr.bf16.mxu1 %v276_v3  ;;  %v281_v17 = vpack.c.bf16 %v278_v15, %v277_v14 }
  0xc4   :  { %4206 = vmatpush3.bf16.msra.mxu1 %v276_v3 }
  0xc5   :  { %4207 = vmatprep.subr.bf16.mxu1 %v275_v7  ;;  %4224 = vmatpush3.bf16.msra.mxu0 %v287_v47 }
  0xc6   :  { %4235 = vmatprep.subr.bf16.mxu0 %v5095_v18 }
  0xc8   :  { %4208 = vmatpush3.bf16.msra.mxu1 %v275_v7  ;;  %4226 = vmatmul.mubr.msk.bf16.vlgmr.msra.gmra.mxu0 %vm307_vm0, %v300_v16 }
  0xc9   :  { %4213 = vmatprep.subr.bf16.mxu1 %v282_v13  ;;  %4237 = vmatprep.mubr.msk.bf16.mxu0 %vm5096_vm1, %v5095_v18 }
  0xcb   :  { %4210 = vmatmul.mubr.msk.bf16.vlgmr.msra.gmra.mxu1 %vm307_vm0, %v300_v16 }
  0xcc   :  { %4214 = vmatpush3.bf16.msra.mxu1 %v282_v13  ;;  %4217 = vmatprep.mubr.msk.bf16.mxu1 %vm307_vm0, %v299_v8 }
  0xcd   :  { %4215 = vmatprep.subr.bf16.mxu1 %v281_v17 }
  0xd0   :  { %4216 = vmatpush3.bf16.msra.mxu1 %v281_v17 }
  0xd1   :  { %4229 = vmatprep.subr.bf16.mxu1 %v5095_v18 }
  0xd3   :  { %4218 = vmatmul.mubr.msk.bf16.vlgmr.msra.gmra.mxu1 %vm307_vm0, %v300_v16 }
  0xd4   :  { %4231 = vmatprep.mubr.msk.bf16.mxu1 %vm5096_vm1, %v5095_v18 }
 0x18b   :  { %v4211_v20 = vpop.f32.mrf.mxu1 }
 0x18c   :  { %v357_v21 = vadd.f32 %v4211_v20, %v3956_v19  ;;  %v3962_v20 = vld [vmem:[#allocation10] ss:$0 sm:$0xff] }
 0x18d   :  { %v348_v22 = vpop.f32.mrf.mxu1 }
 0x18e   :  { %v349_v39 = vadd.f32 %v3956_v19, %v348_v22 }
 0x18f   :  { %v4212_v23 = vpop.f32.mrf.mxu1 }
 0x190   :  { %v360_v24 = vadd.f32 %v4212_v23, %v3956_v19 }
 0x191   :  { %v351_v25 = vpop.f32.mrf.mxu1 }
 0x192   :  { %v5322_v27 = vpack.c.bf16 %v360_v24, %v357_v21  ;;  %v352_v37 = vadd.f32 %v3956_v19, %v351_v25  ;;  %v4227_v19 = vpop.f32.mrf.mxu0 }
 0x193   :  { %v4219_v28 = vpop.f32.mrf.mxu1  ;;  %v467_v21 = vadd.f32 %v4227_v19, %v3962_v20 }
 0x194   :  { %v412_v29 = vadd.f32 %v4219_v28, %v3959_v26  ;;  %v5332_v41 = vpack.c.bf16 %v352_v37, %v349_v39  ;;  %v458_v22 = vpop.f32.mrf.mxu0 }
 0x195   :  { %v403_v30 = vpop.f32.mrf.mxu1  ;;  %v459_v24 = vadd.f32 %v3962_v20, %v458_v22 }
 0x196   :  { %v404_v34 = vadd.f32 %v3959_v26, %v403_v30  ;;  %v4228_v23 = vpop.f32.mrf.mxu0 }
 0x197   :  { %v4220_v31 = vpop.f32.mrf.mxu1  ;;  %v470_v25 = vadd.f32 %v4228_v23, %v3962_v20 }
 0x198   :  { %v415_v32 = vadd.f32 %v4220_v31, %v3959_v26 }
 0x199   :  { %v406_v33 = vpop.f32.mrf.mxu1 }
 0x19a   :  { %v5324_v35 = vpack.c.bf16 %v415_v32, %v412_v29  ;;  %v407_v36 = vadd.f32 %v3959_v26, %v406_v33  ;;  %v461_v26 = vpop.f32.mrf.mxu0  ;;  %v5380_v29 = vpack.c.bf16 %v470_v25, %v467_v21 }
 0x19b   :  { %v462_v30 = vadd.f32 %v3962_v20, %v461_v26 }
 0x19c   :  { %v5326_v38 = vpack.c.bf16 %v407_v36, %v404_v34 }
 0x19d   :  { %v5383_v32 = vpack.c.bf16 %v462_v30, %v459_v24 }
 0x19e   :  { %605 = vrot.lane.b32.xlu0 %v5326_v38, %s5097_s11  ;;  %v480_v40 = vsel %vm475_vm2, %v5326_v38, 0 }
 0x19f   :  { %4230 = vmatpush3.bf16.xpose.msra.mxu1 %v480_v40  ;;  %4236 = vmatpush3.bf16.msra.mxu0 %v5383_v32 }
 0x1a0   :  { %4241 = vmatprep.subr.bf16.mxu1 %v5095_v18  ;;  %4247 = vmatprep.subr.bf16.mxu0 %v5095_v18 }
 0x1a2   :  { %602 = vrot.lane.b32.xlu0 %v5332_v41, %s5097_s11 }
 0x1a6   :  { %4232 = vmatmul.mubr.msk.bf16.vlgmr.msra.gmra.mxu1 %vm475_vm2, %v5332_v41 }
 0x1a7   :  { %4243 = vmatprep.mubr.msk.bf16.mxu1 %vm5096_vm1, %v5095_v18 }
 0x210   :  { %v606_v48 = vpop.permute.xlu0 %605 }
 0x211   :  { %v611_v49 = vsel %vm475_vm2, %v606_v48, 0 }
 0x212   :  { %4242 = vmatpush3.bf16.xpose.msra.mxu1 %v611_v49 }
 0x213   :  { %4253 = vmatprep.subr.bf16.mxu1 %v5095_v18 }
 0x214   :  { %v603_v50 = vpop.permute.xlu0 %602 }
 0x219   :  { %4244 = vmatmul.mubr.msk.bf16.vlgmr.msra.gmra.mxu1 %vm475_vm2, %v603_v50 }
 0x21a   :  { %4255 = vmatprep.mubr.msk.bf16.mxu1 %vm5096_vm1, %v5095_v18 }
 0x266   :  { %v516_v56 = vpop.f32.mrf.mxu1 }
 0x267   :  { %v523_v57 = vmul.f32 0.35355338, %v516_v56 }
 0x268   :  { %v4233_v58 = vpop.f32.mrf.mxu1 }
 0x269   :  { %v529_v59 = vadd.f32 %v5368_v55, %v523_v57 }
 0x26a   :  { %v519_v60 = vpop.f32.mrf.mxu1 }
 0x26b   :  { %v524_v61 = vmul.f32 0.35355338, %v519_v60  ;;  %v532_v62 = vsel %vm531_vm3, %v529_v59, -inf }
 0x26c   :  { %533 = vmax.xlane.f32.xlu1 %v532_v62  ;;  %v4234_v63 = vpop.f32.mrf.mxu1  ;;  %v290_v62 = vld [vmem:[#allocation11 + $0x8] sm:$0xff] }
 0x26d   :  { %v530_v0 = vadd.f32 %v5368_v55, %v524_v61  ;;  %v289_v61 = vld [vmem:[#allocation11] sm:$0xff] }
 0x26f   :  { %v535_v1 = vsel %vm531_vm3, %v530_v0, -inf }
 0x270   :  { %536 = vmax.xlane.f32.xlu1 %v535_v1 }
 0x2d9   :  { %v647_v2 = vpop.f32.mrf.mxu1 }
 0x2da   :  { %v654_v3 = vmul.f32 0.35355338, %v647_v2 }
 0x2db   :  { %v4245_v4 = vpop.f32.mrf.mxu1 }
 0x2dc   :  { %v656_v5 = vadd.f32 %v654_v3, %v5368_v55 }
 0x2dd   :  { %v650_v6 = vpop.f32.mrf.mxu1 }
 0x2de   :  { %v655_v7 = vmul.f32 0.35355338, %v650_v6  ;;  %v658_v8 = vsel %vm531_vm3, %v656_v5, -inf }
 0x2df   :  { %659 = vmax.xlane.f32.xlu0 %v658_v8  ;;  %v4246_v9 = vpop.f32.mrf.mxu1 }
 0x2e0   :  { %v657_v10 = vadd.f32 %v655_v7, %v5368_v55 }
 0x2e2   :  { %v661_v11 = vsel %vm531_vm3, %v657_v10, -inf }
 0x2e3   :  { %662 = vmax.xlane.f32.xlu1 %v661_v11 }
 0x2f5   :  { %v534_v12 = vpop.xlane.xlu1 %533  ;;  %829 = vrot.lane.b32.xlu0 %v5326_v38, %s5098_s16 }
 0x2f6   :  { %v538_v13 = vsub.f32 %v529_v59, %v534_v12 }
 0x2f8   :  { %v540_v14 = vmul.f32 1.442695, %v538_v13 }
 0x2f9   :  { %v537_v15 = vpop.xlane.xlu1 %536 }
 0x2fa   :  { %4617 = vpow2.f32 %v540_v14  ;;  %v539_v16 = vsub.f32 %v530_v0, %v537_v15  ;;  %v293_v0 = vpack.c.bf16 %v290_v62, %v289_v61 }
 0x2fc   :  { %v542_v17 = vmul.f32 1.442695, %v539_v16  ;;  %v731_v6 = vrot.slane %v293_v0, 4 }
 0x2fe   :  { %4619 = vpow2.f32 %v542_v17  ;;  %v5407_v7 = vsel %vm735_vm4, %v731_v6, 0  ;;  %v292_v6 = vld [vmem:[#allocation11 + $0x18] sm:$0xff] }
 0x2ff   :  { %4254 = vmatpush3.bf16.msra.mxu1 %v5407_v7 }
 0x300   :  { %4265 = vmatprep.subr.bf16.mxu1 %v5095_v18 }
 0x307   :  { %v4618_v28 = vpop.eup %4617 }
 0x308   :  { %v544_v31 = vsel %vm531_vm3, %v4618_v28, 0.0 }
 0x309   :  { %545 = vadd.xlane.f32.xlu1 %v544_v31 }
 0x30b   :  { %v4620_v33 = vpop.eup %4619 }
 0x30c   :  { %v547_v34 = vsel %vm531_vm3, %v4620_v33, 0.0 }
 0x30d   :  { %548 = vadd.xlane.f32.xlu1 %v547_v34 }
 0x368   :  { %v660_v36 = vpop.xlane.xlu0 %659 }
 0x369   :  { %v664_v37 = vsub.f32 %v656_v5, %v660_v36  ;;  %v5399_v5 = vsel %vm735_vm4, %v293_v0, 0 }
 0x36b   :  { %v666_v39 = vmul.f32 1.442695, %v664_v37 }
 0x36c   :  { %v663_v40 = vpop.xlane.xlu1 %662  ;;  %v830_v15 = vpop.permute.xlu0 %829 }
 0x36d   :  { %4621 = vpow2.f32 %v666_v39  ;;  %v665_v42 = vsub.f32 %v657_v10, %v663_v40  ;;  %v835_v20 = vsel %vm475_vm2, %v830_v15, 0 }
 0x36f   :  { %v668_v43 = vmul.f32 1.442695, %v665_v42 }
 0x371   :  { %4623 = vpow2.f32 %v668_v43 }
 0x37a   :  { %v4622_v44 = vpop.eup %4621 }
 0x37b   :  { %v670_v45 = vsel %vm531_vm3, %v4622_v44, 0.0 }
 0x37c   :  { %671 = vadd.xlane.f32.xlu1 %v670_v45 }
 0x37e   :  { %v4624_v46 = vpop.eup %4623 }
 0x37f   :  { %v673_v47 = vsel %vm531_vm3, %v4624_v46, 0.0 }
 0x380   :  { %674 = vadd.xlane.f32.xlu1 %v673_v47 }
 0x391   :  { %682 = vrot.lane.b32.xlu1 %v5383_v32, %s5097_s11 }
 0x392   :  { %v546_v48 = vpop.xlane.xlu1 %545 }
 0x393   :  { %4625 = vrcp.f32 %v546_v48 }
 0x395   :  { %827 = vrot.lane.b32.xlu1 %v5332_v41, %s5098_s16 }
 0x396   :  { %v549_v49 = vpop.xlane.xlu1 %548 }
 0x397   :  { %4627 = vrcp.f32 %v549_v49 }
 0x3a0   :  { %v4626_v50 = vpop.eup %4625 }
 0x3a1   :  { %v551_v53 = vmul.f32 %v4626_v50, %v4618_v28 }
 0x3a4   :  { %v4628_v51 = vpop.eup %4627 }
 0x3a5   :  { %v553_v56 = vmul.f32 %v4628_v51, %v4620_v33 }
 0x3a7   :  { %v554_v57 = vpack.c.bf16 %v553_v56, %v551_v53 }
 0x3a9   :  { %4238 = vmatmul.mubr.msk.bf16.vlgmr.msra.gmra.mxu0 %vm531_vm3, %v554_v57 }
 0x3aa   :  { %4249 = vmatprep.mubr.msk.bf16.mxu0 %vm5096_vm1, %v5095_v18 }
 0x405   :  { %v672_v58 = vpop.xlane.xlu1 %671 }
 0x406   :  { %4629 = vrcp.f32 %v672_v58 }
 0x409   :  { %v675_v59 = vpop.xlane.xlu1 %674 }
 0x40a   :  { %4631 = vrcp.f32 %v675_v59 }
 0x40d   :  { %v683_v60 = vpop.permute.xlu1 %682 }
 0x40e   :  { %4248 = vmatpush3.bf16.msra.mxu0 %v683_v60 }
 0x40f   :  { %4259 = vmatprep.subr.bf16.mxu0 %v5095_v18 }
 0x411   :  { %v828_v21 = vpop.permute.xlu1 %827 }
 0x413   :  { %v4630_v63 = vpop.eup %4629 }
 0x414   :  { %v677_v2 = vmul.f32 %v4630_v63, %v4622_v44 }
 0x417   :  { %v4632_v1 = vpop.eup %4631 }
 0x418   :  { %v679_v3 = vmul.f32 %v4632_v1, %v4624_v46 }
 0x41a   :  { %v680_v4 = vpack.c.bf16 %v679_v3, %v677_v2 }
 0x41c   :  { %4250 = vmatmul.mubr.msk.bf16.vlgmr.msra.gmra.mxu0 %vm531_vm3, %v680_v4 }
 0x41d   :  { %4260 = vmatpush3.bf16.msra.mxu0 %v5399_v5  ;;  %4261 = vmatprep.mubr.msk.bf16.mxu0 %vm5096_vm1, %v5095_v18 }
 0x41e   :  { %4271 = vmatprep.subr.bf16.mxu0 %v5095_v18 }
 0x469   :  { %v593_v8 = vpop.f32.mrf.mxu0 }
 0x46b   :  { %v4239_v9 = vpop.f32.mrf.mxu0 }
 0x46d   :  { %v596_v10 = vpop.f32.mrf.mxu0 }
 0x46e   :  { %v600_v11 = vpack.c.bf16 %v596_v10, %v593_v8 }
 0x46f   :  { %v4240_v12 = vpop.f32.mrf.mxu0 }
 0x470   :  { %4262 = vmatmul.mubr.msk.bf16.vlgmr.msra.gmra.mxu0 %vm475_vm2, %v600_v11 }
 0x471   :  { %4273 = vmatprep.mubr.msk.bf16.mxu0 %vm5096_vm1, %v5095_v18 }
 0x4dc   :  { %v722_v13 = vpop.f32.mrf.mxu0 }
 0x4de   :  { %v4251_v14 = vpop.f32.mrf.mxu0 }
 0x4e0   :  { %v725_v16 = vpop.f32.mrf.mxu0 }
 0x4e1   :  { %v729_v17 = vpack.c.bf16 %v725_v16, %v722_v13 }
 0x4e2   :  { %v4252_v19 = vpop.f32.mrf.mxu0 }
 0x4e3   :  { %4256 = vmatmul.mubr.msk.bf16.vlgmr.msra.gmra.mxu1 %vm475_vm2, %v729_v17 }
 0x4e4   :  { %4266 = vmatpush3.bf16.xpose.msra.mxu1 %v835_v20  ;;  %4267 = vmatprep.mubr.msk.bf16.mxu1 %vm5096_vm1, %v5095_v18 }
 0x4e5   :  { %4277 = vmatprep.subr.bf16.mxu1 %v5095_v18 }
 0x4eb   :  { %4268 = vmatmul.mubr.msk.bf16.vlgmr.msra.gmra.mxu1 %vm475_vm2, %v828_v21 }
 0x4ec   :  { %4279 = vmatprep.mubr.msk.bf16.mxu1 %vm5096_vm1, %v5095_v18 }
 0x530   :  { %v5422_v22 = vpop.f32.mrf.mxu0 }
 0x532   :  { %v4263_v23 = vpop.f32.mrf.mxu0 }
 0x534   :  { %v5424_v24 = vpop.f32.mrf.mxu0 }
 0x536   :  { %v4264_v25 = vpop.f32.mrf.mxu0 }
 0x5a3   :  { %v5426_v26 = vpop.f32.mrf.mxu1 }
 0x5a5   :  { %v4257_v28 = vpop.f32.mrf.mxu1 }
 0x5a7   :  { %v5428_v30 = vpop.f32.mrf.mxu1 }
 0x5a9   :  { %v4258_v31 = vpop.f32.mrf.mxu1 }
 0x5ab   :  { %v871_v33 = vpop.f32.mrf.mxu1 }
 0x5ac   :  { %v878_v34 = vmul.f32 0.35355338, %v871_v33 }
 0x5ad   :  { %v4269_v36 = vpop.f32.mrf.mxu1 }
 0x5ae   :  { %v880_v37 = vadd.f32 %v878_v34, %v5368_v55 }
 0x5af   :  { %v874_v39 = vpop.f32.mrf.mxu1 }
 0x5b0   :  { %v879_v40 = vmul.f32 0.35355338, %v874_v39  ;;  %v882_v42 = vsel %vm531_vm3, %v880_v37, -inf }
 0x5b1   :  { %883 = vmax.xlane.f32.xlu1 %v882_v42  ;;  %v4270_v43 = vpop.f32.mrf.mxu1 }
 0x5b2   :  { %v881_v44 = vadd.f32 %v879_v40, %v5368_v55 }
 0x5b4   :  { %v885_v45 = vsel %vm531_vm3, %v881_v44, -inf }
 0x5b5   :  { %886 = vmax.xlane.f32.xlu0 %v885_v45  ;;  %v821_v45 = vadd.f32 %v5422_v22, %v5426_v26  ;;  %v1185_v26 = vsel %vm475_vm2, %v5324_v35, 0 }
 0x5cb   :  { %905 = vrot.lane.b32.xlu0 %v5383_v32, %s5098_s16 }
 0x63a   :  { %v884_v46 = vpop.xlane.xlu1 %883 }
 0x63b   :  { %v888_v47 = vsub.f32 %v880_v37, %v884_v46 }
 0x63d   :  { %v890_v48 = vmul.f32 1.442695, %v888_v47 }
 0x63e   :  { %v887_v49 = vpop.xlane.xlu0 %886 }
 0x63f   :  { %4633 = vpow2.f32 %v890_v48  ;;  %v889_v50 = vsub.f32 %v881_v44, %v887_v49  ;;  %v824_v49 = vadd.f32 %v5424_v24, %v5428_v30 }
 0x641   :  { %v892_v51 = vmul.f32 1.442695, %v889_v50 }
 0x642   :  { %v906_v53 = vpop.permute.xlu0 %905 }
 0x643   :  { %4635 = vpow2.f32 %v892_v51  ;;  %4272 = vmatpush3.bf16.msra.mxu0 %v906_v53 }
 0x644   :  { %4283 = vmatprep.subr.bf16.mxu0 %v5095_v18 }
 0x64c   :  { %v4634_v56 = vpop.eup %4633 }
 0x64d   :  { %v894_v57 = vsel %vm531_vm3, %v4634_v56, 0.0 }
 0x64e   :  { %895 = vadd.xlane.f32.xlu1 %v894_v57 }
 0x650   :  { %v4636_v58 = vpop.eup %4635 }
 0x651   :  { %v897_v59 = vsel %vm531_vm3, %v4636_v58, 0.0 }
 0x652   :  { %898 = vadd.xlane.f32.xlu1 %v897_v59 }
 0x663   :  { %1004 = vrot.lane.b32.xlu1 %v5326_v38, %s5099_s28 }
 0x667   :  { %1002 = vrot.lane.b32.xlu1 %v5332_v41, %s5099_s28  ;;  %v291_v41 = vld [vmem:[#allocation11 + $0x10] sm:$0xff] }
 0x668   :  { %v5451_v8 = vpack.c.bf16 %v292_v6, %v291_v41 }
 0x66a   :  { %v5455_v9 = vsel %vm735_vm4, %v5451_v8, 0 }
 0x66b   :  { %4278 = vmatpush3.bf16.msra.mxu1 %v5455_v9 }
 0x66c   :  { %4289 = vmatprep.subr.bf16.mxu1 %v5095_v18 }
 0x6d7   :  { %v896_v60 = vpop.xlane.xlu1 %895 }
 0x6d8   :  { %4637 = vrcp.f32 %v896_v60 }
 0x6db   :  { %v899_v61 = vpop.xlane.xlu1 %898 }
 0x6dc   :  { %4639 = vrcp.f32 %v899_v61 }
 0x6df   :  { %v1005_v2 = vpop.permute.xlu1 %1004 }
 0x6e0   :  { %v1010_v4 = vsel %vm475_vm2, %v1005_v2, 0 }
 0x6e3   :  { %v1003_v38 = vpop.permute.xlu1 %1002 }
 0x6e5   :  { %v4638_v62 = vpop.eup %4637 }
 0x6e6   :  { %v901_v0 = vmul.f32 %v4638_v62, %v4634_v56 }
 0x6e9   :  { %v4640_v63 = vpop.eup %4639 }
 0x6ea   :  { %v903_v1 = vmul.f32 %v4640_v63, %v4636_v58  ;;  %v1129_v63 = vrot.slane %v5451_v8, 4 }
 0x6ec   :  { %v904_v3 = vpack.c.bf16 %v903_v1, %v901_v0  ;;  %v5502_v0 = vsel %vm735_vm4, %v1129_v63, 0 }
 0x6ee   :  { %4274 = vmatmul.mubr.msk.bf16.vlgmr.msra.gmra.mxu0 %vm531_vm3, %v904_v3  ;;  %v1232_v3 = vsub.s32 1, %v5362_v52 }
 0x6ef   :  { %4284 = vmatpush3.bf16.xpose.msra.mxu0 %v1010_v4  ;;  %4285 = vmatprep.mubr.msk.bf16.mxu0 %vm5096_vm1, %v5095_v18 }
 0x6f0   :  { %4295 = vmatprep.subr.bf16.mxu0 %v5095_v18  ;;  %v5509_v41 = vrot.slane %v5365_v54, %v1232_v3 }
 0x6f6   :  { %4286 = vmatmul.mubr.msk.bf16.vlgmr.msra.gmra.mxu0 %vm475_vm2, %v1003_v38 }
 0x6f7   :  { %4297 = vmatprep.mubr.msk.bf16.mxu0 %vm5096_vm1, %v5095_v18  ;;  %4296 = vmatpush3.bf16.msra.mxu0 %v5502_v0 }
 0x6f8   :  { %4307 = vmatprep.subr.bf16.mxu0 %v5095_v18 }
 0x7ae   :  { %v945_v10 = vpop.f32.mrf.mxu0 }
 0x7b0   :  { %v4275_v11 = vpop.f32.mrf.mxu0 }
 0x7b2   :  { %v948_v12 = vpop.f32.mrf.mxu0 }
 0x7b3   :  { %v952_v13 = vpack.c.bf16 %v948_v12, %v945_v10 }
 0x7b4   :  { %v4276_v14 = vpop.f32.mrf.mxu0 }
 0x7b5   :  { %4280 = vmatmul.mubr.msk.bf16.vlgmr.msra.gmra.mxu1 %vm475_vm2, %v952_v13 }
 0x7b6   :  { %v1046_v15 = vpop.f32.mrf.mxu0  ;;  %4291 = vmatprep.mubr.msk.bf16.mxu1 %vm5096_vm1, %v5095_v18 }
 0x7b7   :  { %v1053_v16 = vmul.f32 0.35355338, %v1046_v15 }
 0x7b8   :  { %v4287_v17 = vpop.f32.mrf.mxu0 }
 0x7b9   :  { %v1055_v19 = vadd.f32 %v1053_v16, %v5368_v55 }
 0x7ba   :  { %v1049_v20 = vpop.f32.mrf.mxu0 }
 0x7bb   :  { %v1054_v21 = vmul.f32 0.35355338, %v1049_v20  ;;  %v1057_v23 = vsel %vm531_vm3, %v1055_v19, -inf }
 0x7bc   :  { %1058 = vmax.xlane.f32.xlu0 %v1057_v23  ;;  %v4288_v25 = vpop.f32.mrf.mxu0 }
 0x7bd   :  { %v1056_v28 = vadd.f32 %v1054_v21, %v5368_v55 }
 0x7bf   :  { %v1060_v31 = vsel %vm531_vm3, %v1056_v28, -inf }
 0x7c0   :  { %1061 = vmax.xlane.f32.xlu1 %v1060_v31 }
 0x7d1   :  { %1080 = vrot.lane.b32.xlu1 %v5383_v32, %s5099_s28 }
 0x7d5   :  { %1306 = vrot.lane.b32.xlu1 %v5322_v27, %s5097_s11 }
 0x845   :  { %v1059_v33 = vpop.xlane.xlu0 %1058 }
 0x846   :  { %v1063_v34 = vsub.f32 %v1055_v19, %v1059_v33 }
 0x848   :  { %v1065_v36 = vmul.f32 1.442695, %v1063_v34 }
 0x849   :  { %v1062_v37 = vpop.xlane.xlu1 %1061 }
 0x84a   :  { %4641 = vpow2.f32 %v1065_v36  ;;  %v1064_v39 = vsub.f32 %v1056_v28, %v1062_v37 }
 0x84c   :  { %v1067_v40 = vmul.f32 1.442695, %v1064_v39 }
 0x84d   :  { %v1081_v42 = vpop.permute.xlu1 %1080 }
 0x84e   :  { %4643 = vpow2.f32 %v1067_v40  ;;  %4290 = vmatpush3.bf16.msra.mxu1 %v1081_v42 }
 0x84f   :  { %4301 = vmatprep.subr.bf16.mxu1 %v5095_v18 }
 0x851   :  { %v1307_v62 = vpop.permute.xlu1 %1306 }
 0x857   :  { %v4642_v55 = vpop.eup %4641 }
 0x858   :  { %v1069_v43 = vsel %vm531_vm3, %v4642_v55, 0.0 }
 0x859   :  { %1070 = vadd.xlane.f32.xlu0 %v1069_v43 }
 0x85b   :  { %v4644_v32 = vpop.eup %4643 }
 0x85c   :  { %v1072_v44 = vsel %vm531_vm3, %v4644_v32, 0.0 }
 0x85d   :  { %1073 = vadd.xlane.f32.xlu0 %v1072_v44 }
 0x873   :  { %1309 = vrot.lane.b32.xlu0 %v5324_v35, %s5097_s11 }
 0x875   :  { %v993_v46 = vpop.f32.mrf.mxu1 }
 0x876   :  { %v5477_v47 = vadd.f32 %v993_v46, %v821_v45 }
 0x877   :  { %v4281_v48 = vpop.f32.mrf.mxu1 }
 0x879   :  { %v996_v50 = vpop.f32.mrf.mxu1 }
 0x87a   :  { %v5481_v51 = vadd.f32 %v996_v50, %v824_v49 }
 0x87b   :  { %v4282_v53 = vpop.f32.mrf.mxu1 }
 0x8e2   :  { %v1071_v56 = vpop.xlane.xlu0 %1070 }
 0x8e3   :  { %4645 = vrcp.f32 %v1071_v56 }
 0x8e6   :  { %v1074_v57 = vpop.xlane.xlu0 %1073 }
 0x8e7   :  { %4647 = vrcp.f32 %v1074_v57 }
 0x8ea   :  { %v1310_v24 = vpop.permute.xlu0 %1309 }
 0x8eb   :  { %v1315_v30 = vsel %vm475_vm2, %v1310_v24, 0 }
 0x8f0   :  { %v4646_v58 = vpop.eup %4645 }
 0x8f1   :  { %v1076_v60 = vmul.f32 %v4646_v58, %v4642_v55 }
 0x8f4   :  { %v4648_v59 = vpop.eup %4647 }
 0x8f5   :  { %v1078_v61 = vmul.f32 %v4648_v59, %v4644_v32 }
 0x8f7   :  { %v1079_v22 = vpack.c.bf16 %v1078_v61, %v1076_v60 }
 0x8f9   :  { %4292 = vmatmul.mubr.msk.bf16.vlgmr.msra.gmra.mxu1 %vm531_vm3, %v1079_v22 }
 0x8fa   :  { %4302 = vmatpush3.bf16.xpose.msra.mxu1 %v1185_v26  ;;  %4303 = vmatprep.mubr.msk.bf16.mxu1 %vm5096_vm1, %v5095_v18 }
 0x8fb   :  { %4313 = vmatprep.subr.bf16.mxu1 %v5095_v18 }
 0x901   :  { %4304 = vmatmul.mubr.msk.bf16.vlgmr.msra.gmra.mxu1 %vm475_vm2, %v5322_v27 }
 0x902   :  { %4314 = vmatpush3.bf16.xpose.msra.mxu1 %v1315_v30  ;;  %4315 = vmatprep.mubr.msk.bf16.mxu1 %vm5096_vm1, %v5095_v18 }
 0x903   :  { %4325 = vmatprep.subr.bf16.mxu1 %v5095_v18 }
 0x909   :  { %4316 = vmatmul.mubr.msk.bf16.vlgmr.msra.gmra.mxu1 %vm475_vm2, %v1307_v62 }
 0x90a   :  { %4326 = vmatpush3.bf16.msra.mxu1 %v5407_v7  ;;  %4327 = vmatprep.mubr.msk.bf16.mxu1 %vm5096_vm1, %v5095_v18 }
 0x90b   :  { %4337 = vmatprep.subr.bf16.mxu1 %v5095_v18 }
 0x9b9   :  { %v1120_v1 = vpop.f32.mrf.mxu1 }
 0x9bb   :  { %v4293_v2 = vpop.f32.mrf.mxu1 }
 0x9bd   :  { %v1123_v4 = vpop.f32.mrf.mxu1 }
 0x9be   :  { %v1127_v7 = vpack.c.bf16 %v1123_v4, %v1120_v1 }
 0x9bf   :  { %v4294_v38 = vpop.f32.mrf.mxu1 }
 0x9c0   :  { %4298 = vmatmul.mubr.msk.bf16.vlgmr.msra.gmra.mxu0 %vm475_vm2, %v1127_v7 }
 0x9c1   :  { %4308 = vmatpush3.bf16.msra.mxu0 %v5380_v29  ;;  %v1221_v6 = vpop.f32.mrf.mxu1  ;;  %4309 = vmatprep.mubr.msk.bf16.mxu0 %vm5096_vm1, %v5095_v18 }
 0x9c2   :  { %v1228_v8 = vmul.f32 0.35355338, %v1221_v6  ;;  %4319 = vmatprep.subr.bf16.mxu0 %v5095_v18 }
 0x9c3   :  { %v4305_v10 = vpop.f32.mrf.mxu1 }
 0x9c4   :  { %v1234_v52 = vadd.f32 %v5509_v41, %v1228_v8 }
 0x9c5   :  { %v1224_v11 = vpop.f32.mrf.mxu1 }
 0x9c6   :  { %v1229_v12 = vmul.f32 0.35355338, %v1224_v11  ;;  %v1236_v13 = vsel %vm531_vm3, %v1234_v52, -inf }
 0x9c7   :  { %1237 = vmax.xlane.f32.xlu1 %v1236_v13  ;;  %v4306_v14 = vpop.f32.mrf.mxu1 }
 0x9c8   :  { %v1235_v54 = vadd.f32 %v5509_v41, %v1229_v12 }
 0x9c9   :  { %v1351_v15 = vpop.f32.mrf.mxu1 }
 0x9ca   :  { %v1358_v16 = vmul.f32 0.35355338, %v1351_v15  ;;  %v1239_v17 = vsel %vm531_vm3, %v1235_v54, -inf }
 0x9cb   :  { %1240 = vmax.xlane.f32.xlu0 %v1239_v17  ;;  %v4317_v19 = vpop.f32.mrf.mxu1 }
 0x9cc   :  { %v1360_v20 = vadd.f32 %v1358_v16, %v5509_v41 }
 0x9cd   :  { %v1354_v21 = vpop.f32.mrf.mxu1 }
 0x9ce   :  { %v1359_v23 = vmul.f32 0.35355338, %v1354_v21  ;;  %v1362_v25 = vsel %vm531_vm3, %v1360_v20, -inf }
 0x9cf   :  { %1363 = vmax.xlane.f32.xlu0 %v1362_v25  ;;  %v4318_v28 = vpop.f32.mrf.mxu1 }
 0x9d0   :  { %v1361_v31 = vadd.f32 %v1359_v23, %v5509_v41 }
 0x9d2   :  { %v1365_v33 = vsel %vm531_vm3, %v1361_v31, -inf }
 0x9d3   :  { %1366 = vmax.xlane.f32.xlu1 %v1365_v33 }
 0xa50   :  { %v1238_v34 = vpop.xlane.xlu1 %1237 }
 0xa51   :  { %v1242_v36 = vsub.f32 %v1234_v52, %v1238_v34 }
 0xa53   :  { %v1244_v37 = vmul.f32 1.442695, %v1242_v36 }
 0xa54   :  { %v1241_v39 = vpop.xlane.xlu0 %1240 }
 0xa55   :  { %4649 = vpow2.f32 %v1244_v37  ;;  %v1243_v40 = vsub.f32 %v1235_v54, %v1241_v39 }
 0xa57   :  { %v1246_v42 = vmul.f32 1.442695, %v1243_v40 }
 0xa58   :  { %v1364_v55 = vpop.xlane.xlu0 %1363 }
 0xa59   :  { %4651 = vpow2.f32 %v1246_v42  ;;  %v1368_v43 = vsub.f32 %v1360_v20, %v1364_v55 }
 0xa5b   :  { %v1370_v32 = vmul.f32 1.442695, %v1368_v43 }
 0xa5c   :  { %v1367_v44 = vpop.xlane.xlu1 %1366 }
 0xa5d   :  { %4653 = vpow2.f32 %v1370_v32  ;;  %v1369_v45 = vsub.f32 %v1361_v31, %v1367_v44 }
 0xa5f   :  { %v1372_v46 = vmul.f32 1.442695, %v1369_v45 }
 0xa61   :  { %4655 = vpow2.f32 %v1372_v46 }
 0xa62   :  { %v4650_v48 = vpop.eup %4649 }
 0xa63   :  { %v1248_v49 = vsel %vm531_vm3, %v4650_v48, 0.0 }
 0xa64   :  { %1249 = vadd.xlane.f32.xlu0 %v1248_v49 }
 0xa66   :  { %v4652_v50 = vpop.eup %4651 }
 0xa67   :  { %v1251_v53 = vsel %vm531_vm3, %v4652_v50, 0.0 }
 0xa68   :  { %1252 = vadd.xlane.f32.xlu1 %v1251_v53 }
 0xa6a   :  { %v4654_v56 = vpop.eup %4653 }
 0xa6b   :  { %v1374_v57 = vsel %vm531_vm3, %v4654_v56, 0.0 }
 0xa6c   :  { %1375 = vadd.xlane.f32.xlu0 %v1374_v57 }
 0xa6e   :  { %v4656_v58 = vpop.eup %4655 }
 0xa6f   :  { %v1377_v59 = vsel %vm531_vm3, %v4656_v58, 0.0 }
 0xa70   :  { %1378 = vadd.xlane.f32.xlu1 %v1377_v59 }
 0xa80   :  { %v1170_v60 = vpop.f32.mrf.mxu0 }
 0xa81   :  { %v5528_v61 = vadd.f32 %v1170_v60, %v5477_v47  ;;  %1524 = vrot.lane.b32.xlu1 %v5324_v35, %s5098_s16 }
 0xa82   :  { %v4299_v22 = vpop.f32.mrf.mxu0  ;;  %1386 = vrot.lane.b32.xlu0 %v5380_v29, %s5097_s11 }
 0xa84   :  { %v1173_v26 = vpop.f32.mrf.mxu0 }
 0xa85   :  { %v5535_v24 = vadd.f32 %v1173_v26, %v5481_v51  ;;  %1522 = vrot.lane.b32.xlu1 %v5322_v27, %s5098_s16 }
 0xa86   :  { %v4300_v30 = vpop.f32.mrf.mxu0 }
 0xaed   :  { %v1250_v62 = vpop.xlane.xlu0 %1249 }
 0xaee   :  { %4657 = vrcp.f32 %v1250_v62 }
 0xaf1   :  { %v1253_v63 = vpop.xlane.xlu1 %1252 }
 0xaf2   :  { %4659 = vrcp.f32 %v1253_v63 }
 0xaf5   :  { %v1376_v47 = vpop.xlane.xlu0 %1375 }
 0xaf6   :  { %4661 = vrcp.f32 %v1376_v47 }
 0xaf9   :  { %v1379_v1 = vpop.xlane.xlu1 %1378  ;;  %v1387_v6 = vpop.permute.xlu0 %1386 }
 0xafa   :  { %4663 = vrcp.f32 %v1379_v1 }
 0xafb   :  { %v4658_v2 = vpop.eup %4657 }
 0xafc   :  { %v1255_v4 = vmul.f32 %v4658_v2, %v4650_v48 }
 0xafd   :  { %v1525_v19 = vpop.permute.xlu1 %1524 }
 0xafe   :  { %v1530_v23 = vsel %vm475_vm2, %v1525_v19, 0 }
 0xaff   :  { %v4660_v3 = vpop.eup %4659 }
 0xb00   :  { %v1257_v7 = vmul.f32 %v4660_v3, %v4652_v50 }
 0xb01   :  { %v1523_v25 = vpop.permute.xlu1 %1522 }
 0xb02   :  { %v1258_v38 = vpack.c.bf16 %v1257_v7, %v1255_v4 }
 0xb03   :  { %v4662_v51 = vpop.eup %4661 }
 0xb04   :  { %4310 = vmatmul.mubr.msk.bf16.vlgmr.msra.gmra.mxu0 %vm531_vm3, %v1258_v38  ;;  %v1381_v10 = vmul.f32 %v4662_v51, %v4654_v56 }
 0xb05   :  { %4320 = vmatpush3.bf16.msra.mxu0 %v1387_v6  ;;  %4321 = vmatprep.mubr.msk.bf16.mxu0 %vm5096_vm1, %v5095_v18 }
 0xb06   :  { %4331 = vmatprep.subr.bf16.mxu0 %v5095_v18 }
 0xb07   :  { %v4664_v8 = vpop.eup %4663 }
 0xb08   :  { %v1383_v52 = vmul.f32 %v4664_v8, %v4656_v58 }
 0xb0a   :  { %v1384_v11 = vpack.c.bf16 %v1383_v52, %v1381_v10 }
 0xb0c   :  { %4322 = vmatmul.mubr.msk.bf16.vlgmr.msra.gmra.mxu0 %vm531_vm3, %v1384_v11 }
 0xb0d   :  { %4332 = vmatpush3.bf16.msra.mxu0 %v5399_v5  ;;  %4333 = vmatprep.mubr.msk.bf16.mxu0 %vm5096_vm1, %v5095_v18 }
 0xb0e   :  { %4343 = vmatprep.subr.bf16.mxu0 %v5095_v18 }
 0xbc4   :  { %v1297_v12 = vpop.f32.mrf.mxu0 }
 0xbc6   :  { %v4311_v13 = vpop.f32.mrf.mxu0 }
 0xbc8   :  { %v1300_v14 = vpop.f32.mrf.mxu0 }
 0xbc9   :  { %v1304_v54 = vpack.c.bf16 %v1300_v14, %v1297_v12 }
 0xbca   :  { %v4312_v15 = vpop.f32.mrf.mxu0 }
 0xbcb   :  { %4334 = vmatmul.mubr.msk.bf16.vlgmr.msra.gmra.mxu0 %vm475_vm2, %v1304_v54 }
 0xbcc   :  { %v1426_v16 = vpop.f32.mrf.mxu0  ;;  %4345 = vmatprep.mubr.msk.bf16.mxu0 %vm5096_vm1, %v5095_v18 }
 0xbce   :  { %v4323_v17 = vpop.f32.mrf.mxu0 }
 0xbd0   :  { %v1429_v20 = vpop.f32.mrf.mxu0 }
 0xbd1   :  { %v1433_v5 = vpack.c.bf16 %v1429_v20, %v1426_v16 }
 0xbd2   :  { %v4324_v21 = vpop.f32.mrf.mxu0 }
 0xbd3   :  { %4328 = vmatmul.mubr.msk.bf16.vlgmr.msra.gmra.mxu1 %vm475_vm2, %v1433_v5 }
 0xbd4   :  { %4338 = vmatpush3.bf16.xpose.msra.mxu1 %v1530_v23  ;;  %4339 = vmatprep.mubr.msk.bf16.mxu1 %vm5096_vm1, %v5095_v18 }
 0xbd5   :  { %4349 = vmatprep.subr.bf16.mxu1 %v5095_v18 }
 0xbdb   :  { %4340 = vmatmul.mubr.msk.bf16.vlgmr.msra.gmra.mxu1 %vm475_vm2, %v1523_v25 }
 0xbdc   :  { %4350 = vmatpush3.bf16.msra.mxu1 %v5455_v9  ;;  %4351 = vmatprep.mubr.msk.bf16.mxu1 %vm5096_vm1, %v5095_v18 }
 0xbdd   :  { %4361 = vmatprep.subr.bf16.mxu1 %v5095_v18 }
 0xc8b   :  { %v1515_v28 = vpop.f32.mrf.mxu0 }
 0xc8d   :  { %v4335_v31 = vpop.f32.mrf.mxu0 }
 0xc8f   :  { %v1518_v33 = vpop.f32.mrf.mxu0 }
 0xc91   :  { %v4336_v34 = vpop.f32.mrf.mxu0 }
 0xc92   :  { %v3989_v34 = vld [vmem:[#allocation13] ss:$0 sm:$0xff] }
 0xc93   :  { %v1471_v36 = vpop.f32.mrf.mxu1 }
 0xc94   :  { %v5561_v37 = vadd.f32 %v1515_v28, %v1471_v36 }
 0xc95   :  { %v4329_v39 = vpop.f32.mrf.mxu1 }
 0xc96   :  { %v1872_v39 = vadd.f32 %v3989_v34, %v5528_v61 }
 0xc97   :  { %v1474_v40 = vpop.f32.mrf.mxu1 }
 0xc98   :  { %v5563_v42 = vadd.f32 %v1518_v33, %v1474_v40 }
 0xc99   :  { %v4330_v55 = vpop.f32.mrf.mxu1 }
 0xc9b   :  { %v1566_v43 = vpop.f32.mrf.mxu1 }
 0xc9c   :  { %v1573_v32 = vmul.f32 0.35355338, %v1566_v43 }
 0xc9d   :  { %v4341_v9 = vpop.f32.mrf.mxu1 }
 0xc9e   :  { %v1575_v44 = vadd.f32 %v1573_v32, %v5509_v41  ;;  %v4733_v32 = vld [vmem:[#allocation2] sm:$0xff] }
 0xc9f   :  { %v1569_v45 = vpop.f32.mrf.mxu1  ;;  %v1876_v9 = vadd.f32 %v4733_v32, %v1872_v39 }
 0xca0   :  { %v1574_v46 = vmul.f32 0.35355338, %v1569_v45  ;;  %v1577_v48 = vsel %vm531_vm3, %v1575_v44, -inf  ;;  %v4734_v45 = vld [vmem:[#allocation2 + $0x8] sm:$0xff] }
 0xca1   :  { %1578 = vmax.xlane.f32.xlu0 %v1577_v48  ;;  %v4342_v49 = vpop.f32.mrf.mxu1 }
 0xca2   :  { %v1576_v50 = vadd.f32 %v1574_v46, %v5509_v41 }
 0xca4   :  { %v1580_v53 = vsel %vm531_vm3, %v1576_v50, -inf }
 0xca5   :  { %1581 = vmax.xlane.f32.xlu1 %v1580_v53 }
 0xcb6   :  { %1600 = vrot.lane.b32.xlu1 %v5380_v29, %s5098_s16 }
 0xcba   :  { %1694 = vrot.lane.b32.xlu1 %v5322_v27, %s5099_s28 }
 0xd2a   :  { %v1579_v56 = vpop.xlane.xlu0 %1578 }
 0xd2b   :  { %v1583_v57 = vsub.f32 %v1575_v44, %v1579_v56  ;;  %v1882_v44 = vsel %vm307_vm0, %v1876_v9, 0.0 }
 0xd2d   :  { %v1585_v58 = vmul.f32 1.442695, %v1583_v57 }
 0xd2e   :  { %v1582_v59 = vpop.xlane.xlu1 %1581 }
 0xd2f   :  { %4665 = vpow2.f32 %v1585_v58  ;;  %v1584_v60 = vsub.f32 %v1576_v50, %v1582_v59 }
 0xd31   :  { %v1587_v22 = vmul.f32 1.442695, %v1584_v60 }
 0xd32   :  { %v1601_v26 = vpop.permute.xlu1 %1600 }
 0xd33   :  { %4667 = vpow2.f32 %v1587_v22  ;;  %4344 = vmatpush3.bf16.msra.mxu0 %v1601_v26 }
 0xd34   :  { %4355 = vmatprep.subr.bf16.mxu0 %v5095_v18 }
 0xd3c   :  { %v4666_v30 = vpop.eup %4665 }
 0xd3d   :  { %v1589_v62 = vsel %vm531_vm3, %v4666_v30, 0.0 }
 0xd3e   :  { %1590 = vadd.xlane.f32.xlu0 %v1589_v62 }
 0xd40   :  { %v4668_v63 = vpop.eup %4667 }
 0xd41   :  { %v1592_v47 = vsel %vm531_vm3, %v4668_v63, 0.0 }
 0xd42   :  { %1593 = vadd.xlane.f32.xlu0 %v1592_v47 }
 0xd58   :  { %1696 = vrot.lane.b32.xlu0 %v5324_v35, %s5099_s28  ;;  %v1695_v35 = vpop.permute.xlu1 %1694 }
 0xdc7   :  { %v1591_v27 = vpop.xlane.xlu0 %1590 }
 0xdc8   :  { %4669 = vrcp.f32 %v1591_v27 }
 0xdcb   :  { %v1594_v1 = vpop.xlane.xlu0 %1593 }
 0xdcc   :  { %4671 = vrcp.f32 %v1594_v1 }
 0xdcf   :  { %v1697_v38 = vpop.permute.xlu0 %1696 }
 0xdd0   :  { %v1702_v51 = vsel %vm475_vm2, %v1697_v38, 0 }
 0xdd5   :  { %v4670_v2 = vpop.eup %4669 }
 0xdd6   :  { %v1596_v4 = vmul.f32 %v4670_v2, %v4666_v30 }
 0xdd9   :  { %v4672_v3 = vpop.eup %4671 }
 0xdda   :  { %v1598_v7 = vmul.f32 %v4672_v3, %v4668_v63 }
 0xddc   :  { %v1599_v6 = vpack.c.bf16 %v1598_v7, %v1596_v4 }
 0xdde   :  { %4346 = vmatmul.mubr.msk.bf16.vlgmr.msra.gmra.mxu0 %vm531_vm3, %v1599_v6 }
 0xddf   :  { %4356 = vmatpush3.bf16.xpose.msra.mxu0 %v1702_v51  ;;  %4357 = vmatprep.mubr.msk.bf16.mxu0 %vm5096_vm1, %v5095_v18 }
 0xde0   :  { %4367 = vmatprep.subr.bf16.mxu0 %v5095_v18 }
 0xde6   :  { %4358 = vmatmul.mubr.msk.bf16.vlgmr.msra.gmra.mxu0 %vm475_vm2, %v1695_v35  ;;  %v4735_v35 = vld [vmem:[#allocation2 + $0x10] sm:$0xff] }
 0xde7   :  { %4368 = vmatpush3.bf16.msra.mxu0 %v5502_v0  ;;  %4369 = vmatprep.mubr.msk.bf16.mxu0 %vm5096_vm1, %v5095_v18 }
 0xe9e   :  { %v1640_v8 = vpop.f32.mrf.mxu0 }
 0xea0   :  { %v4347_v10 = vpop.f32.mrf.mxu0 }
 0xea2   :  { %v1643_v52 = vpop.f32.mrf.mxu0 }
 0xea3   :  { %v1647_v11 = vpack.c.bf16 %v1643_v52, %v1640_v8 }
 0xea4   :  { %v4348_v12 = vpop.f32.mrf.mxu0 }
 0xea5   :  { %4352 = vmatmul.mubr.msk.bf16.vlgmr.msra.gmra.mxu1 %vm475_vm2, %v1647_v11 }
 0xea6   :  { %v1738_v13 = vpop.f32.mrf.mxu0  ;;  %4363 = vmatprep.mubr.msk.bf16.mxu1 %vm5096_vm1, %v5095_v18 }
 0xea7   :  { %v1745_v14 = vmul.f32 0.35355338, %v1738_v13 }
 0xea8   :  { %v4359_v54 = vpop.f32.mrf.mxu0 }
 0xea9   :  { %v1747_v15 = vadd.f32 %v1745_v14, %v5509_v41  ;;  %v4736_v14 = vld [vmem:[#allocation2 + $0x18] sm:$0xff] }
 0xeaa   :  { %v1741_v16 = vpop.f32.mrf.mxu0 }
 0xeab   :  { %v1746_v0 = vmul.f32 0.35355338, %v1741_v16  ;;  %v1749_v17 = vsel %vm531_vm3, %v1747_v15, -inf }
 0xeac   :  { %1750 = vmax.xlane.f32.xlu1 %v1749_v17  ;;  %v4360_v19 = vpop.f32.mrf.mxu0 }
 0xead   :  { %v1748_v20 = vadd.f32 %v1746_v0, %v5509_v41  ;;  %v1873_v41 = vadd.f32 %v3989_v34, %v5535_v24 }
 0xeaf   :  { %v1752_v5 = vsel %vm531_vm3, %v1748_v20, -inf  ;;  %v1877_v46 = vadd.f32 %v4734_v45, %v1873_v41 }
 0xeb0   :  { %1753 = vmax.xlane.f32.xlu0 %v1752_v5 }
 0xeb1   :  { %v1885_v48 = vsel %vm307_vm0, %v1877_v46, 0.0 }
 0xf35   :  { %v1751_v21 = vpop.xlane.xlu1 %1750 }
 0xf36   :  { %v1755_v23 = vsub.f32 %v1747_v15, %v1751_v21 }
 0xf38   :  { %v1757_v25 = vmul.f32 1.442695, %v1755_v23 }
 0xf39   :  { %v1754_v28 = vpop.xlane.xlu0 %1753 }
 0xf3a   :  { %4673 = vpow2.f32 %v1757_v25  ;;  %v1756_v31 = vsub.f32 %v1748_v20, %v1754_v28 }
 0xf3c   :  { %v1759_v33 = vmul.f32 1.442695, %v1756_v31 }
 0xf3e   :  { %4675 = vpow2.f32 %v1759_v33 }
 0xf47   :  { %v4674_v36 = vpop.eup %4673 }
 0xf48   :  { %v1761_v40 = vsel %vm531_vm3, %v4674_v36, 0.0 }
 0xf49   :  { %1762 = vadd.xlane.f32.xlu0 %v1761_v40 }
 0xf4b   :  { %v4676_v55 = vpop.eup %4675 }
 0xf4c   :  { %v1764_v43 = vsel %vm531_vm3, %v4676_v55, 0.0 }
 0xf4d   :  { %1765 = vadd.xlane.f32.xlu1 %v1764_v43 }
 0xf51   :  { %1883 = vadd.xlane.f32.xlu1 %v1882_v44 }
 0xf55   :  { %1886 = vadd.xlane.f32.xlu1 %v1885_v48 }
 0xf5f   :  { %1772 = vrot.lane.b32.xlu0 %v5380_v29, %s5099_s28 }
 0xf65   :  { %v1685_v61 = vpop.f32.mrf.mxu1 }
 0xf66   :  { %v1692_v49 = vadd.f32 %v1685_v61, %v5561_v37 }
 0xf67   :  { %v4353_v24 = vpop.f32.mrf.mxu1 }
 0xf68   :  { %v3991_v24 = vld [vmem:[#allocation16] ss:$0 sm:$0xff] }
 0xf69   :  { %v1688_v50 = vpop.f32.mrf.mxu1 }
 0xf6a   :  { %v1693_v53 = vadd.f32 %v1688_v50, %v5563_v42 }
 0xf6b   :  { %v4354_v56 = vpop.f32.mrf.mxu1 }
 0xfd2   :  { %v1763_v57 = vpop.xlane.xlu0 %1762 }
 0xfd3   :  { %4677 = vrcp.f32 %v1763_v57 }
 0xfd6   :  { %v1766_v58 = vpop.xlane.xlu1 %1765  ;;  %v1773_v59 = vpop.permute.xlu0 %1772 }
 0xfd7   :  { %4679 = vrcp.f32 %v1766_v58  ;;  %4362 = vmatpush3.bf16.msra.mxu1 %v1773_v59  ;;  %v1959_v58 = vld [vmem:[#allocation17 + $0x10] sm:$0xff]  ;;  %v1960_v59 = vld [vmem:[#allocation17 + $0x18] sm:$0xff] }
 0xfda   :  { %v1884_v42 = vpop.xlane.xlu1 %1883 }
 0xfdb   :  { %v1895_v4 = vmul.f32 0.03125, %v1884_v42 }
 0xfdd   :  { %v1899_v52 = vsub.f32 %v1876_v9, %v1895_v4 }
 0xfde   :  { %v1887_v38 = vpop.xlane.xlu1 %1886 }
 0xfdf   :  { %v1896_v11 = vmul.f32 0.03125, %v1887_v38  ;;  %v1903_v0 = vmul.f32 %v1899_v52, %v1899_v52 }
 0xfe0   :  { %v4678_v60 = vpop.eup %4677 }
 0xfe1   :  { %v1768_v26 = vmul.f32 %v4678_v60, %v4674_v36  ;;  %v1900_v15 = vsub.f32 %v1877_v46, %v1896_v11  ;;  %v1907_v17 = vsel %vm307_vm0, %v1903_v0, 0.0  ;;  %v3990_v46 = vld [vmem:[#allocation14] ss:$0 sm:$0xff]  ;;  %v1962_v60 = vpack.c.bf16 %v1960_v59, %v1959_v58 }
 0xfe2   :  { %v2036_v11 = vld [vmem:[%s6027_s14 + $0x28] sm:$0xff] }
 0xfe3   :  { %v1904_v19 = vmul.f32 %v1900_v15, %v1900_v15  ;;  %4373 = vmatprep.subr.bf16.mxu1 %v1962_v60 }
 0xfe4   :  { %v4680_v22 = vpop.eup %4679 }
 0xfe5   :  { %v1770_v30 = vmul.f32 %v4680_v22, %v4676_v55  ;;  %v1910_v20 = vsel %vm307_vm0, %v1904_v19, 0.0  ;;  %v1957_v22 = vld [vmem:[#allocation17] sm:$0xff] }
 0xfe7   :  { %v1771_v62 = vpack.c.bf16 %v1770_v30, %v1768_v26  ;;  %v1958_v26 = vld [vmem:[#allocation17 + $0x8] sm:$0xff] }
 0xfe8   :  { %v1961_v30 = vpack.c.bf16 %v1958_v26, %v1957_v22 }
 0xfe9   :  { %4364 = vmatmul.mubr.msk.bf16.vlgmr.msra.gmra.mxu1 %vm531_vm3, %v1771_v62  ;;  %v2037_v62 = vld [vmem:[%s6027_s14 + $0x30] sm:$0xff] }
 0xfea   :  { %4374 = vmatpush3.bf16.msra.mxu1 %v1962_v60 }
 0xfeb   :  { %4375 = vmatprep.subr.bf16.mxu1 %v1961_v30 }
 0xfee   :  { %4376 = vmatpush3.bf16.msra.mxu1 %v1961_v30 }
 0xfef   :  { %4393 = vmatprep.subr.bf16.mxu1 %v5095_v18 }
0x10a9   :  { %v1812_v29 = vpop.f32.mrf.mxu1 }
0x10ab   :  { %v4365_v37 = vpop.f32.mrf.mxu1 }
0x10ad   :  { %v1815_v63 = vpop.f32.mrf.mxu1 }
0x10ae   :  { %v1819_v47 = vpack.c.bf16 %v1815_v63, %v1812_v29  ;;  %v2038_v29 = vld [vmem:[%s6027_s14 + $0x38] sm:$0xff] }
0x10af   :  { %v4366_v27 = vpop.f32.mrf.mxu1  ;;  %v2042_v37 = vpack.c.bf16 %v2038_v29, %v2037_v62 }
0x10b0   :  { %4370 = vmatmul.mubr.msk.bf16.vlgmr.msra.gmra.mxu0 %vm475_vm2, %v1819_v47 }
0x10b1   :  { %4381 = vmatprep.subr.bf16.mxu0 %v2042_v37 }
0x10b2   :  { %4382 = vmatpush3.bf16.msra.mxu0 %v2042_v37 }
0x1170   :  { %v1857_v1 = vpop.f32.mrf.mxu0 }
0x1171   :  { %v1864_v2 = vadd.f32 %v1857_v1, %v1692_v49 }
0x1172   :  { %v4371_v3 = vpop.f32.mrf.mxu0 }
0x1173   :  { %v1874_v7 = vadd.f32 %v3989_v34, %v1864_v2 }
0x1174   :  { %v1860_v6 = vpop.f32.mrf.mxu0 }
0x1175   :  { %v1865_v51 = vadd.f32 %v1860_v6, %v1693_v53  ;;  %v1878_v8 = vadd.f32 %v4735_v35, %v1874_v7 }
0x1176   :  { %v4372_v10 = vpop.f32.mrf.mxu0 }
0x1177   :  { %v1875_v12 = vadd.f32 %v3989_v34, %v1865_v51  ;;  %v1888_v13 = vsel %vm307_vm0, %v1878_v8, 0.0 }
0x1178   :  { %1889 = vadd.xlane.f32.xlu1 %v1888_v13  ;;  %v2033_v13 = vld [vmem:[%s6027_s14 + $0x10] sm:$0xff] }
0x1179   :  { %v1879_v54 = vadd.f32 %v4736_v14, %v1875_v12  ;;  %v2034_v14 = vld [vmem:[%s6027_s14 + $0x18] sm:$0xff] }
0x117b   :  { %v1891_v16 = vsel %vm307_vm0, %v1879_v54, 0.0 }
0x117c   :  { %1892 = vadd.xlane.f32.xlu1 %v1891_v16  ;;  %v2032_v16 = vld [vmem:[%s6027_s14 + $0x8] sm:$0xff] }
0x1180   :  { %1908 = vadd.xlane.f32.xlu1 %v1907_v17 }
0x1184   :  { %1911 = vadd.xlane.f32.xlu1 %v1910_v20  ;;  %v3992_v20 = vld [vmem:[#allocation19] ss:$0 sm:$0xff] }
0x1201   :  { %v1890_v5 = vpop.xlane.xlu1 %1889 }
0x1202   :  { %v1897_v21 = vmul.f32 0.03125, %v1890_v5 }
0x1204   :  { %v1901_v23 = vsub.f32 %v1878_v8, %v1897_v21 }
0x1205   :  { %v1893_v25 = vpop.xlane.xlu1 %1892 }
0x1206   :  { %v1898_v28 = vmul.f32 0.03125, %v1893_v25  ;;  %v1905_v31 = vmul.f32 %v1901_v23, %v1901_v23 }
0x1208   :  { %v1902_v33 = vsub.f32 %v1879_v54, %v1898_v28  ;;  %v1913_v34 = vsel %vm307_vm0, %v1905_v31, 0.0  ;;  %v2040_v54 = vpack.c.bf16 %v2034_v14, %v2033_v13  ;;  %v4010_v14 = vld [vmem:[%s6019_s6 + $0x30] sm:$0xff] }
0x1209   :  { %1914 = vadd.xlane.f32.xlu0 %v1913_v34  ;;  %v1909_v36 = vpop.xlane.xlu1 %1908 }
0x120a   :  { %v1919_v39 = vmul.f32 0.03125, %v1909_v36  ;;  %v1906_v40 = vmul.f32 %v1902_v33, %v1902_v33 }
0x120c   :  { %v1923_v55 = vadd.f32 1e-05, %v1919_v39  ;;  %v1916_v41 = vsel %vm307_vm0, %v1906_v40, 0.0 }
0x120d   :  { %1917 = vadd.xlane.f32.xlu1 %v1916_v41  ;;  %v1912_v43 = vpop.xlane.xlu1 %1911  ;;  %v3995_v41 = vld [vmem:[#allocation20] ss:$0 sm:$0xff] }
0x120e   :  { %4681 = vrsqrt.f32 %v1923_v55  ;;  %v1920_v32 = vmul.f32 0.03125, %v1912_v43 }
0x1210   :  { %v1924_v9 = vadd.f32 1e-05, %v1920_v32 }
0x1212   :  { %4683 = vrsqrt.f32 %v1924_v9 }
0x121b   :  { %v4682_v44 = vpop.eup %4681 }
0x121c   :  { %v1931_v45 = vmul.f32 %v4682_v44, %v1899_v52  ;;  %v2035_v52 = vld [vmem:[%s6027_s14 + $0x20] sm:$0xff] }
0x121d   :  { %v2041_v12 = vpack.c.bf16 %v2036_v11, %v2035_v52  ;;  %v4000_v11 = vld [vmem:[%s6044_s4 + $0x20] sm:$0xff] }
0x121e   :  { %v1941_v49 = vmul.f32 %v3990_v46, %v1931_v45 }
0x121f   :  { %v4684_v48 = vpop.eup %4683  ;;  %4383 = vmatprep.subr.bf16.mxu0 %v2041_v12 }
0x1220   :  { %v1932_v61 = vmul.f32 %v4684_v48, %v1900_v15  ;;  %v5612_v53 = vadd.f32 %v3991_v24, %v1941_v49  ;;  %4384 = vmatpush3.bf16.msra.mxu0 %v2041_v12  ;;  %v2031_v15 = vld [vmem:[%s6027_s14] sm:$0xff]  ;;  %v4001_v12 = vld [vmem:[%s6044_s4 + $0x28] sm:$0xff] }
0x1221   :  { %4385 = vmatprep.subr.bf16.mxu0 %v2040_v54  ;;  %v2039_v0 = vpack.c.bf16 %v2032_v16, %v2031_v15  ;;  %v2189_v13 = vpack.c.bf16 %v4001_v12, %v4000_v11  ;;  %v4006_v16 = vld [vmem:[%s6045_s23 + $0x30] sm:$0xff] }
0x1222   :  { %v1942_v50 = vmul.f32 %v3990_v46, %v1932_v61 }
0x1224   :  { %v5614_v56 = vadd.f32 %v3991_v24, %v1942_v50  ;;  %4386 = vmatpush3.bf16.msra.mxu0 %v2040_v54  ;;  %v4011_v54 = vld [vmem:[%s6019_s6 + $0x38] sm:$0xff] }
0x1225   :  { %4387 = vmatprep.subr.bf16.mxu0 %v2039_v0  ;;  %v2204_v15 = vpack.c.bf16 %v4011_v54, %v4010_v14 }
0x1226   :  { %v1955_v57 = vpack.c.bf16 %v5614_v56, %v5612_v53 }
0x1228   :  { %4377 = vmatprep.mubr.msk.bf16.mxu1 %vm307_vm0, %v1955_v57  ;;  %4388 = vmatpush3.bf16.msra.mxu0 %v2039_v0  ;;  %v4007_v0 = vld [vmem:[%s6045_s23 + $0x38] sm:$0xff] }
0x1229   :  { %4409 = vmatprep.subr.bf16.mxu0 %v2204_v15 }
0x1292   :  { %v1915_v63 = vpop.xlane.xlu0 %1914 }
0x1293   :  { %v1921_v47 = vmul.f32 0.03125, %v1915_v63 }
0x1295   :  { %v1925_v27 = vadd.f32 1e-05, %v1921_v47 }
0x1296   :  { %v1918_v42 = vpop.xlane.xlu1 %1917 }
0x1297   :  { %4685 = vrsqrt.f32 %v1925_v27  ;;  %v1922_v1 = vmul.f32 0.03125, %v1918_v42 }
0x1299   :  { %v1926_v2 = vadd.f32 1e-05, %v1922_v1 }
0x129b   :  { %4687 = vrsqrt.f32 %v1926_v2 }
0x12a4   :  { %v4686_v3 = vpop.eup %4685 }
0x12a5   :  { %v1933_v4 = vmul.f32 %v4686_v3, %v1901_v23 }
0x12a7   :  { %v1943_v6 = vmul.f32 %v3990_v46, %v1933_v4 }
0x12a8   :  { %v4688_v7 = vpop.eup %4687 }
0x12a9   :  { %v1934_v38 = vmul.f32 %v4688_v7, %v1902_v33  ;;  %v1953_v35 = vadd.f32 %v3991_v24, %v1943_v6 }
0x12ab   :  { %v1944_v51 = vmul.f32 %v3990_v46, %v1934_v38 }
0x12ad   :  { %v1954_v8 = vadd.f32 %v3991_v24, %v1944_v51 }
0x12af   :  { %v1956_v10 = vpack.c.bf16 %v1954_v8, %v1953_v35 }
0x12b1   :  { %4378 = vmatmul.mubr.msk.bf16.vlgmr.msra.gmra.mxu1 %vm307_vm0, %v1956_v10  ;;  %v4003_v10 = vld [vmem:[%s6044_s4 + $0x38] sm:$0xff] }
0x12b2   :  { %4397 = vmatprep.mubr.msk.bf16.mxu1 %vm5096_vm1, %v5095_v18 }
0x1371   :  { %v4379_v17 = vpop.f32.mrf.mxu1 }
0x1372   :  { %v2019_v25 = vadd.f32 %v4379_v17, %v3992_v20  ;;  %v2197_v17 = vpack.c.bf16 %v4007_v0, %v4006_v16 }
0x1373   :  { %v2010_v19 = vpop.f32.mrf.mxu1 }
0x1374   :  { %v2011_v21 = vadd.f32 %v3992_v20, %v2010_v19  ;;  %v2027_v39 = vmax.f32 %v2019_v25, 0.0  ;;  %v4008_v19 = vld [vmem:[%s6019_s6 + $0x20] sm:$0xff] }
0x1375   :  { %v4380_v5 = vpop.f32.mrf.mxu1 }
0x1376   :  { %v2022_v23 = vadd.f32 %v4380_v5, %v3992_v20  ;;  %v2025_v34 = vmax.f32 %v2011_v21, 0.0 }
0x1377   :  { %v2013_v28 = vpop.f32.mrf.mxu1 }
0x1378   :  { %v2014_v31 = vadd.f32 %v3992_v20, %v2013_v28  ;;  %v2028_v33 = vmax.f32 %v2022_v23, 0.0  ;;  %v4009_v20 = vld [vmem:[%s6019_s6 + $0x28] sm:$0xff]  ;;  %s3940_s6 = sshll.u32 %s5100_s25, 4  ;;  %s3941_s6 = int_to_ptr.vmem [resolvable:$true] %s3940_s6 }
0x1379   :  { %v2203_v5 = vpack.c.bf16 %v4009_v20, %v4008_v19  ;;  %p5043_p6 = scmp.lt.s32.totalorder %s3941_s6, %s3941_s6 }
0x137a   :  { %v2026_v36 = vmax.f32 %v2014_v31, 0.0  ;;  %v2030_v55 = vpack.c.bf16 %v2028_v33, %v2027_v39 }
0x137c   :  { %v2029_v40 = vpack.c.bf16 %v2026_v36, %v2025_v34 }
0x137e   :  { %4389 = vmatprep.mubr.msk.bf16.mxu0 %vm2050_vm5, %v2029_v40 }
0x137f   :  { %4390 = vmatmul.mubr.msk.bf16.vlgmr.msra.gmra.mxu0 %vm2050_vm5, %v2030_v55 }
0x1380   :  { %4410 = vmatpush3.bf16.msra.mxu0 %v2204_v15 }
0x1381   :  { %4411 = vmatprep.subr.bf16.mxu0 %v2203_v5 }
0x1384   :  { %4412 = vmatpush3.bf16.msra.mxu0 %v2203_v5 }
0x1385   :  { %4423 = vmatprep.subr.bf16.mxu0 %v5095_v18 }
0x143f   :  { %v4391_v43 = vpop.f32.mrf.mxu0 }
0x1440   :  { %v2100_v32 = vadd.f32 %v4391_v43, %v3995_v41 }
0x1441   :  { %v2091_v9 = vpop.f32.mrf.mxu0 }
0x1442   :  { %v2092_v44 = vadd.f32 %v3995_v41, %v2091_v9  ;;  %v2108_v45 = vadd.f32 %v2100_v32, %v1953_v35  ;;  %v3998_v32 = vld [vmem:[#allocation22] ss:$0 sm:$0xff] }
0x1443   :  { %v4392_v46 = vpop.f32.mrf.mxu0 }
0x1444   :  { %v2118_v48 = vsel %vm307_vm0, %v2108_v45, 0.0  ;;  %v2106_v61 = vadd.f32 %v2092_v44, %v5612_v53  ;;  %v2103_v50 = vadd.f32 %v4392_v46, %v3995_v41  ;;  %v3999_v44 = vld [vmem:[#allocation23] ss:$0 sm:$0xff] }
0x1445   :  { %2119 = vadd.xlane.f32.xlu1 %v2118_v48  ;;  %v2094_v49 = vpop.f32.mrf.mxu0 }
0x1446   :  { %v2095_v24 = vadd.f32 %v3995_v41, %v2094_v49  ;;  %v2112_v57 = vsel %vm307_vm0, %v2106_v61, 0.0  ;;  %v2109_v60 = vadd.f32 %v2103_v50, %v1954_v8  ;;  %v4002_v8 = vld [vmem:[%s6044_s4 + $0x30] sm:$0xff] }
0x1447   :  { %v2190_v52 = vpack.c.bf16 %v4003_v10, %v4002_v8 }
0x1448   :  { %v2107_v58 = vadd.f32 %v2095_v24, %v5614_v56  ;;  %v2121_v22 = vsel %vm307_vm0, %v2109_v60, 0.0 }
0x1449   :  { %2113 = vadd.xlane.f32.xlu1 %v2112_v57  ;;  %4394 = vmatpush3.bf16.msra.mxu1 %v2190_v52 }
0x144a   :  { %v2115_v59 = vsel %vm307_vm0, %v2107_v58, 0.0  ;;  %4395 = vmatprep.subr.bf16.mxu1 %v5095_v18 }
0x144d   :  { %2116 = vadd.xlane.f32.xlu1 %v2115_v59  ;;  %4396 = vmatpush3.bf16.msra.mxu1 %v2189_v13  ;;  %v4004_v59 = vld [vmem:[%s6045_s23 + $0x20] sm:$0xff] }
0x144e   :  { %4401 = vmatprep.subr.bf16.mxu1 %v2197_v17 }
0x1451   :  { %2122 = vadd.xlane.f32.xlu1 %v2121_v22 }
0x14ce   :  { %v2120_v26 = vpop.xlane.xlu1 %2119 }
0x14cf   :  { %v2126_v30 = vmul.f32 0.03125, %v2120_v26 }
0x14d1   :  { %v5655_v62 = vsub.f32 %v2108_v45, %v2126_v30 }
0x14d2   :  { %v2114_v53 = vpop.xlane.xlu1 %2113 }
0x14d3   :  { %v2124_v29 = vmul.f32 0.03125, %v2114_v53  ;;  %v2134_v37 = vmul.f32 %v5655_v62, %v5655_v62 }
0x14d5   :  { %v5659_v63 = vsub.f32 %v2106_v61, %v2124_v29  ;;  %v2142_v56 = vsel %vm307_vm0, %v2134_v37, 0.0 }
0x14d6   :  { %2143 = vadd.xlane.f32.xlu1 %v2142_v56  ;;  %v2117_v47 = vpop.xlane.xlu1 %2116 }
0x14d7   :  { %v2125_v27 = vmul.f32 0.03125, %v2117_v47  ;;  %v2132_v42 = vmul.f32 %v5659_v63, %v5659_v63 }
0x14d9   :  { %v5664_v1 = vsub.f32 %v2107_v58, %v2125_v27  ;;  %v2136_v2 = vsel %vm307_vm0, %v2132_v42, 0.0  ;;  %v4012_v42 = vld [vmem:[#allocation7 + $0x1] ss:$0 sm:$0xff] }
0x14da   :  { %2137 = vadd.xlane.f32.xlu1 %v2136_v2  ;;  %v2123_v3 = vpop.xlane.xlu1 %2122 }
0x14db   :  { %v2127_v4 = vmul.f32 0.03125, %v2123_v3  ;;  %v2133_v7 = vmul.f32 %v5664_v1, %v5664_v1 }
0x14dd   :  { %v5669_v38 = vsub.f32 %v2109_v60, %v2127_v4  ;;  %v2139_v6 = vsel %vm307_vm0, %v2133_v7, 0.0  ;;  %v4005_v60 = vld [vmem:[%s6045_s23 + $0x28] sm:$0xff] }
0x14de   :  { %2140 = vadd.xlane.f32.xlu0 %v2139_v6  ;;  %v2196_v53 = vpack.c.bf16 %v4005_v60, %v4004_v59 }
0x14df   :  { %v2135_v51 = vmul.f32 %v5669_v38, %v5669_v38 }
0x14e1   :  { %v2145_v35 = vsel %vm307_vm0, %v2135_v51, 0.0  ;;  %v4014_v51 = vld [vmem:[#allocation8 + $0x1] ss:$0 sm:$0xff] }
0x14e2   :  { %2146 = vadd.xlane.f32.xlu1 %v2145_v35 }
0x155f   :  { %v2144_v21 = vpop.xlane.xlu1 %2143 }
0x1560   :  { %v2150_v23 = vmul.f32 0.03125, %v2144_v21 }
0x1562   :  { %v2154_v25 = vadd.f32 1e-05, %v2150_v23 }
0x1563   :  { %v2138_v28 = vpop.xlane.xlu1 %2137 }
0x1564   :  { %4689 = vrsqrt.f32 %v2154_v25  ;;  %v2148_v31 = vmul.f32 0.03125, %v2138_v28 }
0x1566   :  { %v2152_v33 = vadd.f32 1e-05, %v2148_v31 }
0x1567   :  { %v2141_v34 = vpop.xlane.xlu0 %2140 }
0x1568   :  { %4691 = vrsqrt.f32 %v2152_v33  ;;  %v2149_v36 = vmul.f32 0.03125, %v2141_v34 }
0x156a   :  { %v2153_v39 = vadd.f32 1e-05, %v2149_v36 }
0x156b   :  { %v2147_v40 = vpop.xlane.xlu1 %2146 }
0x156c   :  { %4693 = vrsqrt.f32 %v2153_v39  ;;  %v2151_v55 = vmul.f32 0.03125, %v2147_v40 }
0x156e   :  { %v2155_v41 = vadd.f32 1e-05, %v2151_v55 }
0x1570   :  { %4695 = vrsqrt.f32 %v2155_v41  ;;  %v5760_v41 = vld [vmem:[#allocation5] sm:$0x3] }
0x1571   :  { %v4690_v43 = vpop.eup %4689 }
0x1572   :  { %v2162_v9 = vmul.f32 %v4690_v43, %v5655_v62 }
0x1574   :  { %v2172_v45 = vmul.f32 %v3998_v32, %v2162_v9 }
0x1575   :  { %v4692_v46 = vpop.eup %4691 }
0x1576   :  { %v2160_v48 = vmul.f32 %v4692_v46, %v5659_v63  ;;  %v2182_v61 = vadd.f32 %v3999_v44, %v2172_v45 }
0x1578   :  { %v2170_v49 = vmul.f32 %v3998_v32, %v2160_v48  ;;  %v2221_v57 = vrot.slane %v2182_v61, 7 }
0x1579   :  { %v4694_v24 = vpop.eup %4693 }
0x157a   :  { %v2180_v50 = vadd.f32 %v3999_v44, %v2170_v49  ;;  %v2161_v58 = vmul.f32 %v4694_v24, %v5664_v1 }
0x157c   :  { %v5717_v22 = vsel %vm2223_vm6, %v2180_v50, %v2221_v57  ;;  %v2171_v26 = vmul.f32 %v3998_v32, %v2161_v58 }
0x157d   :  { %v4696_v30 = vpop.eup %4695  ;;  %v2227_v62 = vpack.c.bf16 %v5717_v22, %v5717_v22 }
0x157e   :  { %v2163_v29 = vmul.f32 %v4696_v30, %v5669_v38  ;;  %v2181_v37 = vadd.f32 %v3999_v44, %v2171_v26  ;;  %v4017_v38 = vld [vmem:[#allocation10 + $0x1] ss:$0 sm:$0xff] }
0x157f   :  { %4398 = vmatmul.mubr.msk.bf16.vlgmr.msra.gmra.mxu1 %vm307_vm0, %v2227_v62 }
0x1580   :  { %4402 = vmatpush3.bf16.msra.mxu1 %v2197_v17  ;;  %v2225_v63 = vpack.c.bf16 %v2181_v37, %v2180_v50  ;;  %v2173_v56 = vmul.f32 %v3998_v32, %v2163_v29 }
0x1581   :  { %4403 = vmatprep.subr.bf16.mxu1 %v2196_v53 }
0x1582   :  { %4405 = vmatprep.mubr.msk.bf16.mxu1 %vm307_vm0, %v2225_v63  ;;  %4413 = vmatprep.mubr.msk.bf16.mxu0 %vm307_vm0, %v2225_v63  ;;  %v2183_v47 = vadd.f32 %v3999_v44, %v2173_v56 }
0x1584   :  { %4404 = vmatpush3.bf16.msra.mxu1 %v2196_v53  ;;  %v2226_v27 = vpack.c.bf16 %v2183_v47, %v2182_v61 }
0x1585   :  { %4417 = vmatprep.subr.bf16.mxu1 %v5095_v18 }
0x1586   :  { %4414 = vmatmul.mubr.msk.bf16.vlgmr.msra.gmra.mxu0 %vm307_vm0, %v2226_v27 }
0x1587   :  { %4406 = vmatmul.mubr.msk.bf16.vlgmr.msra.gmra.mxu1 %vm307_vm0, %v2226_v27  ;;  %4425 = vmatprep.mubr.msk.bf16.mxu0 %vm5096_vm1, %v5095_v18 }
0x1588   :  { %4419 = vmatprep.mubr.msk.bf16.mxu1 %vm5096_vm1, %v5095_v18 }
0x163f   :  { %v2271_v1 = vpop.f32.mrf.mxu1 }
0x1640   :  { %v2272_v2 = vadd.f32 %v4012_v42, %v2271_v1  ;;  %v2206_v1 = vld [vmem:[#allocation11 + $0x20] sm:$0xff] }
0x1641   :  { %v4399_v3 = vpop.f32.mrf.mxu1 }
0x1642   :  { %v5732_v4 = vpack.c.bf16 %v2272_v2, %v2272_v2  ;;  %v2207_v2 = vld [vmem:[#allocation11 + $0x28] sm:$0xff] }
0x1643   :  { %v2274_v7 = vpop.f32.mrf.mxu1  ;;  %v2210_v3 = vpack.c.bf16 %v2207_v2, %v2206_v1 }
0x1644   :  { %2502 = vrot.lane.b32.xlu1 %v5732_v4, %s5097_s11 }
0x1645   :  { %v4400_v6 = vpop.f32.mrf.mxu1  ;;  %v2616_v7 = vrot.slane %v2210_v3, 4 }
0x1646   :  { %v4415_v35 = vpop.f32.mrf.mxu0 }
0x1647   :  { %v2387_v8 = vadd.f32 %v4415_v35, %v4017_v38  ;;  %v4407_v10 = vpop.f32.mrf.mxu1 }
0x1648   :  { %v2332_v52 = vadd.f32 %v4407_v10, %v4014_v51  ;;  %v2378_v11 = vpop.f32.mrf.mxu0  ;;  %v5784_v10 = vsel %vm735_vm4, %v2210_v3, 0 }
0x1649   :  { %v2323_v12 = vpop.f32.mrf.mxu1  ;;  %v2379_v0 = vadd.f32 %v4017_v38, %v2378_v11 }
0x164a   :  { %v4416_v13 = vpop.f32.mrf.mxu0  ;;  %v2324_v5 = vadd.f32 %v4014_v51, %v2323_v12 }
0x164b   :  { %v2390_v14 = vadd.f32 %v4416_v13, %v4017_v38  ;;  %v4408_v54 = vpop.f32.mrf.mxu1 }
0x164c   :  { %v2335_v15 = vadd.f32 %v4408_v54, %v4014_v51  ;;  %v2381_v16 = vpop.f32.mrf.mxu0 }
0x164d   :  { %v5736_v17 = vpack.c.bf16 %v2390_v14, %v2387_v8  ;;  %v2382_v19 = vadd.f32 %v4017_v38, %v2381_v16  ;;  %v2326_v20 = vpop.f32.mrf.mxu1  ;;  %v5779_v38 = vsel %vm735_vm4, %v2616_v7, 0 }
0x164e   :  { %v5738_v21 = vpack.c.bf16 %v2335_v15, %v2332_v52  ;;  %v2327_v23 = vadd.f32 %v4014_v51, %v2326_v20 }
0x164f   :  { %v5740_v25 = vpack.c.bf16 %v2382_v19, %v2379_v0 }
0x1650   :  { %v5742_v28 = vpack.c.bf16 %v2327_v23, %v2324_v5 }
0x1651   :  { %4424 = vmatpush3.bf16.msra.mxu0 %v5740_v25 }
0x1652   :  { %2505 = vrot.lane.b32.xlu0 %v5742_v28, %s5097_s11  ;;  %v2399_v31 = vsel %vm475_vm2, %v5742_v28, 0  ;;  %4435 = vmatprep.subr.bf16.mxu0 %v5095_v18 }
0x1653   :  { %4418 = vmatpush3.bf16.xpose.msra.mxu1 %v2399_v31 }
0x1654   :  { %4429 = vmatprep.subr.bf16.mxu1 %v5095_v18 }
0x165a   :  { %4420 = vmatmul.mubr.msk.bf16.vlgmr.msra.gmra.mxu1 %vm475_vm2, %v5732_v4 }
0x165b   :  { %4431 = vmatprep.mubr.msk.bf16.mxu1 %vm5096_vm1, %v5095_v18 }
0x16b6   :  { %v2503_v36 = vpop.permute.xlu1 %2502 }
0x16c4   :  { %v2506_v33 = vpop.permute.xlu0 %2505 }
0x16c5   :  { %v2511_v34 = vsel %vm475_vm2, %v2506_v33, 0 }
0x16c6   :  { %4430 = vmatpush3.bf16.xpose.msra.mxu1 %v2511_v34 }
0x16c7   :  { %4441 = vmatprep.subr.bf16.mxu1 %v5095_v18 }
0x16cd   :  { %4432 = vmatmul.mubr.msk.bf16.vlgmr.msra.gmra.mxu1 %vm475_vm2, %v2503_v36 }
0x16ce   :  { %4443 = vmatprep.mubr.msk.bf16.mxu1 %vm5096_vm1, %v5095_v18  ;;  %4442 = vmatpush3.bf16.msra.mxu1 %v5779_v38 }
0x16cf   :  { %4453 = vmatprep.subr.bf16.mxu1 %v5095_v18 }
0x171a   :  { %v2435_v39 = vpop.f32.mrf.mxu1 }
0x171b   :  { %v2441_v40 = vmul.f32 0.35355338, %v2435_v39 }
0x171c   :  { %v4421_v55 = vpop.f32.mrf.mxu1 }
0x171d   :  { %v2442_v43 = vadd.f32 %v5760_v41, %v2441_v40 }
0x171e   :  { %v2438_v32 = vpop.f32.mrf.mxu1 }
0x171f   :  { %v2444_v9 = vsel %vm2443_vm7, %v2442_v43, -inf }
0x1720   :  { %2445 = vmax.xlane.f32.xlu1 %v2444_v9  ;;  %v4422_v44 = vpop.f32.mrf.mxu1 }
0x178d   :  { %v2547_v45 = vpop.f32.mrf.mxu1 }
0x178e   :  { %v2553_v46 = vmul.f32 0.35355338, %v2547_v45 }
0x178f   :  { %v4433_v48 = vpop.f32.mrf.mxu1 }
0x1790   :  { %v2554_v61 = vadd.f32 %v5760_v41, %v2553_v46 }
0x1791   :  { %v2550_v49 = vpop.f32.mrf.mxu1 }
0x1792   :  { %v2555_v24 = vsel %vm2443_vm7, %v2554_v61, -inf }
0x1793   :  { %2556 = vmax.xlane.f32.xlu0 %v2555_v24  ;;  %v4434_v50 = vpop.f32.mrf.mxu1 }
0x17a9   :  { %v2446_v57 = vpop.xlane.xlu1 %2445 }
0x17aa   :  { %v2447_v58 = vsub.f32 %v2442_v43, %v2446_v57 }
0x17ac   :  { %v2448_v59 = vmul.f32 1.442695, %v2447_v58 }
0x17ae   :  { %4697 = vpow2.f32 %v2448_v59 }
0x17bb   :  { %v4698_v60 = vpop.eup %4697 }
0x17bc   :  { %v2450_v26 = vsel %vm2443_vm7, %v4698_v60, 0.0 }
0x17bd   :  { %2451 = vadd.xlane.f32.xlu0 %v2450_v26 }
0x17d3   :  { %2568 = vrot.lane.b32.xlu0 %v5740_v25, %s5097_s11 }
0x181c   :  { %v2557_v30 = vpop.xlane.xlu0 %2556 }
0x181d   :  { %v2558_v62 = vsub.f32 %v2554_v61, %v2557_v30 }
0x181f   :  { %v2559_v53 = vmul.f32 1.442695, %v2558_v62 }
0x1821   :  { %4699 = vpow2.f32 %v2559_v53 }
0x182e   :  { %v4700_v29 = vpop.eup %4699 }
0x182f   :  { %v2561_v37 = vsel %vm2443_vm7, %v4700_v29, 0.0 }
0x1830   :  { %2562 = vadd.xlane.f32.xlu1 %v2561_v37  ;;  %v2208_v37 = vld [vmem:[#allocation11 + $0x30] sm:$0xff] }
0x1841   :  { %2711 = vrot.lane.b32.xlu1 %v5742_v28, %s5098_s16 }
0x1845   :  { %2709 = vrot.lane.b32.xlu1 %v5732_v4, %s5098_s16 }
0x1846   :  { %v2452_v63 = vpop.xlane.xlu0 %2451 }
0x1847   :  { %4701 = vrcp.f32 %v2452_v63  ;;  %v2209_v63 = vld [vmem:[#allocation11 + $0x38] sm:$0xff] }
0x184a   :  { %v2569_v42 = vpop.permute.xlu0 %2568 }
0x1854   :  { %v4702_v56 = vpop.eup %4701 }
0x1855   :  { %v2454_v47 = vmul.f32 %v4702_v56, %v4698_v60  ;;  %v2211_v56 = vpack.c.bf16 %v2209_v63, %v2208_v37 }
0x1857   :  { %v2455_v27 = vpack.c.bf16 %v2454_v47, %v2454_v47  ;;  %v5825_v47 = vsel %vm735_vm4, %v2211_v56, 0 }
0x1859   :  { %4426 = vmatmul.mubr.msk.bf16.vlgmr.msra.gmra.mxu0 %vm531_vm3, %v2455_v27 }
0x185a   :  { %4436 = vmatpush3.bf16.msra.mxu0 %v2569_v42  ;;  %4437 = vmatprep.mubr.msk.bf16.mxu0 %vm5096_vm1, %v5095_v18 }
0x185b   :  { %4447 = vmatprep.subr.bf16.mxu0 %v5095_v18 }
0x18b9   :  { %v2563_v6 = vpop.xlane.xlu1 %2562 }
0x18ba   :  { %4703 = vrcp.f32 %v2563_v6 }
0x18bd   :  { %v2712_v54 = vpop.permute.xlu1 %2711 }
0x18be   :  { %v2717_v19 = vsel %vm475_vm2, %v2712_v54, 0 }
0x18c1   :  { %v2710_v23 = vpop.permute.xlu1 %2709 }
0x18c7   :  { %v4704_v51 = vpop.eup %4703 }
0x18c8   :  { %v2565_v35 = vmul.f32 %v4704_v51, %v4700_v29 }
0x18ca   :  { %v2566_v8 = vpack.c.bf16 %v2565_v35, %v2565_v35 }
0x18cc   :  { %4438 = vmatmul.mubr.msk.bf16.vlgmr.msra.gmra.mxu0 %vm531_vm3, %v2566_v8 }
0x18cd   :  { %4448 = vmatpush3.bf16.msra.mxu0 %v5784_v10  ;;  %4449 = vmatprep.mubr.msk.bf16.mxu0 %vm5096_vm1, %v5095_v18 }
0x18ce   :  { %4459 = vmatprep.subr.bf16.mxu0 %v5095_v18 }
0x1919   :  { %v2494_v52 = vpop.f32.mrf.mxu0 }
0x191a   :  { %v2500_v11 = vpack.c.bf16 %v2494_v52, %v2494_v52 }
0x191b   :  { %v4427_v12 = vpop.f32.mrf.mxu0 }
0x191c   :  { %4450 = vmatmul.mubr.msk.bf16.vlgmr.msra.gmra.mxu0 %vm475_vm2, %v2500_v11  ;;  %v5837_v12 = vshrl.u32 %v5732_v4, 16 }
0x191d   :  { %v2497_v13 = vpop.f32.mrf.mxu0  ;;  %4461 = vmatprep.mubr.msk.bf16.mxu0 %vm5096_vm1, %v5095_v18 }
0x191f   :  { %v4428_v14 = vpop.f32.mrf.mxu0 }
0x198c   :  { %v2608_v15 = vpop.f32.mrf.mxu0 }
0x198d   :  { %v2614_v16 = vpack.c.bf16 %v2608_v15, %v2608_v15 }
0x198e   :  { %v4439_v0 = vpop.f32.mrf.mxu0 }
0x198f   :  { %4444 = vmatmul.mubr.msk.bf16.vlgmr.msra.gmra.mxu1 %vm475_vm2, %v2614_v16 }
0x1990   :  { %4454 = vmatpush3.bf16.xpose.msra.mxu1 %v2717_v19  ;;  %v2611_v20 = vpop.f32.mrf.mxu0  ;;  %4455 = vmatprep.mubr.msk.bf16.mxu1 %vm5096_vm1, %v5095_v18 }
0x1991   :  { %4465 = vmatprep.subr.bf16.mxu1 %v5095_v18 }
0x1992   :  { %v4440_v5 = vpop.f32.mrf.mxu0 }
0x1997   :  { %4456 = vmatmul.mubr.msk.bf16.vlgmr.msra.gmra.mxu1 %vm475_vm2, %v2710_v23 }
0x1998   :  { %4467 = vmatprep.mubr.msk.bf16.mxu1 %vm5096_vm1, %v5095_v18  ;;  %4466 = vmatpush3.bf16.msra.mxu1 %v5825_v47 }
0x1999   :  { %4477 = vmatprep.subr.bf16.mxu1 %v5095_v18 }
0x19dc   :  { %v5802_v31 = vpop.f32.mrf.mxu0 }
0x19de   :  { %v4451_v33 = vpop.f32.mrf.mxu0 }
0x19df   :  { %v2979_v33 = vrot.slane %v2211_v56, 4 }
0x19e0   :  { %v2706_v34 = vpop.f32.mrf.mxu0 }
0x19e1   :  { %v5850_v34 = vsel %vm735_vm4, %v2979_v33, 0 }
0x19e2   :  { %v4452_v36 = vpop.f32.mrf.mxu0 }
0x1a4f   :  { %v5804_v39 = vpop.f32.mrf.mxu1 }
0x1a51   :  { %v4445_v40 = vpop.f32.mrf.mxu1 }
0x1a53   :  { %v2660_v55 = vpop.f32.mrf.mxu1 }
0x1a55   :  { %v4446_v43 = vpop.f32.mrf.mxu1 }
0x1a57   :  { %v2753_v32 = vpop.f32.mrf.mxu1 }
0x1a58   :  { %v2759_v9 = vmul.f32 0.35355338, %v2753_v32 }
0x1a59   :  { %v4457_v44 = vpop.f32.mrf.mxu1 }
0x1a5a   :  { %v2760_v45 = vadd.f32 %v5760_v41, %v2759_v9 }
0x1a5b   :  { %v2756_v46 = vpop.f32.mrf.mxu1 }
0x1a5c   :  { %v2761_v48 = vsel %vm2443_vm7, %v2760_v45, -inf }
0x1a5d   :  { %2762 = vmax.xlane.f32.xlu1 %v2761_v48  ;;  %v4458_v61 = vpop.f32.mrf.mxu1 }
0x1a6e   :  { %2869 = vrot.lane.b32.xlu1 %v5742_v28, %s5099_s28 }
0x1a72   :  { %2867 = vrot.lane.b32.xlu1 %v5732_v4, %s5099_s28  ;;  %v2704_v4 = vadd.f32 %v5802_v31, %v5804_v39  ;;  %v3034_v31 = vsel %vm475_vm2, %v5738_v21, 0 }
0x1ae6   :  { %v2763_v49 = vpop.xlane.xlu1 %2762 }
0x1ae7   :  { %v2764_v24 = vsub.f32 %v2760_v45, %v2763_v49 }
0x1ae9   :  { %v2765_v50 = vmul.f32 1.442695, %v2764_v24 }
0x1aea   :  { %v2870_v30 = vpop.permute.xlu1 %2869 }
0x1aeb   :  { %4705 = vpow2.f32 %v2765_v50  ;;  %v2875_v53 = vsel %vm475_vm2, %v2870_v30, 0 }
0x1aee   :  { %v2868_v29 = vpop.permute.xlu1 %2867 }
0x1af8   :  { %v4706_v57 = vpop.eup %4705 }
0x1af9   :  { %v2767_v58 = vsel %vm2443_vm7, %v4706_v57, 0.0 }
0x1afa   :  { %2768 = vadd.xlane.f32.xlu0 %v2767_v58 }
0x1b10   :  { %2773 = vrot.lane.b32.xlu0 %v5740_v25, %s5098_s16 }
0x1b83   :  { %v2769_v59 = vpop.xlane.xlu0 %2768 }
0x1b84   :  { %4707 = vrcp.f32 %v2769_v59 }
0x1b87   :  { %v2774_v60 = vpop.permute.xlu0 %2773 }
0x1b88   :  { %4460 = vmatpush3.bf16.msra.mxu0 %v2774_v60 }
0x1b89   :  { %4471 = vmatprep.subr.bf16.mxu0 %v5095_v18 }
0x1b91   :  { %v4708_v28 = vpop.eup %4707 }
0x1b92   :  { %v2771_v26 = vmul.f32 %v4708_v28, %v4706_v57 }
0x1b94   :  { %v2772_v62 = vpack.c.bf16 %v2771_v26, %v2771_v26 }
0x1b96   :  { %4462 = vmatmul.mubr.msk.bf16.vlgmr.msra.gmra.mxu0 %vm531_vm3, %v2772_v62 }
0x1b97   :  { %4472 = vmatpush3.bf16.xpose.msra.mxu0 %v2875_v53  ;;  %4473 = vmatprep.mubr.msk.bf16.mxu0 %vm5096_vm1, %v5095_v18 }
0x1b98   :  { %4483 = vmatprep.subr.bf16.mxu0 %v5095_v18 }
0x1b9e   :  { %4474 = vmatmul.mubr.msk.bf16.vlgmr.msra.gmra.mxu0 %vm475_vm2, %v2868_v29 }
0x1b9f   :  { %4485 = vmatprep.mubr.msk.bf16.mxu0 %vm5096_vm1, %v5095_v18  ;;  %4484 = vmatpush3.bf16.msra.mxu0 %v5850_v34 }
0x1ba0   :  { %4495 = vmatprep.subr.bf16.mxu0 %v5095_v18 }
0x1c56   :  { %v2813_v27 = vpop.f32.mrf.mxu0 }
0x1c57   :  { %v2819_v42 = vpack.c.bf16 %v2813_v27, %v2813_v27 }
0x1c58   :  { %v4463_v1 = vpop.f32.mrf.mxu0 }
0x1c59   :  { %4468 = vmatmul.mubr.msk.bf16.vlgmr.msra.gmra.mxu1 %vm475_vm2, %v2819_v42 }
0x1c5a   :  { %v2816_v2 = vpop.f32.mrf.mxu0  ;;  %4479 = vmatprep.mubr.msk.bf16.mxu1 %vm5096_vm1, %v5095_v18 }
0x1c5c   :  { %v4464_v3 = vpop.f32.mrf.mxu0 }
0x1c5e   :  { %v2911_v7 = vpop.f32.mrf.mxu0 }
0x1c5f   :  { %v2917_v6 = vmul.f32 0.35355338, %v2911_v7 }
0x1c60   :  { %v4475_v51 = vpop.f32.mrf.mxu0 }
0x1c61   :  { %v2918_v35 = vadd.f32 %v5760_v41, %v2917_v6 }
0x1c62   :  { %v2914_v8 = vpop.f32.mrf.mxu0 }
0x1c63   :  { %v2919_v52 = vsel %vm2443_vm7, %v2918_v35, -inf }
0x1c64   :  { %2920 = vmax.xlane.f32.xlu0 %v2919_v52  ;;  %v4476_v11 = vpop.f32.mrf.mxu0 }
0x1c7a   :  { %2931 = vrot.lane.b32.xlu0 %v5740_v25, %s5099_s28 }
0x1c7e   :  { %3138 = vrot.lane.b32.xlu0 %v5837_v12, %s5097_s11 }
0x1ced   :  { %v2921_v13 = vpop.xlane.xlu0 %2920 }
0x1cee   :  { %v2922_v14 = vsub.f32 %v2918_v35, %v2921_v13 }
0x1cf0   :  { %v2923_v54 = vmul.f32 1.442695, %v2922_v14 }
0x1cf1   :  { %v2932_v15 = vpop.permute.xlu0 %2931 }
0x1cf2   :  { %4709 = vpow2.f32 %v2923_v54  ;;  %4478 = vmatpush3.bf16.msra.mxu1 %v2932_v15 }
0x1cf3   :  { %4489 = vmatprep.subr.bf16.mxu1 %v5095_v18 }
0x1cf5   :  { %v3139_v9 = vpop.permute.xlu0 %3138 }
0x1cff   :  { %v4710_v16 = vpop.eup %4709 }
0x1d00   :  { %v2925_v0 = vsel %vm2443_vm7, %v4710_v16, 0.0 }
0x1d01   :  { %2926 = vadd.xlane.f32.xlu1 %v2925_v0 }
0x1d12   :  { %3141 = vrot.lane.b32.xlu1 %v5738_v21, %s5097_s11 }
0x1d19   :  { %v2860_v25 = vpop.f32.mrf.mxu1 }
0x1d1a   :  { %v5847_v19 = vadd.f32 %v2860_v25, %v2704_v4 }
0x1d1b   :  { %v4469_v20 = vpop.f32.mrf.mxu1 }
0x1d1d   :  { %v2863_v5 = vpop.f32.mrf.mxu1 }
0x1d1f   :  { %v4470_v23 = vpop.f32.mrf.mxu1 }
0x1d8a   :  { %v2927_v36 = vpop.xlane.xlu1 %2926 }
0x1d8b   :  { %4711 = vrcp.f32 %v2927_v36 }
0x1d8e   :  { %v3142_v39 = vpop.permute.xlu1 %3141 }
0x1d8f   :  { %v3147_v32 = vsel %vm475_vm2, %v3142_v39, 0 }
0x1d98   :  { %v4712_v40 = vpop.eup %4711 }
0x1d99   :  { %v2929_v55 = vmul.f32 %v4712_v40, %v4710_v16 }
0x1d9b   :  { %v2930_v43 = vpack.c.bf16 %v2929_v55, %v2929_v55 }
0x1d9d   :  { %4480 = vmatmul.mubr.msk.bf16.vlgmr.msra.gmra.mxu1 %vm531_vm3, %v2930_v43 }
0x1d9e   :  { %4490 = vmatpush3.bf16.xpose.msra.mxu1 %v3034_v31  ;;  %4491 = vmatprep.mubr.msk.bf16.mxu1 %vm5096_vm1, %v5095_v18 }
0x1d9f   :  { %4501 = vmatprep.subr.bf16.mxu1 %v5095_v18 }
0x1da5   :  { %4492 = vmatmul.mubr.msk.bf16.vlgmr.msra.gmra.mxu1 %vm475_vm2, %v5837_v12 }
0x1da6   :  { %4502 = vmatpush3.bf16.xpose.msra.mxu1 %v3147_v32  ;;  %4503 = vmatprep.mubr.msk.bf16.mxu1 %vm5096_vm1, %v5095_v18 }
0x1da7   :  { %4513 = vmatprep.subr.bf16.mxu1 %v5095_v18 }
0x1dad   :  { %4504 = vmatmul.mubr.msk.bf16.vlgmr.msra.gmra.mxu1 %vm475_vm2, %v3139_v9 }
0x1dae   :  { %4514 = vmatpush3.bf16.msra.mxu1 %v5779_v38  ;;  %4515 = vmatprep.mubr.msk.bf16.mxu1 %vm5096_vm1, %v5095_v18  ;;  %v5877_v38 = vrot.slane %v5760_v41, 1 }
0x1daf   :  { %4525 = vmatprep.subr.bf16.mxu1 %v5095_v18 }
0x1e5d   :  { %v2971_v44 = vpop.f32.mrf.mxu1 }
0x1e5e   :  { %v2977_v45 = vpack.c.bf16 %v2971_v44, %v2971_v44 }
0x1e5f   :  { %v4481_v46 = vpop.f32.mrf.mxu1 }
0x1e60   :  { %4486 = vmatmul.mubr.msk.bf16.vlgmr.msra.gmra.mxu0 %vm475_vm2, %v2977_v45 }
0x1e61   :  { %4496 = vmatpush3.bf16.msra.mxu0 %v5736_v17  ;;  %v2974_v48 = vpop.f32.mrf.mxu1  ;;  %4497 = vmatprep.mubr.msk.bf16.mxu0 %vm5096_vm1, %v5095_v18 }
0x1e62   :  { %4507 = vmatprep.subr.bf16.mxu0 %v5095_v18 }
0x1e63   :  { %v4482_v61 = vpop.f32.mrf.mxu1 }
0x1e65   :  { %v3070_v49 = vpop.f32.mrf.mxu1 }
0x1e66   :  { %v3076_v24 = vmul.f32 0.35355338, %v3070_v49 }
0x1e67   :  { %v4493_v50 = vpop.f32.mrf.mxu1 }
0x1e68   :  { %v3080_v57 = vadd.f32 %v5877_v38, %v3076_v24 }
0x1e69   :  { %v3073_v58 = vpop.f32.mrf.mxu1 }
0x1e6a   :  { %v3081_v59 = vsel %vm2443_vm7, %v3080_v57, -inf }
0x1e6b   :  { %3082 = vmax.xlane.f32.xlu1 %v3081_v59  ;;  %v4494_v60 = vpop.f32.mrf.mxu1 }
0x1e6d   :  { %v3183_v28 = vpop.f32.mrf.mxu1 }
0x1e6e   :  { %v3189_v26 = vmul.f32 0.35355338, %v3183_v28 }
0x1e6f   :  { %v4505_v30 = vpop.f32.mrf.mxu1 }
0x1e70   :  { %v3190_v62 = vadd.f32 %v3189_v26, %v5877_v38 }
0x1e71   :  { %v3186_v53 = vpop.f32.mrf.mxu1 }
0x1e72   :  { %v3191_v29 = vsel %vm2443_vm7, %v3190_v62, -inf }
0x1e73   :  { %3192 = vmax.xlane.f32.xlu0 %v3191_v29  ;;  %v4506_v41 = vpop.f32.mrf.mxu1 }
0x1e7c   :  { %3204 = vrot.lane.b32.xlu1 %v5736_v17, %s5097_s11 }
0x1e80   :  { %3337 = vrot.lane.b32.xlu1 %v5837_v12, %s5098_s16 }
0x1ef4   :  { %v3083_v37 = vpop.xlane.xlu1 %3082 }
0x1ef5   :  { %v3084_v63 = vsub.f32 %v3080_v57, %v3083_v37 }
0x1ef7   :  { %v3085_v56 = vmul.f32 1.442695, %v3084_v63 }
0x1ef8   :  { %v3205_v0 = vpop.permute.xlu1 %3204 }
0x1ef9   :  { %4713 = vpow2.f32 %v3085_v56 }
0x1efc   :  { %v3193_v27 = vpop.xlane.xlu0 %3192  ;;  %v3338_v9 = vpop.permute.xlu1 %3337 }
0x1efd   :  { %v3194_v42 = vsub.f32 %v3190_v62, %v3193_v27 }
0x1eff   :  { %v3195_v1 = vmul.f32 1.442695, %v3194_v42 }
0x1f01   :  { %4715 = vpow2.f32 %v3195_v1 }
0x1f06   :  { %v4714_v2 = vpop.eup %4713 }
0x1f07   :  { %v3087_v3 = vsel %vm2443_vm7, %v4714_v2, 0.0 }
0x1f08   :  { %3088 = vadd.xlane.f32.xlu0 %v3087_v3 }
0x1f0e   :  { %v4716_v7 = vpop.eup %4715 }
0x1f0f   :  { %v3197_v6 = vsel %vm2443_vm7, %v4716_v7, 0.0 }
0x1f10   :  { %3198 = vadd.xlane.f32.xlu0 %v3197_v6 }
0x1f20   :  { %v3020_v51 = vpop.f32.mrf.mxu0 }
0x1f21   :  { %v5890_v35 = vadd.f32 %v3020_v51, %v5847_v19 }
0x1f22   :  { %v4487_v8 = vpop.f32.mrf.mxu0 }
0x1f24   :  { %v3023_v52 = vpop.f32.mrf.mxu0 }
0x1f26   :  { %v4488_v11 = vpop.f32.mrf.mxu0  ;;  %3339 = vrot.lane.b32.xlu0 %v5738_v21, %s5098_s16 }
0x1f91   :  { %v3089_v13 = vpop.xlane.xlu0 %3088 }
0x1f92   :  { %4717 = vrcp.f32 %v3089_v13 }
0x1f99   :  { %v3199_v14 = vpop.xlane.xlu0 %3198 }
0x1f9a   :  { %4719 = vrcp.f32 %v3199_v14 }
0x1f9d   :  { %v3340_v40 = vpop.permute.xlu0 %3339 }
0x1f9f   :  { %v4718_v54 = vpop.eup %4717 }
0x1fa0   :  { %v3091_v15 = vmul.f32 %v4718_v54, %v4714_v2 }
0x1fa2   :  { %v3092_v16 = vpack.c.bf16 %v3091_v15, %v3091_v15 }
0x1fa4   :  { %4498 = vmatmul.mubr.msk.bf16.vlgmr.msra.gmra.mxu0 %vm531_vm3, %v3092_v16 }
0x1fa5   :  { %4508 = vmatpush3.bf16.msra.mxu0 %v3205_v0  ;;  %4509 = vmatprep.mubr.msk.bf16.mxu0 %vm5096_vm1, %v5095_v18 }
0x1fa6   :  { %4519 = vmatprep.subr.bf16.mxu0 %v5095_v18 }
0x1fa7   :  { %v4720_v4 = vpop.eup %4719 }
0x1fa8   :  { %v3201_v25 = vmul.f32 %v4720_v4, %v4716_v7 }
0x1faa   :  { %v3202_v19 = vpack.c.bf16 %v3201_v25, %v3201_v25 }
0x1fac   :  { %4510 = vmatmul.mubr.msk.bf16.vlgmr.msra.gmra.mxu0 %vm531_vm3, %v3202_v19 }
0x1fad   :  { %4520 = vmatpush3.bf16.msra.mxu0 %v5784_v10  ;;  %4521 = vmatprep.mubr.msk.bf16.mxu0 %vm5096_vm1, %v5095_v18  ;;  %v3345_v10 = vsel %vm475_vm2, %v3340_v40, 0 }
0x1fae   :  { %4531 = vmatprep.subr.bf16.mxu0 %v5095_v18 }
0x2064   :  { %v3131_v20 = vpop.f32.mrf.mxu0 }
0x2065   :  { %v3137_v5 = vpack.c.bf16 %v3131_v20, %v3131_v20 }
0x2066   :  { %v4499_v23 = vpop.f32.mrf.mxu0 }
0x2067   :  { %4522 = vmatmul.mubr.msk.bf16.vlgmr.msra.gmra.mxu0 %vm475_vm2, %v3137_v5 }
0x2068   :  { %v3134_v33 = vpop.f32.mrf.mxu0  ;;  %4533 = vmatprep.mubr.msk.bf16.mxu0 %vm5096_vm1, %v5095_v18 }
0x206a   :  { %v4500_v36 = vpop.f32.mrf.mxu0 }
0x206c   :  { %v3244_v55 = vpop.f32.mrf.mxu0 }
0x206d   :  { %v3250_v43 = vpack.c.bf16 %v3244_v55, %v3244_v55 }
0x206e   :  { %v4511_v31 = vpop.f32.mrf.mxu0 }
0x206f   :  { %4516 = vmatmul.mubr.msk.bf16.vlgmr.msra.gmra.mxu1 %vm475_vm2, %v3250_v43 }
0x2070   :  { %4526 = vmatpush3.bf16.xpose.msra.mxu1 %v3345_v10  ;;  %v3247_v39 = vpop.f32.mrf.mxu0  ;;  %4527 = vmatprep.mubr.msk.bf16.mxu1 %vm5096_vm1, %v5095_v18 }
0x2071   :  { %4537 = vmatprep.subr.bf16.mxu1 %v5095_v18 }
0x2072   :  { %v4512_v32 = vpop.f32.mrf.mxu0 }
0x2077   :  { %4528 = vmatmul.mubr.msk.bf16.vlgmr.msra.gmra.mxu1 %vm475_vm2, %v3338_v9 }
0x2078   :  { %4538 = vmatpush3.bf16.msra.mxu1 %v5825_v47  ;;  %4539 = vmatprep.mubr.msk.bf16.mxu1 %vm5096_vm1, %v5095_v18 }
0x2079   :  { %4549 = vmatprep.subr.bf16.mxu1 %v5095_v18 }
0x2127   :  { %v3331_v44 = vpop.f32.mrf.mxu0 }
0x2129   :  { %v4523_v45 = vpop.f32.mrf.mxu0 }
0x212b   :  { %v3334_v46 = vpop.f32.mrf.mxu0 }
0x212d   :  { %v4524_v48 = vpop.f32.mrf.mxu0 }
0x212f   :  { %v3288_v61 = vpop.f32.mrf.mxu1 }
0x2130   :  { %v5916_v49 = vadd.f32 %v3331_v44, %v3288_v61  ;;  %v4044_v61 = vld [vmem:[#allocation13 + $0x1] ss:$0 sm:$0xff] }
0x2131   :  { %v4517_v24 = vpop.f32.mrf.mxu1 }
0x2133   :  { %v3291_v50 = vpop.f32.mrf.mxu1 }
0x2135   :  { %v4518_v57 = vpop.f32.mrf.mxu1 }
0x2137   :  { %v3381_v58 = vpop.f32.mrf.mxu1 }
0x2138   :  { %v3387_v59 = vmul.f32 0.35355338, %v3381_v58 }
0x2139   :  { %v4529_v60 = vpop.f32.mrf.mxu1 }
0x213a   :  { %v3388_v47 = vadd.f32 %v3387_v59, %v5877_v38 }
0x213b   :  { %v3384_v28 = vpop.f32.mrf.mxu1 }
0x213c   :  { %v3389_v26 = vsel %vm2443_vm7, %v3388_v47, -inf }
0x213d   :  { %3390 = vmax.xlane.f32.xlu1 %v3389_v26  ;;  %v4530_v30 = vpop.f32.mrf.mxu1 }
0x214e   :  { %3494 = vrot.lane.b32.xlu1 %v5738_v21, %s5099_s28 }
0x2152   :  { %3492 = vrot.lane.b32.xlu1 %v5837_v12, %s5099_s28 }
0x21c6   :  { %v3391_v62 = vpop.xlane.xlu1 %3390 }
0x21c7   :  { %v3392_v53 = vsub.f32 %v3388_v47, %v3391_v62  ;;  %v3695_v62 = vld [vmem:[#allocation17 + $0x30] sm:$0xff] }
0x21c9   :  { %v3393_v29 = vmul.f32 1.442695, %v3392_v53  ;;  %v3696_v53 = vld [vmem:[#allocation17 + $0x38] sm:$0xff] }
0x21ca   :  { %v3495_v12 = vpop.permute.xlu1 %3494 }
0x21cb   :  { %4721 = vpow2.f32 %v3393_v29  ;;  %v3500_v1 = vsel %vm475_vm2, %v3495_v12, 0  ;;  %v3698_v29 = vpack.c.bf16 %v3696_v53, %v3695_v62 }
0x21ce   :  { %v3493_v2 = vpop.permute.xlu1 %3492 }
0x21d8   :  { %v4722_v41 = vpop.eup %4721 }
0x21d9   :  { %v3395_v37 = vsel %vm2443_vm7, %v4722_v41, 0.0 }
0x21da   :  { %3396 = vadd.xlane.f32.xlu0 %v3395_v37 }
0x21f0   :  { %3401 = vrot.lane.b32.xlu0 %v5736_v17, %s5098_s16 }
0x2263   :  { %v3397_v63 = vpop.xlane.xlu0 %3396 }
0x2264   :  { %4723 = vrcp.f32 %v3397_v63  ;;  %v4056_v63 = vld [vmem:[%s6027_s14 + $0x78] sm:$0xff] }
0x2267   :  { %v3402_v56 = vpop.permute.xlu0 %3401 }
0x2268   :  { %4532 = vmatpush3.bf16.msra.mxu0 %v3402_v56  ;;  %v4053_v56 = vld [vmem:[%s6027_s14 + $0x60] sm:$0xff] }
0x2269   :  { %4543 = vmatprep.subr.bf16.mxu0 %v5095_v18 }
0x2271   :  { %v4724_v21 = vpop.eup %4723 }
0x2272   :  { %v3399_v27 = vmul.f32 %v4724_v21, %v4722_v41  ;;  %v3694_v41 = vld [vmem:[#allocation17 + $0x28] sm:$0xff] }
0x2274   :  { %v3400_v42 = vpack.c.bf16 %v3399_v27, %v3399_v27  ;;  %v4054_v27 = vld [vmem:[%s6027_s14 + $0x68] sm:$0xff] }
0x2275   :  { %v3763_v12 = vpack.c.bf16 %v4054_v27, %v4053_v56 }
0x2276   :  { %4534 = vmatmul.mubr.msk.bf16.vlgmr.msra.gmra.mxu0 %vm531_vm3, %v3400_v42 }
0x2277   :  { %4544 = vmatpush3.bf16.xpose.msra.mxu0 %v3500_v1  ;;  %4545 = vmatprep.mubr.msk.bf16.mxu0 %vm5096_vm1, %v5095_v18 }
0x2278   :  { %4555 = vmatprep.subr.bf16.mxu0 %v5095_v18 }
0x227e   :  { %4546 = vmatmul.mubr.msk.bf16.vlgmr.msra.gmra.mxu0 %vm475_vm2, %v3493_v2 }
0x227f   :  { %4556 = vmatpush3.bf16.msra.mxu0 %v5850_v34  ;;  %4557 = vmatprep.mubr.msk.bf16.mxu0 %vm5096_vm1, %v5095_v18 }
0x2280   :  { %4569 = vmatprep.subr.bf16.mxu0 %v5095_v18 }
0x2336   :  { %v3441_v3 = vpop.f32.mrf.mxu0 }
0x2337   :  { %v3447_v7 = vpack.c.bf16 %v3441_v3, %v3441_v3 }
0x2338   :  { %v4535_v6 = vpop.f32.mrf.mxu0 }
0x2339   :  { %4540 = vmatmul.mubr.msk.bf16.vlgmr.msra.gmra.mxu1 %vm475_vm2, %v3447_v7  ;;  %v4045_v7 = vld [vmem:[#allocation14 + $0x1] ss:$0 sm:$0xff] }
0x233a   :  { %v3444_v51 = vpop.f32.mrf.mxu0  ;;  %4551 = vmatprep.mubr.msk.bf16.mxu1 %vm5096_vm1, %v5095_v18 }
0x233b   :  { %v4046_v51 = vld [vmem:[#allocation16 + $0x1] ss:$0 sm:$0xff] }
0x233c   :  { %v4536_v8 = vpop.f32.mrf.mxu0 }
0x233e   :  { %v3536_v52 = vpop.f32.mrf.mxu0 }
0x233f   :  { %v3542_v11 = vmul.f32 0.35355338, %v3536_v52 }
0x2340   :  { %v4547_v13 = vpop.f32.mrf.mxu0 }
0x2341   :  { %v3543_v34 = vadd.f32 %v3542_v11, %v5877_v38  ;;  %v4051_v13 = vld [vmem:[%s6027_s14 + $0x50] sm:$0xff] }
0x2342   :  { %v3539_v14 = vpop.f32.mrf.mxu0 }
0x2343   :  { %v3544_v54 = vsel %vm2443_vm7, %v3543_v34, -inf }
0x2344   :  { %3545 = vmax.xlane.f32.xlu1 %v3544_v54  ;;  %v4548_v15 = vpop.f32.mrf.mxu0  ;;  %v4049_v54 = vld [vmem:[%s6027_s14 + $0x40] sm:$0xff] }
0x2345   :  { %v4050_v15 = vld [vmem:[%s6027_s14 + $0x48] sm:$0xff] }
0x23cd   :  { %v3546_v16 = vpop.xlane.xlu1 %3545 }
0x23ce   :  { %v3547_v0 = vsub.f32 %v3543_v34, %v3546_v16  ;;  %v4052_v34 = vld [vmem:[%s6027_s14 + $0x58] sm:$0xff]  ;;  %v3761_v16 = vpack.c.bf16 %v4050_v15, %v4049_v54 }
0x23cf   :  { %v3762_v14 = vpack.c.bf16 %v4052_v34, %v4051_v13 }
0x23d0   :  { %v3548_v4 = vmul.f32 1.442695, %v3547_v0  ;;  %v4047_v0 = vld [vmem:[#allocation19 + $0x1] ss:$0 sm:$0xff] }
0x23d2   :  { %4725 = vpow2.f32 %v3548_v4 }
0x23df   :  { %v4726_v25 = vpop.eup %4725 }
0x23e0   :  { %v3550_v19 = vsel %vm2443_vm7, %v4726_v25, 0.0 }
0x23e1   :  { %3551 = vadd.xlane.f32.xlu0 %v3550_v19 }
0x23f7   :  { %3556 = vrot.lane.b32.xlu0 %v5736_v17, %s5099_s28 }
0x23f9   :  { %v3485_v20 = vpop.f32.mrf.mxu1 }
0x23fa   :  { %v3491_v5 = vadd.f32 %v3485_v20, %v5916_v49 }
0x23fb   :  { %v4541_v38 = vpop.f32.mrf.mxu1 }
0x23fd   :  { %v3488_v23 = vpop.f32.mrf.mxu1 }
0x23ff   :  { %v4542_v33 = vpop.f32.mrf.mxu1 }
0x2400   :  { %v4057_v33 = vld [vmem:[#allocation20 + $0x1] ss:$0 sm:$0xff] }
0x246a   :  { %v3552_v36 = vpop.xlane.xlu0 %3551 }
0x246b   :  { %4727 = vrcp.f32 %v3552_v36 }
0x246e   :  { %v3557_v40 = vpop.permute.xlu0 %3556 }
0x246f   :  { %4550 = vmatpush3.bf16.msra.mxu1 %v3557_v40 }
0x2470   :  { %4561 = vmatprep.subr.bf16.mxu1 %v5095_v18 }
0x2478   :  { %v4728_v55 = vpop.eup %4727 }
0x2479   :  { %v3554_v43 = vmul.f32 %v4728_v55, %v4726_v25 }
0x247b   :  { %v3555_v31 = vpack.c.bf16 %v3554_v43, %v3554_v43 }
0x247d   :  { %4552 = vmatmul.mubr.msk.bf16.vlgmr.msra.gmra.mxu1 %vm531_vm3, %v3555_v31 }
0x247e   :  { %4565 = vmatprep.mubr.msk.bf16.mxu1 %vm5096_vm1, %v5095_v18  ;;  %4562 = vmatpush3.bf16.msra.mxu1 %v3698_v29 }
0x247f   :  { %4563 = vmatprep.subr.bf16.mxu1 %v5095_v18 }
0x253d   :  { %v3596_v17 = vpop.f32.mrf.mxu1 }
0x253e   :  { %v3602_v10 = vpack.c.bf16 %v3596_v17, %v3596_v17 }
0x253f   :  { %v4553_v39 = vpop.f32.mrf.mxu1 }
0x2540   :  { %4558 = vmatmul.mubr.msk.bf16.vlgmr.msra.gmra.mxu0 %vm475_vm2, %v3602_v10 }
0x2541   :  { %v3599_v32 = vpop.f32.mrf.mxu1  ;;  %4577 = vmatprep.mubr.msk.bf16.mxu0 %vm5096_vm1, %v5095_v18 }
0x2543   :  { %v4554_v9 = vpop.f32.mrf.mxu1 }
0x2600   :  { %v3640_v44 = vpop.f32.mrf.mxu0 }
0x2601   :  { %v3646_v45 = vadd.f32 %v3640_v44, %v3491_v5 }
0x2602   :  { %v4559_v46 = vpop.f32.mrf.mxu0 }
0x2603   :  { %v3648_v48 = vrot.slane %v3646_v45, 7  ;;  %v3851_v46 = vld [vmem:[%s6031_s18 + $0x18] sm:$0xff] }
0x2604   :  { %v3643_v49 = vpop.f32.mrf.mxu0 }
0x2605   :  { %v3650_v24 = vsel %vm2223_vm6, %v5890_v35, %v3648_v48  ;;  %v3693_v35 = vld [vmem:[#allocation17 + $0x20] sm:$0xff]  ;;  %v3848_v49 = vld [vmem:[%s6031_s18] sm:$0xff] }
0x2606   :  { %v4560_v50 = vpop.f32.mrf.mxu0  ;;  %v3657_v57 = vadd.f32 %v4044_v61, %v3650_v24  ;;  %v3697_v37 = vpack.c.bf16 %v3694_v41, %v3693_v35  ;;  %v3850_v48 = vld [vmem:[%s6031_s18 + $0x10] sm:$0xff]  ;;  %v3849_v61 = vld [vmem:[%s6031_s18 + $0x8] sm:$0xff]  ;;  %s5038_s18 = scalar_lea.vmem %s3941_s6, 32 }
0x2607   :  { %p5039_p5 = scmp.ne.s32.totalorder %s3941_s6, %s5038_s18  ;;  %p5044_p7 = scmp.lt.s32.totalorder %s5038_s18, %s5038_s18 }
0x2608   :  { %v3658_v58 = vadd.f32 %v3657_v57, %v5717_v22  ;;  %4564 = vmatpush3.bf16.msra.mxu1 %v3697_v37  ;;  %v4055_v22 = vld [vmem:[%s6027_s14 + $0x70] sm:$0xff] }
0x2609   :  { %4581 = vmatprep.subr.mxu1 %v5095_v18  ;;  %v3764_v21 = vpack.c.bf16 %v4056_v63, %v4055_v22  ;;  %p5045_p8 = por %p5044_p7, %p5043_p6 }
0x260a   :  { %v3664_v59 = vsel %vm3663_vm8, %v3658_v58, 0.0 }
0x260b   :  { %3665 = vadd.xlane.f32.xlu1 %v3664_v59  ;;  %4570 = vmatpush3.bf16.msra.mxu0 %v3764_v21  ;;  %v4059_v59 = vld [vmem:[#allocation22 + $0x1] ss:$0 sm:$0xff]  ;;  %p5046_p9 = pnand %p5045_p8, %p5039_p5 }
0x260c   :  { %4571 = vmatprep.subr.bf16.mxu0 %v5095_v18 }
0x260f   :  { %4572 = vmatpush3.bf16.msra.mxu0 %v3763_v12 }
0x2610   :  { %4573 = vmatprep.subr.bf16.mxu0 %v5095_v18 }
0x2613   :  { %4574 = vmatpush3.bf16.msra.mxu0 %v3762_v14 }
0x2614   :  { %4575 = vmatprep.subr.bf16.mxu0 %v5095_v18 }
0x2617   :  { %4576 = vmatpush3.bf16.msra.mxu0 %v3761_v16 }
0x2694   :  { %v3666_v60 = vpop.xlane.xlu1 %3665 }
0x2695   :  { %v3667_v47 = vmul.f32 0.03125, %v3666_v60 }
0x2697   :  { %v3668_v28 = vsub.f32 %v3658_v58, %v3667_v47  ;;  %v4060_v47 = vld [vmem:[#allocation23 + $0x1] ss:$0 sm:$0xff] }
0x2699   :  { %v3669_v26 = vmul.f32 %v3668_v28, %v3668_v28 }
0x269b   :  { %v3670_v30 = vsel %vm3663_vm8, %v3669_v26, 0.0 }
0x269c   :  { %3671 = vadd.xlane.f32.xlu1 %v3670_v30  ;;  %v4061_v30 = vld [vmem:[#allocation25] ss:$0 sm:$0xff] }
0x2725   :  { %v3672_v42 = vpop.xlane.xlu1 %3671 }
0x2726   :  { %v3673_v1 = vmul.f32 0.03125, %v3672_v42 }
0x2728   :  { %v3674_v2 = vadd.f32 1e-05, %v3673_v1 }
0x272a   :  { %4729 = vrsqrt.f32 %v3674_v2 }
0x2737   :  { %v4730_v3 = vpop.eup %4729 }
0x2738   :  { %v3676_v6 = vmul.f32 %v4730_v3, %v3668_v28 }
0x273a   :  { %v3683_v8 = vmul.f32 %v4045_v7, %v3676_v6 }
0x273c   :  { %v3690_v52 = vadd.f32 %v4046_v51, %v3683_v8 }
0x273e   :  { %v3691_v11 = vpack.c.bf16 %v3690_v52, %v3690_v52 }
0x2740   :  { %4566 = vmatmul.mubr.msk.bf16.vlgmr.msra.gmra.mxu1 %vm307_vm0, %v3691_v11 }
0x2741   :  { %4589 = vmatprep.mubr.msk.f32.mxu1 %vm5096_vm1, %v5095_v18  ;;  %4582 = vmatpush3.msra.mxu1 %v3851_v46 }
0x2742   :  { %4583 = vmatprep.subr.mxu1 %v5095_v18 }
0x2743   :  { %4584 = vmatpush3.msra.mxu1 %v3850_v48 }
0x2744   :  { %4585 = vmatprep.subr.mxu1 %v5095_v18 }
0x2745   :  { %4586 = vmatpush3.msra.mxu1 %v3849_v61 }
0x2746   :  { %4587 = vmatprep.subr.mxu1 %v5095_v18 }
0x2747   :  { %4588 = vmatpush3.msra.mxu1 %v3848_v49 }
0x2800   :  { %v3744_v4 = vpop.f32.mrf.mxu1 }
0x2801   :  { %v3745_v25 = vadd.f32 %v4047_v0, %v3744_v4 }
0x2802   :  { %v4567_v19 = vpop.f32.mrf.mxu1 }
0x2803   :  { %v3750_v20 = vmax.f32 %v3745_v25, 0.0 }
0x2804   :  { %v3747_v5 = vpop.f32.mrf.mxu1 }
0x2805   :  { %v3751_v38 = vpack.c.bf16 %v3750_v20, %v3750_v20 }
0x2806   :  { %v4568_v23 = vpop.f32.mrf.mxu1 }
0x2807   :  { %4578 = vmatmul.mubr.msk.bf16.vlgmr.msra.gmra.mxu0 %vm2050_vm5, %v3751_v38 }
0x28c7   :  { %v3810_v36 = vpop.f32.mrf.mxu0 }
0x28c8   :  { %v3811_v40 = vadd.f32 %v4057_v33, %v3810_v36 }
0x28c9   :  { %v4579_v55 = vpop.f32.mrf.mxu0 }
0x28ca   :  { %v3816_v43 = vadd.f32 %v3811_v40, %v3690_v52 }
0x28cb   :  { %v3813_v31 = vpop.f32.mrf.mxu0 }
0x28cc   :  { %v3821_v17 = vsel %vm3663_vm8, %v3816_v43, 0.0 }
0x28cd   :  { %3822 = vadd.xlane.f32.xlu1 %v3821_v17  ;;  %v4580_v10 = vpop.f32.mrf.mxu0 }
0x2956   :  { %v3823_v39 = vpop.xlane.xlu1 %3822 }
0x2957   :  { %v3824_v32 = vmul.f32 0.03125, %v3823_v39 }
0x2959   :  { %v3825_v9 = vsub.f32 %v3816_v43, %v3824_v32 }
0x295b   :  { %v3826_v44 = vmul.f32 %v3825_v9, %v3825_v9 }
0x295d   :  { %v3827_v45 = vsel %vm3663_vm8, %v3826_v44, 0.0 }
0x295e   :  { %3828 = vadd.xlane.f32.xlu1 %v3827_v45 }
0x29e7   :  { %v3829_v24 = vpop.xlane.xlu1 %3828 }
0x29e8   :  { %v3830_v50 = vmul.f32 0.03125, %v3829_v24 }
0x29ea   :  { %v3831_v57 = vadd.f32 1e-05, %v3830_v50 }
0x29ec   :  { %4731 = vrsqrt.f32 %v3831_v57 }
0x29f9   :  { %v4732_v58 = vpop.eup %4731 }
0x29fa   :  { %v3833_v60 = vmul.f32 %v4732_v58, %v3825_v9 }
0x29fc   :  { %v3840_v28 = vmul.f32 %v4059_v59, %v3833_v60 }
0x29fe   :  { %v3847_v26 = vadd.f32 %v4060_v47, %v3840_v28 }
0x2a00   :  { %4590 = vmatmul.mubr.msk.f32.vlgmr.msra.gmra.mxu1 %vm307_vm0, %v3847_v26 }
0x2ac0   :  { %v3928_v62 = vpop.f32.mrf.mxu1 }
0x2ac1   :  { %v3929_v53 = vadd.f32 %v4061_v30, %v3928_v62 }
0x2ac2   :  { %v4591_v18 = vpop.f32.mrf.mxu1 }
0x2ac3   :  { %3933 = vst.msk [vmem:[#allocation26] sm:$0x3] %vm3932_vm9, %v3929_v53 }
0x2ac4   :  { %5049 = shalt.err (!%p5046_p9)
}
0x2ac5   :  { %3943 = dma.vmem_to_hbm [thread:$0]  %s3941_s6, 32, %s6033_s20, [#allocation4]  }
0x2ac6   :  { %5074 = dma.done.wait [#allocation4], 32  }
0x2ac7   :  { %5075 = vsyncadd [#allocation4], 4294967264 }
0x2ac8   :  { %3947 = vsyncpa [#allocation3], 1 }
0x2ac9   :  { %3948 = vsyncpa [#allocation6], 1 }
0x2aca   :  { %3949 = vsyncpa [#allocation9], 1 }
0x2acb   :  { %3950 = vsyncpa [#allocation12], 1 }
0x2acc   :  { %3951 = vsyncpa [#allocation15], 1 }
0x2acd   :  { %3952 = vsyncpa [#allocation18], 1 }
0x2ace   :  { %3953 = vsyncpa [#allocation21], 1 }
0x2acf   :  { %3954 = vsyncpa [#allocation24], 1 }
0x2ad0   :  { %3955 = vsyncpa [#allocation4], 1 }

</bundles_post_ra>
